<compile_context>
chip_gen: v5e
topology: v5e:2x2
jax: 0.10.0
libtpu: 0.0.40
codegen_flags: <defaults>
</compile_context>

<pallas_src>
import functools
import math

import jax
import jax.numpy as jnp
from jax.experimental import pallas as pl
from jax.experimental.pallas import tpu as pltpu


def _round_up(x, m):
    return ((x + m - 1) // m) * m


def _block_diag2(a, b):
    r1, c1 = a.shape
    r2, c2 = b.shape
    top = jnp.concatenate([a, jnp.zeros((r1, c2), a.dtype)], axis=1)
    bot = jnp.concatenate([jnp.zeros((r2, c1), b.dtype), b], axis=1)
    return jnp.concatenate([top, bot], axis=0)


# -----------------------------------------------------------------------------
# Kernel: full TemporalConv forward for one batch tile (time-major layout).
# -----------------------------------------------------------------------------
def _temporal_conv_kernel(x_ref, w1_ref, w2_ref, wc1_ref, wc2_ref, wc3_ref,
                          wq_ref, bct_ref, bcv_ref, bp_ref, o_ref,
                          h_ref, a1_ref, a2_ref, a3_ref):
    f32 = jnp.float32
    cdt = x_ref.dtype
    tp, tb, _ = x_ref.shape        # (pair frames = T//2, batch tile, 2*input_dim)
    n1 = tp - 4                    # conv1 (k=9, s=2) output frames: 11
    n2 = n1 - 4                    # conv2 (k=5, s=1) output frames: 7
    n3 = n2 - 4                    # conv3 (k=5, s=1) output frames: 3

    # ---- channel transform: Linear+ReLU, Linear+ReLU, batched over the tile.
    # Block-diagonal weights keep the even time step in features 0:32 and the
    # odd step in 32:64, so the stride-2 conv below never needs strided access.
    for t in range(tp):            # static unroll; every dot has M = tb
        g = jnp.dot(x_ref[t], w1_ref[...], preferred_element_type=f32)
        g = jnp.maximum(g + bct_ref[0:1, :], 0.0).astype(cdt)
        g = jnp.dot(g, w2_ref[...], preferred_element_type=f32)
        h_ref[t * tb:(t + 1) * tb, :] = (
            jnp.maximum(g + bct_ref[1:2, :], 0.0).astype(cdt))

    # ---- Conv1d(32,32,k=9,s=2) + ReLU.  Taps (2m, 2m+1) are fused into one
    # [64,32] weight applied to pair frame t+m; rows are (frame, batch) so each
    # tap is a single aligned-slice matmul over the whole tile (M = 11*tb).
    acc = jnp.dot(h_ref[0:n1 * tb, :], wc1_ref[0], preferred_element_type=f32)
    for m in range(1, 5):
        acc += jnp.dot(h_ref[m * tb:(m + n1) * tb, :], wc1_ref[m],
                       preferred_element_type=f32)
    a1_ref[...] = jnp.maximum(acc + bcv_ref[0:1, :], 0.0).astype(cdt)

    # ---- Conv1d(32,32,k=5,s=1) + ReLU  (M = 7*tb per tap) -------------------
    acc = jnp.dot(a1_ref[0:n2 * tb, :], wc2_ref[0], preferred_element_type=f32)
    for j in range(1, 5):
        acc += jnp.dot(a1_ref[j * tb:(j + n2) * tb, :], wc2_ref[j],
                       preferred_element_type=f32)
    a2_ref[...] = jnp.maximum(acc + bcv_ref[1:2, :], 0.0).astype(cdt)

    # ---- Conv1d(32,32,k=5,s=1) + ReLU  (M = 3*tb per tap) -------------------
    acc = jnp.dot(a2_ref[0:n3 * tb, :], wc3_ref[0], preferred_element_type=f32)
    for j in range(1, 5):
        acc += jnp.dot(a2_ref[j * tb:(j + n3) * tb, :], wc3_ref[j],
                       preferred_element_type=f32)
    a3_ref[...] = jnp.maximum(acc + bcv_ref[2:3, :], 0.0).astype(cdt)

    # ---- low_dim_proj (channel-major flatten folded into wq layout);
    # three M=tb dots and a single dense [tb, out_dim] store.
    y = jnp.dot(a3_ref[0:tb, :], wq_ref[0], preferred_element_type=f32)
    for t in range(1, 3):
        y += jnp.dot(a3_ref[t * tb:(t + 1) * tb, :], wq_ref[t],
                     preferred_element_type=f32)
    o_ref[...] = (y + bp_ref[...]).astype(o_ref.dtype)


# -----------------------------------------------------------------------------
# Wrapper: parameter/layout plumbing + pallas_call.
# -----------------------------------------------------------------------------
@functools.partial(jax.jit, static_argnames=("batch_tile", "compute_dtype"))
def temporal_conv_forward(x, params, *, batch_tile=256,
                          compute_dtype=jnp.bfloat16):
    """x: [B, T, input_dim] float32  ->  [B, output_dim] float32."""
    B, T, d_in = x.shape
    assert T % 2 == 0, "stride-2 even/odd pairing requires even T"
    tp = T // 2
    n1, n2, n3 = tp - 4, tp - 8, tp - 12
    assert n3 == 3, (
        f"TemporalConv.low_dim_proj expects 32*3 conv features; T={T} gives {n3}")
    out_dim = params["bp"].shape[0]
    dpair = 2 * d_in
    cdt = compute_dtype
    f32 = jnp.float32

    # Batch tile: multiple of 16 (keeps every sublane slice aligned for both f32
    # and bf16); keep >= 2 grid tiles when B allows so the "parallel" grid axis
    # can be sharded across both v7x TensorCores.  Per-tile VMEM at tb=256 is
    # ~3 MiB, far under every generation's scoped-VMEM default (raise
    # vmem_limit_bytes only if batch_tile is pushed past ~2K).
    if B >= 32:
        tb = min(batch_tile, _round_up(pl.cdiv(B, 2), 16))
    else:
        tb = _round_up(B, 16)
    tb = max(16, tb)
    n_tiles = pl.cdiv(B, tb)
    b_padded = n_tiles * tb

    # --- parameters: torch layouts -> MXU-friendly layouts (pure plumbing) ----
    w1t = params["w1"].T.astype(f32)                       # [d_in, 32]
    w2t = params["w2"].T.astype(f32)                       # [32, 32]
    w1b = _block_diag2(w1t, w1t).astype(cdt)               # [2*d_in, 64]
    w2b = _block_diag2(w2t, w2t).astype(cdt)               # [64, 64]
    b_ct = jnp.stack(
        [jnp.concatenate([params["b1"], params["b1"]]),
         jnp.concatenate([params["b2"], params["b2"]])]).astype(f32)   # [2, 64]

    taps1 = jnp.transpose(params["wc1"], (2, 1, 0))        # [9, c_in, c_out]
    wc1p = jnp.concatenate(
        [taps1[0::2],
         jnp.concatenate([taps1[1::2],
                          jnp.zeros((1, 32, 32), taps1.dtype)], axis=0)],
        axis=1).astype(cdt)                                # [5, 64, 32]
    wc2t = jnp.transpose(params["wc2"], (2, 1, 0)).astype(cdt)   # [5, 32, 32]
    wc3t = jnp.transpose(params["wc3"], (2, 1, 0)).astype(cdt)   # [5, 32, 32]
    b_cv = jnp.stack([params["bc1"], params["bc2"],
                      params["bc3"]]).astype(f32)          # [3, 32]

    # PyTorch flattens [B,32,3] channel-major (idx = c*3 + t); fold that
    # permutation into the projection weight so the kernel never reshapes.
    wqt = jnp.transpose(params["wp"].reshape(out_dim, 32, 3),
                        (2, 1, 0)).astype(cdt)             # [3, 32, out]
    bpj = params["bp"].reshape(1, out_dim).astype(f32)

    # --- input: free pair reshape, then ONE fused transpose+cast so the kernel
    # sees time-major rows (replaces the previous two strided even/odd gathers).
    x_t = jnp.transpose(x.reshape(B, tp, dpair), (1, 0, 2)).astype(cdt)
    if b_padded != B:
        x_t = jnp.pad(x_t, ((0, 0), (0, b_padded - B), (0, 0)))

    const2 = lambda i: (0, 0)
    const3 = lambda i: (0, 0, 0)

    out = pl.pallas_call(
        _temporal_conv_kernel,
        out_shape=jax.ShapeDtypeStruct((b_padded, out_dim), jnp.float32),
        grid=(n_tiles,),
        in_specs=[
            pl.BlockSpec((tp, tb, dpair), lambda i: (0, i, 0)),  # x, time-major
            pl.BlockSpec((dpair, 64), const2),                   # block-diag W1
            pl.BlockSpec((64, 64), const2),                      # block-diag W2
            pl.BlockSpec((5, 64, 32), const3),                   # conv1 paired taps
            pl.BlockSpec((5, 32, 32), const3),                   # conv2 taps
            pl.BlockSpec((5, 32, 32), const3),                   # conv3 taps
            pl.BlockSpec((3, 32, out_dim), const3),              # projection taps
            pl.BlockSpec((2, 64), const2),                       # channel-xf biases
            pl.BlockSpec((3, 32), const2),                       # conv biases
            pl.BlockSpec((1, out_dim), const2),                  # projection bias
        ],
        out_specs=pl.BlockSpec((tb, out_dim), lambda i: (i, 0)),
        scratch_shapes=[
            pltpu.VMEM((tp * tb, 64), cdt),   # h  (channel transform, time-major)
            pltpu.VMEM((n1 * tb, 32), cdt),   # a1 (conv1 output)
            pltpu.VMEM((n2 * tb, 32), cdt),   # a2 (conv2 output)
            pltpu.VMEM((n3 * tb, 32), cdt),   # a3 (conv3 output)
        ],
        compiler_params=pltpu.CompilerParams(
            dimension_semantics=("parallel",)),
    )(x_t, w1b, w2b, wc1p, wc2t, wc3t, wqt, b_ct, b_cv, bpj)

    return out[:B]


# -----------------------------------------------------------------------------
# Parameters (PyTorch layouts) and a pure-JAX reference for validation.
# -----------------------------------------------------------------------------
def init_temporal_conv_params(key, input_dim, output_dim):
    """Random params in PyTorch layouts: Linear [out,in], Conv1d [out,in,k]."""
    def w_init(k, shape, fan_in):
        return jax.random.normal(k, shape, jnp.float32) * math.sqrt(2.0 / fan_in)

    def b_init(k, shape, fan_in):
        bound = 1.0 / math.sqrt(fan_in)
        return jax.random.uniform(k, shape, jnp.float32, -bound, bound)

    ks = jax.random.split(key, 12)
    return {
        "w1": w_init(ks[0], (32, input_dim), input_dim),
        "b1": b_init(ks[1], (32,), input_dim),
        "w2": w_init(ks[2], (32, 32), 32),
        "b2": b_init(ks[3], (32,), 32),
        "wc1": w_init(ks[4], (32, 32, 9), 32 * 9),
        "bc1": b_init(ks[5], (32,), 32 * 9),
        "wc2": w_init(ks[6], (32, 32, 5), 32 * 5),
        "bc2": b_init(ks[7], (32,), 32 * 5),
        "wc3": w_init(ks[8], (32, 32, 5), 32 * 5),
        "bc3": b_init(ks[9], (32,), 32 * 5),
        "wp": w_init(ks[10], (output_dim, 32 * 3), 32 * 3),
        "bp": b_init(ks[11], (output_dim,), 32 * 3),
    }


def temporal_conv_ref(x, params):
    """Pure-JAX reference mirroring the PyTorch forward exactly."""
    hp = jax.lax.Precision.HIGHEST
    h = jnp.maximum(jnp.matmul(x, params["w1"].T, precision=hp) + params["b1"], 0.0)
    h = jnp.maximum(jnp.matmul(h, params["w2"].T, precision=hp) + params["b2"], 0.0)
    h = jnp.transpose(h, (0, 2, 1))                                  # [B, 32, T]

    def conv1d(z, w, b, stride):
        out = jax.lax.conv_general_dilated(
            z, w, window_strides=(stride,), padding="VALID",
            dimension_numbers=("NCH", "OIH", "NCH"), precision=hp)
        return out + b[None, :, None]

    h = jnp.maximum(conv1d(h, params["wc1"], params["bc1"], 2), 0.0)
    h = jnp.maximum(conv1d(h, params["wc2"], params["bc2"], 1), 0.0)
    h = jnp.maximum(conv1d(h, params["wc3"], params["bc3"], 1), 0.0)  # [B, 32, 3]
    flat = h.reshape(h.shape[0], -1)                                  # [B, 96]
    return jnp.matmul(flat, params["wp"].T, precision=hp) + params["bp"]


if __name__ == "__main__":
    # T must satisfy the conv arithmetic (30 -> 11 -> 7 -> 3).  B=40 makes the
    # grid have 2 "parallel" tiles (tb=32) AND exercises the batch-padding path.
    batch, seq, input_dim, output_dim = 40, 30, 16, 8

    key = jax.random.PRNGKey(0)
    kx, kp = jax.random.split(key)
    x = jax.random.normal(kx, (batch, seq, input_dim), dtype=jnp.float32)
    params = init_temporal_conv_params(kp, input_dim, output_dim)

    ref = temporal_conv_ref(x, params)
    scale = float(jnp.maximum(1.0, jnp.max(jnp.abs(ref))))

    # float32 path: matches the PyTorch module numerics closely.
    out_f32 = jax.block_until_ready(
        temporal_conv_forward(x, params, compute_dtype=jnp.float32))
    assert out_f32.shape == (batch, output_dim)
    err_f32 = float(jnp.max(jnp.abs(out_f32 - ref)))
    assert err_f32 < 2e-2, f"f32 max abs error {err_f32}"

    # bf16 matmul path (default): halves HBM traffic / doubles MXU throughput;
    # use a scale-relative check so near-zero outputs don't inflate the error.
    out_bf16 = jax.block_until_ready(temporal_conv_forward(x, params))
    err_bf16 = float(jnp.max(jnp.abs(out_bf16 - ref))) / scale
    assert err_bf16 < 6e-2, f"bf16 scale-relative error {err_bf16}"

    print("KERNEL_OK")
</pallas_src>

<mosaic_0001>
module attributes {stable_mosaic.version = 11 : i64} {
  func.func @_temporal_conv_kernel(%arg0: i32, %arg1: memref<15x32x32xf32, #tpu.memory_space<vmem>>, %arg2: memref<32x64xf32, #tpu.memory_space<vmem>>, %arg3: memref<64x64xf32, #tpu.memory_space<vmem>>, %arg4: memref<5x64x32xf32, #tpu.memory_space<vmem>>, %arg5: memref<5x32x32xf32, #tpu.memory_space<vmem>>, %arg6: memref<5x32x32xf32, #tpu.memory_space<vmem>>, %arg7: memref<3x32x8xf32, #tpu.memory_space<vmem>>, %arg8: memref<2x64xf32, #tpu.memory_space<vmem>>, %arg9: memref<3x32xf32, #tpu.memory_space<vmem>>, %arg10: memref<1x8xf32, #tpu.memory_space<vmem>>, %arg11: memref<32x8xf32, #tpu.memory_space<vmem>>, %arg12: memref<480x64xf32, #tpu.memory_space<vmem>>, %arg13: memref<352x32xf32, #tpu.memory_space<vmem>>, %arg14: memref<224x32xf32, #tpu.memory_space<vmem>>, %arg15: memref<96x32xf32, #tpu.memory_space<vmem>>) attributes {dimension_semantics = [#tpu.dimension_semantics<parallel>], iteration_bounds = array<i64: 2>, scalar_prefetch = 0 : i64, scratch_operands = 4 : i64, tpu.core_type = #tpu.core_type<tc>, window_params = [{transform_indices = @transform_0, window_bounds = array<i64: 15, 32, 32>}, {pipeline_mode = #tpu.pipeline_mode<synchronous>, transform_indices = @transform_1, window_bounds = array<i64: 32, 64>}, {pipeline_mode = #tpu.pipeline_mode<synchronous>, transform_indices = @transform_2, window_bounds = array<i64: 64, 64>}, {pipeline_mode = #tpu.pipeline_mode<synchronous>, transform_indices = @transform_3, window_bounds = array<i64: 5, 64, 32>}, {pipeline_mode = #tpu.pipeline_mode<synchronous>, transform_indices = @transform_4, window_bounds = array<i64: 5, 32, 32>}, {pipeline_mode = #tpu.pipeline_mode<synchronous>, transform_indices = @transform_5, window_bounds = array<i64: 5, 32, 32>}, {pipeline_mode = #tpu.pipeline_mode<synchronous>, transform_indices = @transform_6, window_bounds = array<i64: 3, 32, 8>}, {pipeline_mode = #tpu.pipeline_mode<synchronous>, transform_indices = @transform_7, window_bounds = array<i64: 2, 64>}, {pipeline_mode = #tpu.pipeline_mode<synchronous>, transform_indices = @transform_8, window_bounds = array<i64: 3, 32>}, {pipeline_mode = #tpu.pipeline_mode<synchronous>, transform_indices = @transform_9, window_bounds = array<i64: 1, 8>}, {transform_indices = @transform_10, window_bounds = array<i64: 32, 8>}]} {
    %c0 = arith.constant 0 : index
    %c0_0 = arith.constant 0 : index
    %c0_1 = arith.constant 0 : index
    %0 = vector.load %arg1[%c0, %c0_0, %c0_1] : memref<15x32x32xf32, #tpu.memory_space<vmem>>, vector<1x32x32xf32>
    %1 = vector.shape_cast %0 : vector<1x32x32xf32> to vector<32x32xf32>
    %c0_2 = arith.constant 0 : index
    %c0_3 = arith.constant 0 : index
    %2 = vector.load %arg2[%c0_2, %c0_3] : memref<32x64xf32, #tpu.memory_space<vmem>>, vector<32x64xf32>
    %cst = arith.constant dense<0.000000e+00> : vector<32x64xf32>
    %3 = tpu.matmul %1, %2, %cst {dimension_numbers = #tpu.dot_dimension_numbers<[1], [0], [0], [1], [0, 0, 1, 1], [], []>} : vector<32x32xf32>, vector<32x64xf32>, vector<32x64xf32> -> vector<32x64xf32>
    %c0_4 = arith.constant 0 : index
    %c0_5 = arith.constant 0 : index
    %4 = vector.load %arg8[%c0_4, %c0_5] : memref<2x64xf32, #tpu.memory_space<vmem>>, vector<1x64xf32>
    %5 = vector.broadcast %4 : vector<1x64xf32> to vector<32x64xf32>
    %6 = arith.addf %3, %5 : vector<32x64xf32>
    %cst_6 = arith.constant 0.000000e+00 : f32
    %7 = vector.broadcast %cst_6 : f32 to vector<32x64xf32>
    %8 = arith.maximumf %6, %7 : vector<32x64xf32>
    %c0_7 = arith.constant 0 : index
    %c0_8 = arith.constant 0 : index
    %9 = vector.load %arg3[%c0_7, %c0_8] : memref<64x64xf32, #tpu.memory_space<vmem>>, vector<64x64xf32>
    %cst_9 = arith.constant dense<0.000000e+00> : vector<32x64xf32>
    %10 = tpu.matmul %8, %9, %cst_9 {dimension_numbers = #tpu.dot_dimension_numbers<[1], [0], [0], [1], [0, 0, 1, 1], [], []>} : vector<32x64xf32>, vector<64x64xf32>, vector<32x64xf32> -> vector<32x64xf32>
    %c1 = arith.constant 1 : index
    %c0_10 = arith.constant 0 : index
    %11 = vector.load %arg8[%c1, %c0_10] : memref<2x64xf32, #tpu.memory_space<vmem>>, vector<1x64xf32>
    %12 = vector.broadcast %11 : vector<1x64xf32> to vector<32x64xf32>
    %13 = arith.addf %10, %12 : vector<32x64xf32>
    %cst_11 = arith.constant 0.000000e+00 : f32
    %14 = vector.broadcast %cst_11 : f32 to vector<32x64xf32>
    %15 = arith.maximumf %13, %14 : vector<32x64xf32>
    %c0_12 = arith.constant 0 : index
    %c0_13 = arith.constant 0 : index
    %16 = vector.load %arg12[%c0_12, %c0_13] : memref<480x64xf32, #tpu.memory_space<vmem>>, vector<32x64xf32>
    tpu.vector_store %arg12[%c0_12, %c0_13], %15 {strides = array<i32>} : memref<480x64xf32, #tpu.memory_space<vmem>>, vector<32x64xf32>,
    %c1_14 = arith.constant 1 : index
    %c0_15 = arith.constant 0 : index
    %c0_16 = arith.constant 0 : index
    %17 = vector.load %arg1[%c1_14, %c0_15, %c0_16] : memref<15x32x32xf32, #tpu.memory_space<vmem>>, vector<1x32x32xf32>
    %18 = vector.shape_cast %17 : vector<1x32x32xf32> to vector<32x32xf32>
    %c0_17 = arith.constant 0 : index
    %c0_18 = arith.constant 0 : index
    %19 = vector.load %arg2[%c0_17, %c0_18] : memref<32x64xf32, #tpu.memory_space<vmem>>, vector<32x64xf32>
    %cst_19 = arith.constant dense<0.000000e+00> : vector<32x64xf32>
    %20 = tpu.matmul %18, %19, %cst_19 {dimension_numbers = #tpu.dot_dimension_numbers<[1], [0], [0], [1], [0, 0, 1, 1], [], []>} : vector<32x32xf32>, vector<32x64xf32>, vector<32x64xf32> -> vector<32x64xf32>
    %c0_20 = arith.constant 0 : index
    %c0_21 = arith.constant 0 : index
    %21 = vector.load %arg8[%c0_20, %c0_21] : memref<2x64xf32, #tpu.memory_space<vmem>>, vector<1x64xf32>
    %22 = vector.broadcast %21 : vector<1x64xf32> to vector<32x64xf32>
    %23 = arith.addf %20, %22 : vector<32x64xf32>
    %cst_22 = arith.constant 0.000000e+00 : f32
    %24 = vector.broadcast %cst_22 : f32 to vector<32x64xf32>
    %25 = arith.maximumf %23, %24 : vector<32x64xf32>
    %c0_23 = arith.constant 0 : index
    %c0_24 = arith.constant 0 : index
    %26 = vector.load %arg3[%c0_23, %c0_24] : memref<64x64xf32, #tpu.memory_space<vmem>>, vector<64x64xf32>
    %cst_25 = arith.constant dense<0.000000e+00> : vector<32x64xf32>
    %27 = tpu.matmul %25, %26, %cst_25 {dimension_numbers = #tpu.dot_dimension_numbers<[1], [0], [0], [1], [0, 0, 1, 1], [], []>} : vector<32x64xf32>, vector<64x64xf32>, vector<32x64xf32> -> vector<32x64xf32>
    %c1_26 = arith.constant 1 : index
    %c0_27 = arith.constant 0 : index
    %28 = vector.load %arg8[%c1_26, %c0_27] : memref<2x64xf32, #tpu.memory_space<vmem>>, vector<1x64xf32>
    %29 = vector.broadcast %28 : vector<1x64xf32> to vector<32x64xf32>
    %30 = arith.addf %27, %29 : vector<32x64xf32>
    %cst_28 = arith.constant 0.000000e+00 : f32
    %31 = vector.broadcast %cst_28 : f32 to vector<32x64xf32>
    %32 = arith.maximumf %30, %31 : vector<32x64xf32>
    %c32 = arith.constant 32 : index
    %c0_29 = arith.constant 0 : index
    %33 = vector.load %arg12[%c32, %c0_29] : memref<480x64xf32, #tpu.memory_space<vmem>>, vector<32x64xf32>
    tpu.vector_store %arg12[%c32, %c0_29], %32 {strides = array<i32>} : memref<480x64xf32, #tpu.memory_space<vmem>>, vector<32x64xf32>,
    %c2 = arith.constant 2 : index
    %c0_30 = arith.constant 0 : index
    %c0_31 = arith.constant 0 : index
    %34 = vector.load %arg1[%c2, %c0_30, %c0_31] : memref<15x32x32xf32, #tpu.memory_space<vmem>>, vector<1x32x32xf32>
    %35 = vector.shape_cast %34 : vector<1x32x32xf32> to vector<32x32xf32>
    %c0_32 = arith.constant 0 : index
    %c0_33 = arith.constant 0 : index
    %36 = vector.load %arg2[%c0_32, %c0_33] : memref<32x64xf32, #tpu.memory_space<vmem>>, vector<32x64xf32>
    %cst_34 = arith.constant dense<0.000000e+00> : vector<32x64xf32>
    %37 = tpu.matmul %35, %36, %cst_34 {dimension_numbers = #tpu.dot_dimension_numbers<[1], [0], [0], [1], [0, 0, 1, 1], [], []>} : vector<32x32xf32>, vector<32x64xf32>, vector<32x64xf32> -> vector<32x64xf32>
    %c0_35 = arith.constant 0 : index
    %c0_36 = arith.constant 0 : index
    %38 = vector.load %arg8[%c0_35, %c0_36] : memref<2x64xf32, #tpu.memory_space<vmem>>, vector<1x64xf32>
    %39 = vector.broadcast %38 : vector<1x64xf32> to vector<32x64xf32>
    %40 = arith.addf %37, %39 : vector<32x64xf32>
    %cst_37 = arith.constant 0.000000e+00 : f32
    %41 = vector.broadcast %cst_37 : f32 to vector<32x64xf32>
    %42 = arith.maximumf %40, %41 : vector<32x64xf32>
    %c0_38 = arith.constant 0 : index
    %c0_39 = arith.constant 0 : index
    %43 = vector.load %arg3[%c0_38, %c0_39] : memref<64x64xf32, #tpu.memory_space<vmem>>, vector<64x64xf32>
    %cst_40 = arith.constant dense<0.000000e+00> : vector<32x64xf32>
    %44 = tpu.matmul %42, %43, %cst_40 {dimension_numbers = #tpu.dot_dimension_numbers<[1], [0], [0], [1], [0, 0, 1, 1], [], []>} : vector<32x64xf32>, vector<64x64xf32>, vector<32x64xf32> -> vector<32x64xf32>
    %c1_41 = arith.constant 1 : index
    %c0_42 = arith.constant 0 : index
    %45 = vector.load %arg8[%c1_41, %c0_42] : memref<2x64xf32, #tpu.memory_space<vmem>>, vector<1x64xf32>
    %46 = vector.broadcast %45 : vector<1x64xf32> to vector<32x64xf32>
    %47 = arith.addf %44, %46 : vector<32x64xf32>
    %cst_43 = arith.constant 0.000000e+00 : f32
    %48 = vector.broadcast %cst_43 : f32 to vector<32x64xf32>
    %49 = arith.maximumf %47, %48 : vector<32x64xf32>
    %c64 = arith.constant 64 : index
    %c0_44 = arith.constant 0 : index
    %50 = vector.load %arg12[%c64, %c0_44] : memref<480x64xf32, #tpu.memory_space<vmem>>, vector<32x64xf32>
    tpu.vector_store %arg12[%c64, %c0_44], %49 {strides = array<i32>} : memref<480x64xf32, #tpu.memory_space<vmem>>, vector<32x64xf32>,
    %c3 = arith.constant 3 : index
    %c0_45 = arith.constant 0 : index
    %c0_46 = arith.constant 0 : index
    %51 = vector.load %arg1[%c3, %c0_45, %c0_46] : memref<15x32x32xf32, #tpu.memory_space<vmem>>, vector<1x32x32xf32>
    %52 = vector.shape_cast %51 : vector<1x32x32xf32> to vector<32x32xf32>
    %c0_47 = arith.constant 0 : index
    %c0_48 = arith.constant 0 : index
    %53 = vector.load %arg2[%c0_47, %c0_48] : memref<32x64xf32, #tpu.memory_space<vmem>>, vector<32x64xf32>
    %cst_49 = arith.constant dense<0.000000e+00> : vector<32x64xf32>
    %54 = tpu.matmul %52, %53, %cst_49 {dimension_numbers = #tpu.dot_dimension_numbers<[1], [0], [0], [1], [0, 0, 1, 1], [], []>} : vector<32x32xf32>, vector<32x64xf32>, vector<32x64xf32> -> vector<32x64xf32>
    %c0_50 = arith.constant 0 : index
    %c0_51 = arith.constant 0 : index
    %55 = vector.load %arg8[%c0_50, %c0_51] : memref<2x64xf32, #tpu.memory_space<vmem>>, vector<1x64xf32>
    %56 = vector.broadcast %55 : vector<1x64xf32> to vector<32x64xf32>
    %57 = arith.addf %54, %56 : vector<32x64xf32>
    %cst_52 = arith.constant 0.000000e+00 : f32
    %58 = vector.broadcast %cst_52 : f32 to vector<32x64xf32>
    %59 = arith.maximumf %57, %58 : vector<32x64xf32>
    %c0_53 = arith.constant 0 : index
    %c0_54 = arith.constant 0 : index
    %60 = vector.load %arg3[%c0_53, %c0_54] : memref<64x64xf32, #tpu.memory_space<vmem>>, vector<64x64xf32>
    %cst_55 = arith.constant dense<0.000000e+00> : vector<32x64xf32>
    %61 = tpu.matmul %59, %60, %cst_55 {dimension_numbers = #tpu.dot_dimension_numbers<[1], [0], [0], [1], [0, 0, 1, 1], [], []>} : vector<32x64xf32>, vector<64x64xf32>, vector<32x64xf32> -> vector<32x64xf32>
    %c1_56 = arith.constant 1 : index
    %c0_57 = arith.constant 0 : index
    %62 = vector.load %arg8[%c1_56, %c0_57] : memref<2x64xf32, #tpu.memory_space<vmem>>, vector<1x64xf32>
    %63 = vector.broadcast %62 : vector<1x64xf32> to vector<32x64xf32>
    %64 = arith.addf %61, %63 : vector<32x64xf32>
    %cst_58 = arith.constant 0.000000e+00 : f32
    %65 = vector.broadcast %cst_58 : f32 to vector<32x64xf32>
    %66 = arith.maximumf %64, %65 : vector<32x64xf32>
    %c96 = arith.constant 96 : index
    %c0_59 = arith.constant 0 : index
    %67 = vector.load %arg12[%c96, %c0_59] : memref<480x64xf32, #tpu.memory_space<vmem>>, vector<32x64xf32>
    tpu.vector_store %arg12[%c96, %c0_59], %66 {strides = array<i32>} : memref<480x64xf32, #tpu.memory_space<vmem>>, vector<32x64xf32>,
    %c4 = arith.constant 4 : index
    %c0_60 = arith.constant 0 : index
    %c0_61 = arith.constant 0 : index
    %68 = vector.load %arg1[%c4, %c0_60, %c0_61] : memref<15x32x32xf32, #tpu.memory_space<vmem>>, vector<1x32x32xf32>
    %69 = vector.shape_cast %68 : vector<1x32x32xf32> to vector<32x32xf32>
    %c0_62 = arith.constant 0 : index
    %c0_63 = arith.constant 0 : index
    %70 = vector.load %arg2[%c0_62, %c0_63] : memref<32x64xf32, #tpu.memory_space<vmem>>, vector<32x64xf32>
    %cst_64 = arith.constant dense<0.000000e+00> : vector<32x64xf32>
    %71 = tpu.matmul %69, %70, %cst_64 {dimension_numbers = #tpu.dot_dimension_numbers<[1], [0], [0], [1], [0, 0, 1, 1], [], []>} : vector<32x32xf32>, vector<32x64xf32>, vector<32x64xf32> -> vector<32x64xf32>
    %c0_65 = arith.constant 0 : index
    %c0_66 = arith.constant 0 : index
    %72 = vector.load %arg8[%c0_65, %c0_66] : memref<2x64xf32, #tpu.memory_space<vmem>>, vector<1x64xf32>
    %73 = vector.broadcast %72 : vector<1x64xf32> to vector<32x64xf32>
    %74 = arith.addf %71, %73 : vector<32x64xf32>
    %cst_67 = arith.constant 0.000000e+00 : f32
    %75 = vector.broadcast %cst_67 : f32 to vector<32x64xf32>
    %76 = arith.maximumf %74, %75 : vector<32x64xf32>
    %c0_68 = arith.constant 0 : index
    %c0_69 = arith.constant 0 : index
    %77 = vector.load %arg3[%c0_68, %c0_69] : memref<64x64xf32, #tpu.memory_space<vmem>>, vector<64x64xf32>
    %cst_70 = arith.constant dense<0.000000e+00> : vector<32x64xf32>
    %78 = tpu.matmul %76, %77, %cst_70 {dimension_numbers = #tpu.dot_dimension_numbers<[1], [0], [0], [1], [0, 0, 1, 1], [], []>} : vector<32x64xf32>, vector<64x64xf32>, vector<32x64xf32> -> vector<32x64xf32>
    %c1_71 = arith.constant 1 : index
    %c0_72 = arith.constant 0 : index
    %79 = vector.load %arg8[%c1_71, %c0_72] : memref<2x64xf32, #tpu.memory_space<vmem>>, vector<1x64xf32>
    %80 = vector.broadcast %79 : vector<1x64xf32> to vector<32x64xf32>
    %81 = arith.addf %78, %80 : vector<32x64xf32>
    %cst_73 = arith.constant 0.000000e+00 : f32
    %82 = vector.broadcast %cst_73 : f32 to vector<32x64xf32>
    %83 = arith.maximumf %81, %82 : vector<32x64xf32>
    %c128 = arith.constant 128 : index
    %c0_74 = arith.constant 0 : index
    %84 = vector.load %arg12[%c128, %c0_74] : memref<480x64xf32, #tpu.memory_space<vmem>>, vector<32x64xf32>
    tpu.vector_store %arg12[%c128, %c0_74], %83 {strides = array<i32>} : memref<480x64xf32, #tpu.memory_space<vmem>>, vector<32x64xf32>,
    %c5 = arith.constant 5 : index
    %c0_75 = arith.constant 0 : index
    %c0_76 = arith.constant 0 : index
    %85 = vector.load %arg1[%c5, %c0_75, %c0_76] : memref<15x32x32xf32, #tpu.memory_space<vmem>>, vector<1x32x32xf32>
    %86 = vector.shape_cast %85 : vector<1x32x32xf32> to vector<32x32xf32>
    %c0_77 = arith.constant 0 : index
    %c0_78 = arith.constant 0 : index
    %87 = vector.load %arg2[%c0_77, %c0_78] : memref<32x64xf32, #tpu.memory_space<vmem>>, vector<32x64xf32>
    %cst_79 = arith.constant dense<0.000000e+00> : vector<32x64xf32>
    %88 = tpu.matmul %86, %87, %cst_79 {dimension_numbers = #tpu.dot_dimension_numbers<[1], [0], [0], [1], [0, 0, 1, 1], [], []>} : vector<32x32xf32>, vector<32x64xf32>, vector<32x64xf32> -> vector<32x64xf32>
    %c0_80 = arith.constant 0 : index
    %c0_81 = arith.constant 0 : index
    %89 = vector.load %arg8[%c0_80, %c0_81] : memref<2x64xf32, #tpu.memory_space<vmem>>, vector<1x64xf32>
    %90 = vector.broadcast %89 : vector<1x64xf32> to vector<32x64xf32>
    %91 = arith.addf %88, %90 : vector<32x64xf32>
    %cst_82 = arith.constant 0.000000e+00 : f32
    %92 = vector.broadcast %cst_82 : f32 to vector<32x64xf32>
    %93 = arith.maximumf %91, %92 : vector<32x64xf32>
    %c0_83 = arith.constant 0 : index
    %c0_84 = arith.constant 0 : index
    %94 = vector.load %arg3[%c0_83, %c0_84] : memref<64x64xf32, #tpu.memory_space<vmem>>, vector<64x64xf32>
    %cst_85 = arith.constant dense<0.000000e+00> : vector<32x64xf32>
    %95 = tpu.matmul %93, %94, %cst_85 {dimension_numbers = #tpu.dot_dimension_numbers<[1], [0], [0], [1], [0, 0, 1, 1], [], []>} : vector<32x64xf32>, vector<64x64xf32>, vector<32x64xf32> -> vector<32x64xf32>
    %c1_86 = arith.constant 1 : index
    %c0_87 = arith.constant 0 : index
    %96 = vector.load %arg8[%c1_86, %c0_87] : memref<2x64xf32, #tpu.memory_space<vmem>>, vector<1x64xf32>
    %97 = vector.broadcast %96 : vector<1x64xf32> to vector<32x64xf32>
    %98 = arith.addf %95, %97 : vector<32x64xf32>
    %cst_88 = arith.constant 0.000000e+00 : f32
    %99 = vector.broadcast %cst_88 : f32 to vector<32x64xf32>
    %100 = arith.maximumf %98, %99 : vector<32x64xf32>
    %c160 = arith.constant 160 : index
    %c0_89 = arith.constant 0 : index
    %101 = vector.load %arg12[%c160, %c0_89] : memref<480x64xf32, #tpu.memory_space<vmem>>, vector<32x64xf32>
    tpu.vector_store %arg12[%c160, %c0_89], %100 {strides = array<i32>} : memref<480x64xf32, #tpu.memory_space<vmem>>, vector<32x64xf32>,
    %c6 = arith.constant 6 : index
    %c0_90 = arith.constant 0 : index
    %c0_91 = arith.constant 0 : index
    %102 = vector.load %arg1[%c6, %c0_90, %c0_91] : memref<15x32x32xf32, #tpu.memory_space<vmem>>, vector<1x32x32xf32>
    %103 = vector.shape_cast %102 : vector<1x32x32xf32> to vector<32x32xf32>
    %c0_92 = arith.constant 0 : index
    %c0_93 = arith.constant 0 : index
    %104 = vector.load %arg2[%c0_92, %c0_93] : memref<32x64xf32, #tpu.memory_space<vmem>>, vector<32x64xf32>
    %cst_94 = arith.constant dense<0.000000e+00> : vector<32x64xf32>
    %105 = tpu.matmul %103, %104, %cst_94 {dimension_numbers = #tpu.dot_dimension_numbers<[1], [0], [0], [1], [0, 0, 1, 1], [], []>} : vector<32x32xf32>, vector<32x64xf32>, vector<32x64xf32> -> vector<32x64xf32>
    %c0_95 = arith.constant 0 : index
    %c0_96 = arith.constant 0 : index
    %106 = vector.load %arg8[%c0_95, %c0_96] : memref<2x64xf32, #tpu.memory_space<vmem>>, vector<1x64xf32>
    %107 = vector.broadcast %106 : vector<1x64xf32> to vector<32x64xf32>
    %108 = arith.addf %105, %107 : vector<32x64xf32>
    %cst_97 = arith.constant 0.000000e+00 : f32
    %109 = vector.broadcast %cst_97 : f32 to vector<32x64xf32>
    %110 = arith.maximumf %108, %109 : vector<32x64xf32>
    %c0_98 = arith.constant 0 : index
    %c0_99 = arith.constant 0 : index
    %111 = vector.load %arg3[%c0_98, %c0_99] : memref<64x64xf32, #tpu.memory_space<vmem>>, vector<64x64xf32>
    %cst_100 = arith.constant dense<0.000000e+00> : vector<32x64xf32>
    %112 = tpu.matmul %110, %111, %cst_100 {dimension_numbers = #tpu.dot_dimension_numbers<[1], [0], [0], [1], [0, 0, 1, 1], [], []>} : vector<32x64xf32>, vector<64x64xf32>, vector<32x64xf32> -> vector<32x64xf32>
    %c1_101 = arith.constant 1 : index
    %c0_102 = arith.constant 0 : index
    %113 = vector.load %arg8[%c1_101, %c0_102] : memref<2x64xf32, #tpu.memory_space<vmem>>, vector<1x64xf32>
    %114 = vector.broadcast %113 : vector<1x64xf32> to vector<32x64xf32>
    %115 = arith.addf %112, %114 : vector<32x64xf32>
    %cst_103 = arith.constant 0.000000e+00 : f32
    %116 = vector.broadcast %cst_103 : f32 to vector<32x64xf32>
    %117 = arith.maximumf %115, %116 : vector<32x64xf32>
    %c192 = arith.constant 192 : index
    %c0_104 = arith.constant 0 : index
    %118 = vector.load %arg12[%c192, %c0_104] : memref<480x64xf32, #tpu.memory_space<vmem>>, vector<32x64xf32>
    tpu.vector_store %arg12[%c192, %c0_104], %117 {strides = array<i32>} : memref<480x64xf32, #tpu.memory_space<vmem>>, vector<32x64xf32>,
    %c7 = arith.constant 7 : index
    %c0_105 = arith.constant 0 : index
    %c0_106 = arith.constant 0 : index
    %119 = vector.load %arg1[%c7, %c0_105, %c0_106] : memref<15x32x32xf32, #tpu.memory_space<vmem>>, vector<1x32x32xf32>
    %120 = vector.shape_cast %119 : vector<1x32x32xf32> to vector<32x32xf32>
    %c0_107 = arith.constant 0 : index
    %c0_108 = arith.constant 0 : index
    %121 = vector.load %arg2[%c0_107, %c0_108] : memref<32x64xf32, #tpu.memory_space<vmem>>, vector<32x64xf32>
    %cst_109 = arith.constant dense<0.000000e+00> : vector<32x64xf32>
    %122 = tpu.matmul %120, %121, %cst_109 {dimension_numbers = #tpu.dot_dimension_numbers<[1], [0], [0], [1], [0, 0, 1, 1], [], []>} : vector<32x32xf32>, vector<32x64xf32>, vector<32x64xf32> -> vector<32x64xf32>
    %c0_110 = arith.constant 0 : index
    %c0_111 = arith.constant 0 : index
    %123 = vector.load %arg8[%c0_110, %c0_111] : memref<2x64xf32, #tpu.memory_space<vmem>>, vector<1x64xf32>
    %124 = vector.broadcast %123 : vector<1x64xf32> to vector<32x64xf32>
    %125 = arith.addf %122, %124 : vector<32x64xf32>
    %cst_112 = arith.constant 0.000000e+00 : f32
    %126 = vector.broadcast %cst_112 : f32 to vector<32x64xf32>
    %127 = arith.maximumf %125, %126 : vector<32x64xf32>
    %c0_113 = arith.constant 0 : index
    %c0_114 = arith.constant 0 : index
    %128 = vector.load %arg3[%c0_113, %c0_114] : memref<64x64xf32, #tpu.memory_space<vmem>>, vector<64x64xf32>
    %cst_115 = arith.constant dense<0.000000e+00> : vector<32x64xf32>
    %129 = tpu.matmul %127, %128, %cst_115 {dimension_numbers = #tpu.dot_dimension_numbers<[1], [0], [0], [1], [0, 0, 1, 1], [], []>} : vector<32x64xf32>, vector<64x64xf32>, vector<32x64xf32> -> vector<32x64xf32>
    %c1_116 = arith.constant 1 : index
    %c0_117 = arith.constant 0 : index
    %130 = vector.load %arg8[%c1_116, %c0_117] : memref<2x64xf32, #tpu.memory_space<vmem>>, vector<1x64xf32>
    %131 = vector.broadcast %130 : vector<1x64xf32> to vector<32x64xf32>
    %132 = arith.addf %129, %131 : vector<32x64xf32>
    %cst_118 = arith.constant 0.000000e+00 : f32
    %133 = vector.broadcast %cst_118 : f32 to vector<32x64xf32>
    %134 = arith.maximumf %132, %133 : vector<32x64xf32>
    %c224 = arith.constant 224 : index
    %c0_119 = arith.constant 0 : index
    %135 = vector.load %arg12[%c224, %c0_119] : memref<480x64xf32, #tpu.memory_space<vmem>>, vector<32x64xf32>
    tpu.vector_store %arg12[%c224, %c0_119], %134 {strides = array<i32>} : memref<480x64xf32, #tpu.memory_space<vmem>>, vector<32x64xf32>,
    %c8 = arith.constant 8 : index
    %c0_120 = arith.constant 0 : index
    %c0_121 = arith.constant 0 : index
    %136 = vector.load %arg1[%c8, %c0_120, %c0_121] : memref<15x32x32xf32, #tpu.memory_space<vmem>>, vector<1x32x32xf32>
    %137 = vector.shape_cast %136 : vector<1x32x32xf32> to vector<32x32xf32>
    %c0_122 = arith.constant 0 : index
    %c0_123 = arith.constant 0 : index
    %138 = vector.load %arg2[%c0_122, %c0_123] : memref<32x64xf32, #tpu.memory_space<vmem>>, vector<32x64xf32>
    %cst_124 = arith.constant dense<0.000000e+00> : vector<32x64xf32>
    %139 = tpu.matmul %137, %138, %cst_124 {dimension_numbers = #tpu.dot_dimension_numbers<[1], [0], [0], [1], [0, 0, 1, 1], [], []>} : vector<32x32xf32>, vector<32x64xf32>, vector<32x64xf32> -> vector<32x64xf32>
    %c0_125 = arith.constant 0 : index
    %c0_126 = arith.constant 0 : index
    %140 = vector.load %arg8[%c0_125, %c0_126] : memref<2x64xf32, #tpu.memory_space<vmem>>, vector<1x64xf32>
    %141 = vector.broadcast %140 : vector<1x64xf32> to vector<32x64xf32>
    %142 = arith.addf %139, %141 : vector<32x64xf32>
    %cst_127 = arith.constant 0.000000e+00 : f32
    %143 = vector.broadcast %cst_127 : f32 to vector<32x64xf32>
    %144 = arith.maximumf %142, %143 : vector<32x64xf32>
    %c0_128 = arith.constant 0 : index
    %c0_129 = arith.constant 0 : index
    %145 = vector.load %arg3[%c0_128, %c0_129] : memref<64x64xf32, #tpu.memory_space<vmem>>, vector<64x64xf32>
    %cst_130 = arith.constant dense<0.000000e+00> : vector<32x64xf32>
    %146 = tpu.matmul %144, %145, %cst_130 {dimension_numbers = #tpu.dot_dimension_numbers<[1], [0], [0], [1], [0, 0, 1, 1], [], []>} : vector<32x64xf32>, vector<64x64xf32>, vector<32x64xf32> -> vector<32x64xf32>
    %c1_131 = arith.constant 1 : index
    %c0_132 = arith.constant 0 : index
    %147 = vector.load %arg8[%c1_131, %c0_132] : memref<2x64xf32, #tpu.memory_space<vmem>>, vector<1x64xf32>
    %148 = vector.broadcast %147 : vector<1x64xf32> to vector<32x64xf32>
    %149 = arith.addf %146, %148 : vector<32x64xf32>
    %cst_133 = arith.constant 0.000000e+00 : f32
    %150 = vector.broadcast %cst_133 : f32 to vector<32x64xf32>
    %151 = arith.maximumf %149, %150 : vector<32x64xf32>
    %c256 = arith.constant 256 : index
    %c0_134 = arith.constant 0 : index
    %152 = vector.load %arg12[%c256, %c0_134] : memref<480x64xf32, #tpu.memory_space<vmem>>, vector<32x64xf32>
    tpu.vector_store %arg12[%c256, %c0_134], %151 {strides = array<i32>} : memref<480x64xf32, #tpu.memory_space<vmem>>, vector<32x64xf32>,
    %c9 = arith.constant 9 : index
    %c0_135 = arith.constant 0 : index
    %c0_136 = arith.constant 0 : index
    %153 = vector.load %arg1[%c9, %c0_135, %c0_136] : memref<15x32x32xf32, #tpu.memory_space<vmem>>, vector<1x32x32xf32>
    %154 = vector.shape_cast %153 : vector<1x32x32xf32> to vector<32x32xf32>
    %c0_137 = arith.constant 0 : index
    %c0_138 = arith.constant 0 : index
    %155 = vector.load %arg2[%c0_137, %c0_138] : memref<32x64xf32, #tpu.memory_space<vmem>>, vector<32x64xf32>
    %cst_139 = arith.constant dense<0.000000e+00> : vector<32x64xf32>
    %156 = tpu.matmul %154, %155, %cst_139 {dimension_numbers = #tpu.dot_dimension_numbers<[1], [0], [0], [1], [0, 0, 1, 1], [], []>} : vector<32x32xf32>, vector<32x64xf32>, vector<32x64xf32> -> vector<32x64xf32>
    %c0_140 = arith.constant 0 : index
    %c0_141 = arith.constant 0 : index
    %157 = vector.load %arg8[%c0_140, %c0_141] : memref<2x64xf32, #tpu.memory_space<vmem>>, vector<1x64xf32>
    %158 = vector.broadcast %157 : vector<1x64xf32> to vector<32x64xf32>
    %159 = arith.addf %156, %158 : vector<32x64xf32>
    %cst_142 = arith.constant 0.000000e+00 : f32
    %160 = vector.broadcast %cst_142 : f32 to vector<32x64xf32>
    %161 = arith.maximumf %159, %160 : vector<32x64xf32>
    %c0_143 = arith.constant 0 : index
    %c0_144 = arith.constant 0 : index
    %162 = vector.load %arg3[%c0_143, %c0_144] : memref<64x64xf32, #tpu.memory_space<vmem>>, vector<64x64xf32>
    %cst_145 = arith.constant dense<0.000000e+00> : vector<32x64xf32>
    %163 = tpu.matmul %161, %162, %cst_145 {dimension_numbers = #tpu.dot_dimension_numbers<[1], [0], [0], [1], [0, 0, 1, 1], [], []>} : vector<32x64xf32>, vector<64x64xf32>, vector<32x64xf32> -> vector<32x64xf32>
    %c1_146 = arith.constant 1 : index
    %c0_147 = arith.constant 0 : index
    %164 = vector.load %arg8[%c1_146, %c0_147] : memref<2x64xf32, #tpu.memory_space<vmem>>, vector<1x64xf32>
    %165 = vector.broadcast %164 : vector<1x64xf32> to vector<32x64xf32>
    %166 = arith.addf %163, %165 : vector<32x64xf32>
    %cst_148 = arith.constant 0.000000e+00 : f32
    %167 = vector.broadcast %cst_148 : f32 to vector<32x64xf32>
    %168 = arith.maximumf %166, %167 : vector<32x64xf32>
    %c288 = arith.constant 288 : index
    %c0_149 = arith.constant 0 : index
    %169 = vector.load %arg12[%c288, %c0_149] : memref<480x64xf32, #tpu.memory_space<vmem>>, vector<32x64xf32>
    tpu.vector_store %arg12[%c288, %c0_149], %168 {strides = array<i32>} : memref<480x64xf32, #tpu.memory_space<vmem>>, vector<32x64xf32>,
    %c10 = arith.constant 10 : index
    %c0_150 = arith.constant 0 : index
    %c0_151 = arith.constant 0 : index
    %170 = vector.load %arg1[%c10, %c0_150, %c0_151] : memref<15x32x32xf32, #tpu.memory_space<vmem>>, vector<1x32x32xf32>
    %171 = vector.shape_cast %170 : vector<1x32x32xf32> to vector<32x32xf32>
    %c0_152 = arith.constant 0 : index
    %c0_153 = arith.constant 0 : index
    %172 = vector.load %arg2[%c0_152, %c0_153] : memref<32x64xf32, #tpu.memory_space<vmem>>, vector<32x64xf32>
    %cst_154 = arith.constant dense<0.000000e+00> : vector<32x64xf32>
    %173 = tpu.matmul %171, %172, %cst_154 {dimension_numbers = #tpu.dot_dimension_numbers<[1], [0], [0], [1], [0, 0, 1, 1], [], []>} : vector<32x32xf32>, vector<32x64xf32>, vector<32x64xf32> -> vector<32x64xf32>
    %c0_155 = arith.constant 0 : index
    %c0_156 = arith.constant 0 : index
    %174 = vector.load %arg8[%c0_155, %c0_156] : memref<2x64xf32, #tpu.memory_space<vmem>>, vector<1x64xf32>
    %175 = vector.broadcast %174 : vector<1x64xf32> to vector<32x64xf32>
    %176 = arith.addf %173, %175 : vector<32x64xf32>
    %cst_157 = arith.constant 0.000000e+00 : f32
    %177 = vector.broadcast %cst_157 : f32 to vector<32x64xf32>
    %178 = arith.maximumf %176, %177 : vector<32x64xf32>
    %c0_158 = arith.constant 0 : index
    %c0_159 = arith.constant 0 : index
    %179 = vector.load %arg3[%c0_158, %c0_159] : memref<64x64xf32, #tpu.memory_space<vmem>>, vector<64x64xf32>
    %cst_160 = arith.constant dense<0.000000e+00> : vector<32x64xf32>
    %180 = tpu.matmul %178, %179, %cst_160 {dimension_numbers = #tpu.dot_dimension_numbers<[1], [0], [0], [1], [0, 0, 1, 1], [], []>} : vector<32x64xf32>, vector<64x64xf32>, vector<32x64xf32> -> vector<32x64xf32>
    %c1_161 = arith.constant 1 : index
    %c0_162 = arith.constant 0 : index
    %181 = vector.load %arg8[%c1_161, %c0_162] : memref<2x64xf32, #tpu.memory_space<vmem>>, vector<1x64xf32>
    %182 = vector.broadcast %181 : vector<1x64xf32> to vector<32x64xf32>
    %183 = arith.addf %180, %182 : vector<32x64xf32>
    %cst_163 = arith.constant 0.000000e+00 : f32
    %184 = vector.broadcast %cst_163 : f32 to vector<32x64xf32>
    %185 = arith.maximumf %183, %184 : vector<32x64xf32>
    %c320 = arith.constant 320 : index
    %c0_164 = arith.constant 0 : index
    %186 = vector.load %arg12[%c320, %c0_164] : memref<480x64xf32, #tpu.memory_space<vmem>>, vector<32x64xf32>
    tpu.vector_store %arg12[%c320, %c0_164], %185 {strides = array<i32>} : memref<480x64xf32, #tpu.memory_space<vmem>>, vector<32x64xf32>,
    %c11 = arith.constant 11 : index
    %c0_165 = arith.constant 0 : index
    %c0_166 = arith.constant 0 : index
    %187 = vector.load %arg1[%c11, %c0_165, %c0_166] : memref<15x32x32xf32, #tpu.memory_space<vmem>>, vector<1x32x32xf32>
    %188 = vector.shape_cast %187 : vector<1x32x32xf32> to vector<32x32xf32>
    %c0_167 = arith.constant 0 : index
    %c0_168 = arith.constant 0 : index
    %189 = vector.load %arg2[%c0_167, %c0_168] : memref<32x64xf32, #tpu.memory_space<vmem>>, vector<32x64xf32>
    %cst_169 = arith.constant dense<0.000000e+00> : vector<32x64xf32>
    %190 = tpu.matmul %188, %189, %cst_169 {dimension_numbers = #tpu.dot_dimension_numbers<[1], [0], [0], [1], [0, 0, 1, 1], [], []>} : vector<32x32xf32>, vector<32x64xf32>, vector<32x64xf32> -> vector<32x64xf32>
    %c0_170 = arith.constant 0 : index
    %c0_171 = arith.constant 0 : index
    %191 = vector.load %arg8[%c0_170, %c0_171] : memref<2x64xf32, #tpu.memory_space<vmem>>, vector<1x64xf32>
    %192 = vector.broadcast %191 : vector<1x64xf32> to vector<32x64xf32>
    %193 = arith.addf %190, %192 : vector<32x64xf32>
    %cst_172 = arith.constant 0.000000e+00 : f32
    %194 = vector.broadcast %cst_172 : f32 to vector<32x64xf32>
    %195 = arith.maximumf %193, %194 : vector<32x64xf32>
    %c0_173 = arith.constant 0 : index
    %c0_174 = arith.constant 0 : index
    %196 = vector.load %arg3[%c0_173, %c0_174] : memref<64x64xf32, #tpu.memory_space<vmem>>, vector<64x64xf32>
    %cst_175 = arith.constant dense<0.000000e+00> : vector<32x64xf32>
    %197 = tpu.matmul %195, %196, %cst_175 {dimension_numbers = #tpu.dot_dimension_numbers<[1], [0], [0], [1], [0, 0, 1, 1], [], []>} : vector<32x64xf32>, vector<64x64xf32>, vector<32x64xf32> -> vector<32x64xf32>
    %c1_176 = arith.constant 1 : index
    %c0_177 = arith.constant 0 : index
    %198 = vector.load %arg8[%c1_176, %c0_177] : memref<2x64xf32, #tpu.memory_space<vmem>>, vector<1x64xf32>
    %199 = vector.broadcast %198 : vector<1x64xf32> to vector<32x64xf32>
    %200 = arith.addf %197, %199 : vector<32x64xf32>
    %cst_178 = arith.constant 0.000000e+00 : f32
    %201 = vector.broadcast %cst_178 : f32 to vector<32x64xf32>
    %202 = arith.maximumf %200, %201 : vector<32x64xf32>
    %c352 = arith.constant 352 : index
    %c0_179 = arith.constant 0 : index
    %203 = vector.load %arg12[%c352, %c0_179] : memref<480x64xf32, #tpu.memory_space<vmem>>, vector<32x64xf32>
    tpu.vector_store %arg12[%c352, %c0_179], %202 {strides = array<i32>} : memref<480x64xf32, #tpu.memory_space<vmem>>, vector<32x64xf32>,
    %c12 = arith.constant 12 : index
    %c0_180 = arith.constant 0 : index
    %c0_181 = arith.constant 0 : index
    %204 = vector.load %arg1[%c12, %c0_180, %c0_181] : memref<15x32x32xf32, #tpu.memory_space<vmem>>, vector<1x32x32xf32>
    %205 = vector.shape_cast %204 : vector<1x32x32xf32> to vector<32x32xf32>
    %c0_182 = arith.constant 0 : index
    %c0_183 = arith.constant 0 : index
    %206 = vector.load %arg2[%c0_182, %c0_183] : memref<32x64xf32, #tpu.memory_space<vmem>>, vector<32x64xf32>
    %cst_184 = arith.constant dense<0.000000e+00> : vector<32x64xf32>
    %207 = tpu.matmul %205, %206, %cst_184 {dimension_numbers = #tpu.dot_dimension_numbers<[1], [0], [0], [1], [0, 0, 1, 1], [], []>} : vector<32x32xf32>, vector<32x64xf32>, vector<32x64xf32> -> vector<32x64xf32>
    %c0_185 = arith.constant 0 : index
    %c0_186 = arith.constant 0 : index
    %208 = vector.load %arg8[%c0_185, %c0_186] : memref<2x64xf32, #tpu.memory_space<vmem>>, vector<1x64xf32>
    %209 = vector.broadcast %208 : vector<1x64xf32> to vector<32x64xf32>
    %210 = arith.addf %207, %209 : vector<32x64xf32>
    %cst_187 = arith.constant 0.000000e+00 : f32
    %211 = vector.broadcast %cst_187 : f32 to vector<32x64xf32>
    %212 = arith.maximumf %210, %211 : vector<32x64xf32>
    %c0_188 = arith.constant 0 : index
    %c0_189 = arith.constant 0 : index
    %213 = vector.load %arg3[%c0_188, %c0_189] : memref<64x64xf32, #tpu.memory_space<vmem>>, vector<64x64xf32>
    %cst_190 = arith.constant dense<0.000000e+00> : vector<32x64xf32>
    %214 = tpu.matmul %212, %213, %cst_190 {dimension_numbers = #tpu.dot_dimension_numbers<[1], [0], [0], [1], [0, 0, 1, 1], [], []>} : vector<32x64xf32>, vector<64x64xf32>, vector<32x64xf32> -> vector<32x64xf32>
    %c1_191 = arith.constant 1 : index
    %c0_192 = arith.constant 0 : index
    %215 = vector.load %arg8[%c1_191, %c0_192] : memref<2x64xf32, #tpu.memory_space<vmem>>, vector<1x64xf32>
    %216 = vector.broadcast %215 : vector<1x64xf32> to vector<32x64xf32>
    %217 = arith.addf %214, %216 : vector<32x64xf32>
    %cst_193 = arith.constant 0.000000e+00 : f32
    %218 = vector.broadcast %cst_193 : f32 to vector<32x64xf32>
    %219 = arith.maximumf %217, %218 : vector<32x64xf32>
    %c384 = arith.constant 384 : index
    %c0_194 = arith.constant 0 : index
    %220 = vector.load %arg12[%c384, %c0_194] : memref<480x64xf32, #tpu.memory_space<vmem>>, vector<32x64xf32>
    tpu.vector_store %arg12[%c384, %c0_194], %219 {strides = array<i32>} : memref<480x64xf32, #tpu.memory_space<vmem>>, vector<32x64xf32>,
    %c13 = arith.constant 13 : index
    %c0_195 = arith.constant 0 : index
    %c0_196 = arith.constant 0 : index
    %221 = vector.load %arg1[%c13, %c0_195, %c0_196] : memref<15x32x32xf32, #tpu.memory_space<vmem>>, vector<1x32x32xf32>
    %222 = vector.shape_cast %221 : vector<1x32x32xf32> to vector<32x32xf32>
    %c0_197 = arith.constant 0 : index
    %c0_198 = arith.constant 0 : index
    %223 = vector.load %arg2[%c0_197, %c0_198] : memref<32x64xf32, #tpu.memory_space<vmem>>, vector<32x64xf32>
    %cst_199 = arith.constant dense<0.000000e+00> : vector<32x64xf32>
    %224 = tpu.matmul %222, %223, %cst_199 {dimension_numbers = #tpu.dot_dimension_numbers<[1], [0], [0], [1], [0, 0, 1, 1], [], []>} : vector<32x32xf32>, vector<32x64xf32>, vector<32x64xf32> -> vector<32x64xf32>
    %c0_200 = arith.constant 0 : index
    %c0_201 = arith.constant 0 : index
    %225 = vector.load %arg8[%c0_200, %c0_201] : memref<2x64xf32, #tpu.memory_space<vmem>>, vector<1x64xf32>
    %226 = vector.broadcast %225 : vector<1x64xf32> to vector<32x64xf32>
    %227 = arith.addf %224, %226 : vector<32x64xf32>
    %cst_202 = arith.constant 0.000000e+00 : f32
    %228 = vector.broadcast %cst_202 : f32 to vector<32x64xf32>
    %229 = arith.maximumf %227, %228 : vector<32x64xf32>
    %c0_203 = arith.constant 0 : index
    %c0_204 = arith.constant 0 : index
    %230 = vector.load %arg3[%c0_203, %c0_204] : memref<64x64xf32, #tpu.memory_space<vmem>>, vector<64x64xf32>
    %cst_205 = arith.constant dense<0.000000e+00> : vector<32x64xf32>
    %231 = tpu.matmul %229, %230, %cst_205 {dimension_numbers = #tpu.dot_dimension_numbers<[1], [0], [0], [1], [0, 0, 1, 1], [], []>} : vector<32x64xf32>, vector<64x64xf32>, vector<32x64xf32> -> vector<32x64xf32>
    %c1_206 = arith.constant 1 : index
    %c0_207 = arith.constant 0 : index
    %232 = vector.load %arg8[%c1_206, %c0_207] : memref<2x64xf32, #tpu.memory_space<vmem>>, vector<1x64xf32>
    %233 = vector.broadcast %232 : vector<1x64xf32> to vector<32x64xf32>
    %234 = arith.addf %231, %233 : vector<32x64xf32>
    %cst_208 = arith.constant 0.000000e+00 : f32
    %235 = vector.broadcast %cst_208 : f32 to vector<32x64xf32>
    %236 = arith.maximumf %234, %235 : vector<32x64xf32>
    %c416 = arith.constant 416 : index
    %c0_209 = arith.constant 0 : index
    %237 = vector.load %arg12[%c416, %c0_209] : memref<480x64xf32, #tpu.memory_space<vmem>>, vector<32x64xf32>
    tpu.vector_store %arg12[%c416, %c0_209], %236 {strides = array<i32>} : memref<480x64xf32, #tpu.memory_space<vmem>>, vector<32x64xf32>,
    %c14 = arith.constant 14 : index
    %c0_210 = arith.constant 0 : index
    %c0_211 = arith.constant 0 : index
    %238 = vector.load %arg1[%c14, %c0_210, %c0_211] : memref<15x32x32xf32, #tpu.memory_space<vmem>>, vector<1x32x32xf32>
    %239 = vector.shape_cast %238 : vector<1x32x32xf32> to vector<32x32xf32>
    %c0_212 = arith.constant 0 : index
    %c0_213 = arith.constant 0 : index
    %240 = vector.load %arg2[%c0_212, %c0_213] : memref<32x64xf32, #tpu.memory_space<vmem>>, vector<32x64xf32>
    %cst_214 = arith.constant dense<0.000000e+00> : vector<32x64xf32>
    %241 = tpu.matmul %239, %240, %cst_214 {dimension_numbers = #tpu.dot_dimension_numbers<[1], [0], [0], [1], [0, 0, 1, 1], [], []>} : vector<32x32xf32>, vector<32x64xf32>, vector<32x64xf32> -> vector<32x64xf32>
    %c0_215 = arith.constant 0 : index
    %c0_216 = arith.constant 0 : index
    %242 = vector.load %arg8[%c0_215, %c0_216] : memref<2x64xf32, #tpu.memory_space<vmem>>, vector<1x64xf32>
    %243 = vector.broadcast %242 : vector<1x64xf32> to vector<32x64xf32>
    %244 = arith.addf %241, %243 : vector<32x64xf32>
    %cst_217 = arith.constant 0.000000e+00 : f32
    %245 = vector.broadcast %cst_217 : f32 to vector<32x64xf32>
    %246 = arith.maximumf %244, %245 : vector<32x64xf32>
    %c0_218 = arith.constant 0 : index
    %c0_219 = arith.constant 0 : index
    %247 = vector.load %arg3[%c0_218, %c0_219] : memref<64x64xf32, #tpu.memory_space<vmem>>, vector<64x64xf32>
    %cst_220 = arith.constant dense<0.000000e+00> : vector<32x64xf32>
    %248 = tpu.matmul %246, %247, %cst_220 {dimension_numbers = #tpu.dot_dimension_numbers<[1], [0], [0], [1], [0, 0, 1, 1], [], []>} : vector<32x64xf32>, vector<64x64xf32>, vector<32x64xf32> -> vector<32x64xf32>
    %c1_221 = arith.constant 1 : index
    %c0_222 = arith.constant 0 : index
    %249 = vector.load %arg8[%c1_221, %c0_222] : memref<2x64xf32, #tpu.memory_space<vmem>>, vector<1x64xf32>
    %250 = vector.broadcast %249 : vector<1x64xf32> to vector<32x64xf32>
    %251 = arith.addf %248, %250 : vector<32x64xf32>
    %cst_223 = arith.constant 0.000000e+00 : f32
    %252 = vector.broadcast %cst_223 : f32 to vector<32x64xf32>
    %253 = arith.maximumf %251, %252 : vector<32x64xf32>
    %c448 = arith.constant 448 : index
    %c0_224 = arith.constant 0 : index
    %254 = vector.load %arg12[%c448, %c0_224] : memref<480x64xf32, #tpu.memory_space<vmem>>, vector<32x64xf32>
    tpu.vector_store %arg12[%c448, %c0_224], %253 {strides = array<i32>} : memref<480x64xf32, #tpu.memory_space<vmem>>, vector<32x64xf32>,
    %c0_225 = arith.constant 0 : index
    %c0_226 = arith.constant 0 : index
    %255 = vector.load %arg12[%c0_225, %c0_226] : memref<480x64xf32, #tpu.memory_space<vmem>>, vector<352x64xf32>
    %c0_227 = arith.constant 0 : index
    %c0_228 = arith.constant 0 : index
    %c0_229 = arith.constant 0 : index
    %256 = vector.load %arg4[%c0_227, %c0_228, %c0_229] : memref<5x64x32xf32, #tpu.memory_space<vmem>>, vector<1x64x32xf32>
    %257 = vector.shape_cast %256 : vector<1x64x32xf32> to vector<64x32xf32>
    %cst_230 = arith.constant dense<0.000000e+00> : vector<352x32xf32>
    %258 = tpu.matmul %255, %257, %cst_230 {dimension_numbers = #tpu.dot_dimension_numbers<[1], [0], [0], [1], [0, 0, 1, 1], [], []>} : vector<352x64xf32>, vector<64x32xf32>, vector<352x32xf32> -> vector<352x32xf32>
    %c32_231 = arith.constant 32 : index
    %c0_232 = arith.constant 0 : index
    %259 = vector.load %arg12[%c32_231, %c0_232] : memref<480x64xf32, #tpu.memory_space<vmem>>, vector<352x64xf32>
    %c1_233 = arith.constant 1 : index
    %c0_234 = arith.constant 0 : index
    %c0_235 = arith.constant 0 : index
    %260 = vector.load %arg4[%c1_233, %c0_234, %c0_235] : memref<5x64x32xf32, #tpu.memory_space<vmem>>, vector<1x64x32xf32>
    %261 = vector.shape_cast %260 : vector<1x64x32xf32> to vector<64x32xf32>
    %cst_236 = arith.constant dense<0.000000e+00> : vector<352x32xf32>
    %262 = tpu.matmul %259, %261, %cst_236 {dimension_numbers = #tpu.dot_dimension_numbers<[1], [0], [0], [1], [0, 0, 1, 1], [], []>} : vector<352x64xf32>, vector<64x32xf32>, vector<352x32xf32> -> vector<352x32xf32>
    %263 = arith.addf %258, %262 : vector<352x32xf32>
    %c64_237 = arith.constant 64 : index
    %c0_238 = arith.constant 0 : index
    %264 = vector.load %arg12[%c64_237, %c0_238] : memref<480x64xf32, #tpu.memory_space<vmem>>, vector<352x64xf32>
    %c2_239 = arith.constant 2 : index
    %c0_240 = arith.constant 0 : index
    %c0_241 = arith.constant 0 : index
    %265 = vector.load %arg4[%c2_239, %c0_240, %c0_241] : memref<5x64x32xf32, #tpu.memory_space<vmem>>, vector<1x64x32xf32>
    %266 = vector.shape_cast %265 : vector<1x64x32xf32> to vector<64x32xf32>
    %cst_242 = arith.constant dense<0.000000e+00> : vector<352x32xf32>
    %267 = tpu.matmul %264, %266, %cst_242 {dimension_numbers = #tpu.dot_dimension_numbers<[1], [0], [0], [1], [0, 0, 1, 1], [], []>} : vector<352x64xf32>, vector<64x32xf32>, vector<352x32xf32> -> vector<352x32xf32>
    %268 = arith.addf %263, %267 : vector<352x32xf32>
    %c96_243 = arith.constant 96 : index
    %c0_244 = arith.constant 0 : index
    %269 = vector.load %arg12[%c96_243, %c0_244] : memref<480x64xf32, #tpu.memory_space<vmem>>, vector<352x64xf32>
    %c3_245 = arith.constant 3 : index
    %c0_246 = arith.constant 0 : index
    %c0_247 = arith.constant 0 : index
    %270 = vector.load %arg4[%c3_245, %c0_246, %c0_247] : memref<5x64x32xf32, #tpu.memory_space<vmem>>, vector<1x64x32xf32>
    %271 = vector.shape_cast %270 : vector<1x64x32xf32> to vector<64x32xf32>
    %cst_248 = arith.constant dense<0.000000e+00> : vector<352x32xf32>
    %272 = tpu.matmul %269, %271, %cst_248 {dimension_numbers = #tpu.dot_dimension_numbers<[1], [0], [0], [1], [0, 0, 1, 1], [], []>} : vector<352x64xf32>, vector<64x32xf32>, vector<352x32xf32> -> vector<352x32xf32>
    %273 = arith.addf %268, %272 : vector<352x32xf32>
    %c128_249 = arith.constant 128 : index
    %c0_250 = arith.constant 0 : index
    %274 = vector.load %arg12[%c128_249, %c0_250] : memref<480x64xf32, #tpu.memory_space<vmem>>, vector<352x64xf32>
    %c4_251 = arith.constant 4 : index
    %c0_252 = arith.constant 0 : index
    %c0_253 = arith.constant 0 : index
    %275 = vector.load %arg4[%c4_251, %c0_252, %c0_253] : memref<5x64x32xf32, #tpu.memory_space<vmem>>, vector<1x64x32xf32>
    %276 = vector.shape_cast %275 : vector<1x64x32xf32> to vector<64x32xf32>
    %cst_254 = arith.constant dense<0.000000e+00> : vector<352x32xf32>
    %277 = tpu.matmul %274, %276, %cst_254 {dimension_numbers = #tpu.dot_dimension_numbers<[1], [0], [0], [1], [0, 0, 1, 1], [], []>} : vector<352x64xf32>, vector<64x32xf32>, vector<352x32xf32> -> vector<352x32xf32>
    %278 = arith.addf %273, %277 : vector<352x32xf32>
    %c0_255 = arith.constant 0 : index
    %c0_256 = arith.constant 0 : index
    %279 = vector.load %arg9[%c0_255, %c0_256] : memref<3x32xf32, #tpu.memory_space<vmem>>, vector<1x32xf32>
    %280 = vector.broadcast %279 : vector<1x32xf32> to vector<352x32xf32>
    %281 = arith.addf %278, %280 : vector<352x32xf32>
    %cst_257 = arith.constant 0.000000e+00 : f32
    %282 = vector.broadcast %cst_257 : f32 to vector<352x32xf32>
    %283 = arith.maximumf %281, %282 : vector<352x32xf32>
    %c0_258 = arith.constant 0 : index
    %c0_259 = arith.constant 0 : index
    %284 = vector.load %arg13[%c0_258, %c0_259] : memref<352x32xf32, #tpu.memory_space<vmem>>, vector<352x32xf32>
    tpu.vector_store %arg13[%c0_258, %c0_259], %283 {strides = array<i32>} : memref<352x32xf32, #tpu.memory_space<vmem>>, vector<352x32xf32>,
    %c0_260 = arith.constant 0 : index
    %c0_261 = arith.constant 0 : index
    %285 = vector.load %arg13[%c0_260, %c0_261] : memref<352x32xf32, #tpu.memory_space<vmem>>, vector<224x32xf32>
    %c0_262 = arith.constant 0 : index
    %c0_263 = arith.constant 0 : index
    %c0_264 = arith.constant 0 : index
    %286 = vector.load %arg5[%c0_262, %c0_263, %c0_264] : memref<5x32x32xf32, #tpu.memory_space<vmem>>, vector<1x32x32xf32>
    %287 = vector.shape_cast %286 : vector<1x32x32xf32> to vector<32x32xf32>
    %cst_265 = arith.constant dense<0.000000e+00> : vector<224x32xf32>
    %288 = tpu.matmul %285, %287, %cst_265 {dimension_numbers = #tpu.dot_dimension_numbers<[1], [0], [0], [1], [0, 0, 1, 1], [], []>} : vector<224x32xf32>, vector<32x32xf32>, vector<224x32xf32> -> vector<224x32xf32>
    %c32_266 = arith.constant 32 : index
    %c0_267 = arith.constant 0 : index
    %289 = vector.load %arg13[%c32_266, %c0_267] : memref<352x32xf32, #tpu.memory_space<vmem>>, vector<224x32xf32>
    %c1_268 = arith.constant 1 : index
    %c0_269 = arith.constant 0 : index
    %c0_270 = arith.constant 0 : index
    %290 = vector.load %arg5[%c1_268, %c0_269, %c0_270] : memref<5x32x32xf32, #tpu.memory_space<vmem>>, vector<1x32x32xf32>
    %291 = vector.shape_cast %290 : vector<1x32x32xf32> to vector<32x32xf32>
    %cst_271 = arith.constant dense<0.000000e+00> : vector<224x32xf32>
    %292 = tpu.matmul %289, %291, %cst_271 {dimension_numbers = #tpu.dot_dimension_numbers<[1], [0], [0], [1], [0, 0, 1, 1], [], []>} : vector<224x32xf32>, vector<32x32xf32>, vector<224x32xf32> -> vector<224x32xf32>
    %293 = arith.addf %288, %292 : vector<224x32xf32>
    %c64_272 = arith.constant 64 : index
    %c0_273 = arith.constant 0 : index
    %294 = vector.load %arg13[%c64_272, %c0_273] : memref<352x32xf32, #tpu.memory_space<vmem>>, vector<224x32xf32>
    %c2_274 = arith.constant 2 : index
    %c0_275 = arith.constant 0 : index
    %c0_276 = arith.constant 0 : index
    %295 = vector.load %arg5[%c2_274, %c0_275, %c0_276] : memref<5x32x32xf32, #tpu.memory_space<vmem>>, vector<1x32x32xf32>
    %296 = vector.shape_cast %295 : vector<1x32x32xf32> to vector<32x32xf32>
    %cst_277 = arith.constant dense<0.000000e+00> : vector<224x32xf32>
    %297 = tpu.matmul %294, %296, %cst_277 {dimension_numbers = #tpu.dot_dimension_numbers<[1], [0], [0], [1], [0, 0, 1, 1], [], []>} : vector<224x32xf32>, vector<32x32xf32>, vector<224x32xf32> -> vector<224x32xf32>
    %298 = arith.addf %293, %297 : vector<224x32xf32>
    %c96_278 = arith.constant 96 : index
    %c0_279 = arith.constant 0 : index
    %299 = vector.load %arg13[%c96_278, %c0_279] : memref<352x32xf32, #tpu.memory_space<vmem>>, vector<224x32xf32>
    %c3_280 = arith.constant 3 : index
    %c0_281 = arith.constant 0 : index
    %c0_282 = arith.constant 0 : index
    %300 = vector.load %arg5[%c3_280, %c0_281, %c0_282] : memref<5x32x32xf32, #tpu.memory_space<vmem>>, vector<1x32x32xf32>
    %301 = vector.shape_cast %300 : vector<1x32x32xf32> to vector<32x32xf32>
    %cst_283 = arith.constant dense<0.000000e+00> : vector<224x32xf32>
    %302 = tpu.matmul %299, %301, %cst_283 {dimension_numbers = #tpu.dot_dimension_numbers<[1], [0], [0], [1], [0, 0, 1, 1], [], []>} : vector<224x32xf32>, vector<32x32xf32>, vector<224x32xf32> -> vector<224x32xf32>
    %303 = arith.addf %298, %302 : vector<224x32xf32>
    %c128_284 = arith.constant 128 : index
    %c0_285 = arith.constant 0 : index
    %304 = vector.load %arg13[%c128_284, %c0_285] : memref<352x32xf32, #tpu.memory_space<vmem>>, vector<224x32xf32>
    %c4_286 = arith.constant 4 : index
    %c0_287 = arith.constant 0 : index
    %c0_288 = arith.constant 0 : index
    %305 = vector.load %arg5[%c4_286, %c0_287, %c0_288] : memref<5x32x32xf32, #tpu.memory_space<vmem>>, vector<1x32x32xf32>
    %306 = vector.shape_cast %305 : vector<1x32x32xf32> to vector<32x32xf32>
    %cst_289 = arith.constant dense<0.000000e+00> : vector<224x32xf32>
    %307 = tpu.matmul %304, %306, %cst_289 {dimension_numbers = #tpu.dot_dimension_numbers<[1], [0], [0], [1], [0, 0, 1, 1], [], []>} : vector<224x32xf32>, vector<32x32xf32>, vector<224x32xf32> -> vector<224x32xf32>
    %308 = arith.addf %303, %307 : vector<224x32xf32>
    %c1_290 = arith.constant 1 : index
    %c0_291 = arith.constant 0 : index
    %309 = vector.load %arg9[%c1_290, %c0_291] : memref<3x32xf32, #tpu.memory_space<vmem>>, vector<1x32xf32>
    %310 = vector.broadcast %309 : vector<1x32xf32> to vector<224x32xf32>
    %311 = arith.addf %308, %310 : vector<224x32xf32>
    %cst_292 = arith.constant 0.000000e+00 : f32
    %312 = vector.broadcast %cst_292 : f32 to vector<224x32xf32>
    %313 = arith.maximumf %311, %312 : vector<224x32xf32>
    %c0_293 = arith.constant 0 : index
    %c0_294 = arith.constant 0 : index
    %314 = vector.load %arg14[%c0_293, %c0_294] : memref<224x32xf32, #tpu.memory_space<vmem>>, vector<224x32xf32>
    tpu.vector_store %arg14[%c0_293, %c0_294], %313 {strides = array<i32>} : memref<224x32xf32, #tpu.memory_space<vmem>>, vector<224x32xf32>,
    %c0_295 = arith.constant 0 : index
    %c0_296 = arith.constant 0 : index
    %315 = vector.load %arg14[%c0_295, %c0_296] : memref<224x32xf32, #tpu.memory_space<vmem>>, vector<96x32xf32>
    %c0_297 = arith.constant 0 : index
    %c0_298 = arith.constant 0 : index
    %c0_299 = arith.constant 0 : index
    %316 = vector.load %arg6[%c0_297, %c0_298, %c0_299] : memref<5x32x32xf32, #tpu.memory_space<vmem>>, vector<1x32x32xf32>
    %317 = vector.shape_cast %316 : vector<1x32x32xf32> to vector<32x32xf32>
    %cst_300 = arith.constant dense<0.000000e+00> : vector<96x32xf32>
    %318 = tpu.matmul %315, %317, %cst_300 {dimension_numbers = #tpu.dot_dimension_numbers<[1], [0], [0], [1], [0, 0, 1, 1], [], []>} : vector<96x32xf32>, vector<32x32xf32>, vector<96x32xf32> -> vector<96x32xf32>
    %c32_301 = arith.constant 32 : index
    %c0_302 = arith.constant 0 : index
    %319 = vector.load %arg14[%c32_301, %c0_302] : memref<224x32xf32, #tpu.memory_space<vmem>>, vector<96x32xf32>
    %c1_303 = arith.constant 1 : index
    %c0_304 = arith.constant 0 : index
    %c0_305 = arith.constant 0 : index
    %320 = vector.load %arg6[%c1_303, %c0_304, %c0_305] : memref<5x32x32xf32, #tpu.memory_space<vmem>>, vector<1x32x32xf32>
    %321 = vector.shape_cast %320 : vector<1x32x32xf32> to vector<32x32xf32>
    %cst_306 = arith.constant dense<0.000000e+00> : vector<96x32xf32>
    %322 = tpu.matmul %319, %321, %cst_306 {dimension_numbers = #tpu.dot_dimension_numbers<[1], [0], [0], [1], [0, 0, 1, 1], [], []>} : vector<96x32xf32>, vector<32x32xf32>, vector<96x32xf32> -> vector<96x32xf32>
    %323 = arith.addf %318, %322 : vector<96x32xf32>
    %c64_307 = arith.constant 64 : index
    %c0_308 = arith.constant 0 : index
    %324 = vector.load %arg14[%c64_307, %c0_308] : memref<224x32xf32, #tpu.memory_space<vmem>>, vector<96x32xf32>
    %c2_309 = arith.constant 2 : index
    %c0_310 = arith.constant 0 : index
    %c0_311 = arith.constant 0 : index
    %325 = vector.load %arg6[%c2_309, %c0_310, %c0_311] : memref<5x32x32xf32, #tpu.memory_space<vmem>>, vector<1x32x32xf32>
    %326 = vector.shape_cast %325 : vector<1x32x32xf32> to vector<32x32xf32>
    %cst_312 = arith.constant dense<0.000000e+00> : vector<96x32xf32>
    %327 = tpu.matmul %324, %326, %cst_312 {dimension_numbers = #tpu.dot_dimension_numbers<[1], [0], [0], [1], [0, 0, 1, 1], [], []>} : vector<96x32xf32>, vector<32x32xf32>, vector<96x32xf32> -> vector<96x32xf32>
    %328 = arith.addf %323, %327 : vector<96x32xf32>
    %c96_313 = arith.constant 96 : index
    %c0_314 = arith.constant 0 : index
    %329 = vector.load %arg14[%c96_313, %c0_314] : memref<224x32xf32, #tpu.memory_space<vmem>>, vector<96x32xf32>
    %c3_315 = arith.constant 3 : index
    %c0_316 = arith.constant 0 : index
    %c0_317 = arith.constant 0 : index
    %330 = vector.load %arg6[%c3_315, %c0_316, %c0_317] : memref<5x32x32xf32, #tpu.memory_space<vmem>>, vector<1x32x32xf32>
    %331 = vector.shape_cast %330 : vector<1x32x32xf32> to vector<32x32xf32>
    %cst_318 = arith.constant dense<0.000000e+00> : vector<96x32xf32>
    %332 = tpu.matmul %329, %331, %cst_318 {dimension_numbers = #tpu.dot_dimension_numbers<[1], [0], [0], [1], [0, 0, 1, 1], [], []>} : vector<96x32xf32>, vector<32x32xf32>, vector<96x32xf32> -> vector<96x32xf32>
    %333 = arith.addf %328, %332 : vector<96x32xf32>
    %c128_319 = arith.constant 128 : index
    %c0_320 = arith.constant 0 : index
    %334 = vector.load %arg14[%c128_319, %c0_320] : memref<224x32xf32, #tpu.memory_space<vmem>>, vector<96x32xf32>
    %c4_321 = arith.constant 4 : index
    %c0_322 = arith.constant 0 : index
    %c0_323 = arith.constant 0 : index
    %335 = vector.load %arg6[%c4_321, %c0_322, %c0_323] : memref<5x32x32xf32, #tpu.memory_space<vmem>>, vector<1x32x32xf32>
    %336 = vector.shape_cast %335 : vector<1x32x32xf32> to vector<32x32xf32>
    %cst_324 = arith.constant dense<0.000000e+00> : vector<96x32xf32>
    %337 = tpu.matmul %334, %336, %cst_324 {dimension_numbers = #tpu.dot_dimension_numbers<[1], [0], [0], [1], [0, 0, 1, 1], [], []>} : vector<96x32xf32>, vector<32x32xf32>, vector<96x32xf32> -> vector<96x32xf32>
    %338 = arith.addf %333, %337 : vector<96x32xf32>
    %c2_325 = arith.constant 2 : index
    %c0_326 = arith.constant 0 : index
    %339 = vector.load %arg9[%c2_325, %c0_326] : memref<3x32xf32, #tpu.memory_space<vmem>>, vector<1x32xf32>
    %340 = vector.broadcast %339 : vector<1x32xf32> to vector<96x32xf32>
    %341 = arith.addf %338, %340 : vector<96x32xf32>
    %cst_327 = arith.constant 0.000000e+00 : f32
    %342 = vector.broadcast %cst_327 : f32 to vector<96x32xf32>
    %343 = arith.maximumf %341, %342 : vector<96x32xf32>
    %c0_328 = arith.constant 0 : index
    %c0_329 = arith.constant 0 : index
    %344 = vector.load %arg15[%c0_328, %c0_329] : memref<96x32xf32, #tpu.memory_space<vmem>>, vector<96x32xf32>
    tpu.vector_store %arg15[%c0_328, %c0_329], %343 {strides = array<i32>} : memref<96x32xf32, #tpu.memory_space<vmem>>, vector<96x32xf32>,
    %c0_330 = arith.constant 0 : index
    %c0_331 = arith.constant 0 : index
    %345 = vector.load %arg15[%c0_330, %c0_331] : memref<96x32xf32, #tpu.memory_space<vmem>>, vector<32x32xf32>
    %c0_332 = arith.constant 0 : index
    %c0_333 = arith.constant 0 : index
    %c0_334 = arith.constant 0 : index
    %346 = vector.load %arg7[%c0_332, %c0_333, %c0_334] : memref<3x32x8xf32, #tpu.memory_space<vmem>>, vector<1x32x8xf32>
    %347 = vector.shape_cast %346 : vector<1x32x8xf32> to vector<32x8xf32>
    %cst_335 = arith.constant dense<0.000000e+00> : vector<32x8xf32>
    %348 = tpu.matmul %345, %347, %cst_335 {dimension_numbers = #tpu.dot_dimension_numbers<[1], [0], [0], [1], [0, 0, 1, 1], [], []>} : vector<32x32xf32>, vector<32x8xf32>, vector<32x8xf32> -> vector<32x8xf32>
    %c32_336 = arith.constant 32 : index
    %c0_337 = arith.constant 0 : index
    %349 = vector.load %arg15[%c32_336, %c0_337] : memref<96x32xf32, #tpu.memory_space<vmem>>, vector<32x32xf32>
    %c1_338 = arith.constant 1 : index
    %c0_339 = arith.constant 0 : index
    %c0_340 = arith.constant 0 : index
    %350 = vector.load %arg7[%c1_338, %c0_339, %c0_340] : memref<3x32x8xf32, #tpu.memory_space<vmem>>, vector<1x32x8xf32>
    %351 = vector.shape_cast %350 : vector<1x32x8xf32> to vector<32x8xf32>
    %cst_341 = arith.constant dense<0.000000e+00> : vector<32x8xf32>
    %352 = tpu.matmul %349, %351, %cst_341 {dimension_numbers = #tpu.dot_dimension_numbers<[1], [0], [0], [1], [0, 0, 1, 1], [], []>} : vector<32x32xf32>, vector<32x8xf32>, vector<32x8xf32> -> vector<32x8xf32>
    %353 = arith.addf %348, %352 : vector<32x8xf32>
    %c64_342 = arith.constant 64 : index
    %c0_343 = arith.constant 0 : index
    %354 = vector.load %arg15[%c64_342, %c0_343] : memref<96x32xf32, #tpu.memory_space<vmem>>, vector<32x32xf32>
    %c2_344 = arith.constant 2 : index
    %c0_345 = arith.constant 0 : index
    %c0_346 = arith.constant 0 : index
    %355 = vector.load %arg7[%c2_344, %c0_345, %c0_346] : memref<3x32x8xf32, #tpu.memory_space<vmem>>, vector<1x32x8xf32>
    %356 = vector.shape_cast %355 : vector<1x32x8xf32> to vector<32x8xf32>
    %cst_347 = arith.constant dense<0.000000e+00> : vector<32x8xf32>
    %357 = tpu.matmul %354, %356, %cst_347 {dimension_numbers = #tpu.dot_dimension_numbers<[1], [0], [0], [1], [0, 0, 1, 1], [], []>} : vector<32x32xf32>, vector<32x8xf32>, vector<32x8xf32> -> vector<32x8xf32>
    %358 = arith.addf %353, %357 : vector<32x8xf32>
    %c0_348 = arith.constant 0 : index
    %c0_349 = arith.constant 0 : index
    %359 = vector.load %arg10[%c0_348, %c0_349] : memref<1x8xf32, #tpu.memory_space<vmem>>, vector<1x8xf32>
    %360 = vector.broadcast %359 : vector<1x8xf32> to vector<32x8xf32>
    %361 = arith.addf %358, %360 : vector<32x8xf32>
    %c0_350 = arith.constant 0 : index
    %c0_351 = arith.constant 0 : index
    %362 = vector.load %arg11[%c0_350, %c0_351] : memref<32x8xf32, #tpu.memory_space<vmem>>, vector<32x8xf32>
    tpu.vector_store %arg11[%c0_350, %c0_351], %361 {strides = array<i32>} : memref<32x8xf32, #tpu.memory_space<vmem>>, vector<32x8xf32>,
    return
  }
  func.func @transform_0(%arg0: i32) -> (i32, i32, i32) {
    %c0_i32 = arith.constant 0 : i32
    %c0_i32_0 = arith.constant 0 : i32
    %c0_i32_1 = arith.constant 0 : i32
    return %c0_i32, %arg0, %c0_i32_0 : i32, i32, i32
  }
  func.func @transform_1(%arg0: i32) -> (i32, i32) {
    %c0_i32 = arith.constant 0 : i32
    %c0_i32_0 = arith.constant 0 : i32
    %c0_i32_1 = arith.constant 0 : i32
    return %c0_i32, %c0_i32_0 : i32, i32
  }
  func.func @transform_2(%arg0: i32) -> (i32, i32) {
    %c0_i32 = arith.constant 0 : i32
    %c0_i32_0 = arith.constant 0 : i32
    %c0_i32_1 = arith.constant 0 : i32
    return %c0_i32, %c0_i32_0 : i32, i32
  }
  func.func @transform_3(%arg0: i32) -> (i32, i32, i32) {
    %c0_i32 = arith.constant 0 : i32
    %c0_i32_0 = arith.constant 0 : i32
    %c0_i32_1 = arith.constant 0 : i32
    %c0_i32_2 = arith.constant 0 : i32
    return %c0_i32, %c0_i32_0, %c0_i32_1 : i32, i32, i32
  }
  func.func @transform_4(%arg0: i32) -> (i32, i32, i32) {
    %c0_i32 = arith.constant 0 : i32
    %c0_i32_0 = arith.constant 0 : i32
    %c0_i32_1 = arith.constant 0 : i32
    %c0_i32_2 = arith.constant 0 : i32
    return %c0_i32, %c0_i32_0, %c0_i32_1 : i32, i32, i32
  }
  func.func @transform_5(%arg0: i32) -> (i32, i32, i32) {
    %c0_i32 = arith.constant 0 : i32
    %c0_i32_0 = arith.constant 0 : i32
    %c0_i32_1 = arith.constant 0 : i32
    %c0_i32_2 = arith.constant 0 : i32
    return %c0_i32, %c0_i32_0, %c0_i32_1 : i32, i32, i32
  }
  func.func @transform_6(%arg0: i32) -> (i32, i32, i32) {
    %c0_i32 = arith.constant 0 : i32
    %c0_i32_0 = arith.constant 0 : i32
    %c0_i32_1 = arith.constant 0 : i32
    %c0_i32_2 = arith.constant 0 : i32
    return %c0_i32, %c0_i32_0, %c0_i32_1 : i32, i32, i32
  }
  func.func @transform_7(%arg0: i32) -> (i32, i32) {
    %c0_i32 = arith.constant 0 : i32
    %c0_i32_0 = arith.constant 0 : i32
    %c0_i32_1 = arith.constant 0 : i32
    return %c0_i32, %c0_i32_0 : i32, i32
  }
  func.func @transform_8(%arg0: i32) -> (i32, i32) {
    %c0_i32 = arith.constant 0 : i32
    %c0_i32_0 = arith.constant 0 : i32
    %c0_i32_1 = arith.constant 0 : i32
    return %c0_i32, %c0_i32_0 : i32, i32
  }
  func.func @transform_9(%arg0: i32) -> (i32, i32) {
    %c0_i32 = arith.constant 0 : i32
    %c0_i32_0 = arith.constant 0 : i32
    %c0_i32_1 = arith.constant 0 : i32
    return %c0_i32, %c0_i32_0 : i32, i32
  }
  func.func @transform_10(%arg0: i32) -> (i32, i32) {
    %c0_i32 = arith.constant 0 : i32
    %c0_i32_0 = arith.constant 0 : i32
    return %arg0, %c0_i32 : i32, i32
  }
}

</mosaic_0001>

<bundles_post_ra>
// kernel: temporal_conv_forward.1
= control target key start
LH: loop header
LB: loop body
LE: loop exit
PB: predicated region body
PF: predicated region fallthrough
CT: control target
= control target key end

     0   :  { %s6941_s13 = smov 0   ;;  %s6943_s14 = smov 0   ;;  %s10053_s0 = inlined_call_operand.vmem [shape: f32[15,64,32], index: 0, kind: input, shape index: {}]   ;;  %s10054_s1 = inlined_call_operand.vmem [shape: f32[32,64], index: 1, kind: input, shape index: {}]   ;;  %s10055_s2 = inlined_call_operand.vmem [shape: f32[64,64], index: 2, kind: input, shape index: {}]   ;;  %s10056_s3 = inlined_call_operand.vmem [shape: f32[5,64,32], index: 3, kind: input, shape index: {}]   ;;  %s10057_s4 = inlined_call_operand.vmem [shape: f32[5,32,32], index: 4, kind: input, shape index: {}]   ;;  %s10058_s5 = inlined_call_operand.vmem [shape: f32[5,32,32], index: 5, kind: input, shape index: {}]   ;;  %s10059_s6 = inlined_call_operand.vmem [shape: f32[3,32,8], index: 6, kind: input, shape index: {}]   ;;  %s10060_s7 = inlined_call_operand.vmem [shape: f32[2,64], index: 7, kind: input, shape index: {}]   ;;  %s10061_s8 = inlined_call_operand.vmem [shape: f32[3,32], index: 8, kind: input, shape index: {}]   ;;  %s10062_s9 = inlined_call_operand.vmem [shape: f32[1,8], index: 9, kind: input, shape index: {}]   ;;  %s10063_s10 = inlined_call_operand.vmem [shape: f32[64,8], index: 10, kind: output, shape index: {}]  }
   0x1   :  { %s6945_s15 = smov 0  }
   0x2 LB: > { %s6097_s16 = sadd.s32 4294967295, %s6884_s15   ;;  %s6958_s17 = sadd.s32 1, %s6884_s15   ;;  %s6884_s15 = sphi %s6945_s15, %s10182_s15   ;;  %s6880_s14 = sphi %s6943_s14, %s10181_s14   ;;  %s6876_s13 = sphi %s6941_s13, %s10180_s13  }
   0x3   : > { %s24_s18 = ssub.s32 %s6884_s15, %s6958_s17  ;;  %s27_s19 = sadd.s32 1, %s6880_s14 }
   0x4   : > { %p25_p0 = scmp.eq.s32.totalorder %s24_s18, 0  ;;  %p34_p1 = scmp.ne.s32.totalorder %s6880_s14, %s6876_s13 }
   0x5   : > { %p35_p2 = scmp.eq.s32.totalorder %s6884_s15, 0  ;;  %p6100_p4 = scmp.ge.s32.totalorder %s6884_s15, 2 }
   0x6   : > { %s6967_s20 = scalar_select %p25_p0, %s6880_s14, %s27_s19  }
   0x7   : > { %p36_p3 = por %p35_p2, %p34_p1  ;;  %302 = sbr.rel (%p6100_p4) target bundleno = 76 (0x4c), region = 52 }
   0xc   : > { %305 = sbr.rel (!%p36_p3) target bundleno = 76 (0x4c), region = 56  ;;  %s307_s21 = sand.u32 (%p36_p3), 1, %s6880_s14  }
   0xd   : > { %s6788_s22 = sshll.u32 (%p36_p3), %s6884_s15, 5  ;;  %s6801_s23 = smul.u32 (%p36_p3), 480, %s307_s21 }
   0xe   : > { %s6975_s26 = scalar_lea.vmem (%p36_p3), %s10053_s0, %s6788_s22 }
   0xf   : > { %v459_v0 = vld [vmem:[%s6975_s26] sm:$0xff] (%p36_p3)  ;;  %v461_v1 = vld [vmem:[%s6975_s26 + $0x8] sm:$0xff] (%p36_p3)  ;;  %v463_v2 = vld [vmem:[%s6975_s26 + $0x10] sm:$0xff] (%p36_p3)  ;;  %s6980_s27 = scalar_lea.vmem (%p36_p3), [#allocation6], %s6801_s23 }
  0x10   : > { %460 = vst [vmem:[%s6980_s27] sm:$0xff] (%p36_p3), %v459_v0  ;;  %v465_v3 = vld [vmem:[%s6975_s26 + $0x18] sm:$0xff] (%p36_p3)  ;;  %v467_v4 = vld [vmem:[%s6975_s26 + $0x40] sm:$0xff] (%p36_p3)  ;;  %v469_v5 = vld [vmem:[%s6975_s26 + $0x48] sm:$0xff] (%p36_p3) }
  0x11   : > { %462 = vst [vmem:[%s6980_s27 + $0x8] sm:$0xff] %v461_v1  ;;  %v471_v6 = vld [vmem:[%s6975_s26 + $0x50] sm:$0xff]  ;;  %v473_v7 = vld [vmem:[%s6975_s26 + $0x58] sm:$0xff]  ;;  %v475_v8 = vld [vmem:[%s6975_s26 + $0x80] sm:$0xff] }
  0x12   : > { %464 = vst [vmem:[%s6980_s27 + $0x10] sm:$0xff] %v463_v2  ;;  %v477_v9 = vld [vmem:[%s6975_s26 + $0x88] sm:$0xff]  ;;  %v479_v10 = vld [vmem:[%s6975_s26 + $0x90] sm:$0xff]  ;;  %v481_v11 = vld [vmem:[%s6975_s26 + $0x98] sm:$0xff] }
  0x13   : > { %466 = vst [vmem:[%s6980_s27 + $0x18] sm:$0xff] %v465_v3  ;;  %v483_v12 = vld [vmem:[%s6975_s26 + $0xc0] sm:$0xff]  ;;  %v485_v13 = vld [vmem:[%s6975_s26 + $0xc8] sm:$0xff]  ;;  %v487_v14 = vld [vmem:[%s6975_s26 + $0xd0] sm:$0xff] }
  0x14   : > { %468 = vst [vmem:[%s6980_s27 + $0x20] sm:$0xff] %v467_v4  ;;  %v489_v15 = vld [vmem:[%s6975_s26 + $0xd8] sm:$0xff]  ;;  %v491_v16 = vld [vmem:[%s6975_s26 + $0x100] sm:$0xff]  ;;  %v493_v17 = vld [vmem:[%s6975_s26 + $0x108] sm:$0xff] }
  0x15   : > { %470 = vst [vmem:[%s6980_s27 + $0x28] sm:$0xff] %v469_v5  ;;  %v495_v18 = vld [vmem:[%s6975_s26 + $0x110] sm:$0xff]  ;;  %v497_v19 = vld [vmem:[%s6975_s26 + $0x118] sm:$0xff]  ;;  %v499_v20 = vld [vmem:[%s6975_s26 + $0x140] sm:$0xff] }
  0x16   : > { %472 = vst [vmem:[%s6980_s27 + $0x30] sm:$0xff] %v471_v6  ;;  %v501_v21 = vld [vmem:[%s6975_s26 + $0x148] sm:$0xff]  ;;  %v503_v22 = vld [vmem:[%s6975_s26 + $0x150] sm:$0xff]  ;;  %v505_v23 = vld [vmem:[%s6975_s26 + $0x158] sm:$0xff] }
  0x17   : > { %474 = vst [vmem:[%s6980_s27 + $0x38] sm:$0xff] %v473_v7  ;;  %v507_v24 = vld [vmem:[%s6975_s26 + $0x180] sm:$0xff]  ;;  %v509_v25 = vld [vmem:[%s6975_s26 + $0x188] sm:$0xff]  ;;  %v511_v26 = vld [vmem:[%s6975_s26 + $0x190] sm:$0xff] }
  0x18   : > { %476 = vst [vmem:[%s6980_s27 + $0x40] sm:$0xff] %v475_v8  ;;  %v513_v27 = vld [vmem:[%s6975_s26 + $0x198] sm:$0xff]  ;;  %v515_v28 = vld [vmem:[%s6975_s26 + $0x1c0] sm:$0xff]  ;;  %v517_v29 = vld [vmem:[%s6975_s26 + $0x1c8] sm:$0xff] }
  0x19   : > { %478 = vst [vmem:[%s6980_s27 + $0x48] sm:$0xff] %v477_v9  ;;  %v519_v30 = vld [vmem:[%s6975_s26 + $0x1d0] sm:$0xff]  ;;  %v521_v31 = vld [vmem:[%s6975_s26 + $0x1d8] sm:$0xff]  ;;  %v523_v32 = vld [vmem:[%s6975_s26 + $0x200] sm:$0xff] }
  0x1a   : > { %480 = vst [vmem:[%s6980_s27 + $0x50] sm:$0xff] %v479_v10  ;;  %v525_v33 = vld [vmem:[%s6975_s26 + $0x208] sm:$0xff]  ;;  %v527_v34 = vld [vmem:[%s6975_s26 + $0x210] sm:$0xff]  ;;  %v529_v35 = vld [vmem:[%s6975_s26 + $0x218] sm:$0xff] }
  0x1b   : > { %482 = vst [vmem:[%s6980_s27 + $0x58] sm:$0xff] %v481_v11  ;;  %v531_v36 = vld [vmem:[%s6975_s26 + $0x240] sm:$0xff]  ;;  %v533_v37 = vld [vmem:[%s6975_s26 + $0x248] sm:$0xff]  ;;  %v535_v38 = vld [vmem:[%s6975_s26 + $0x250] sm:$0xff] }
  0x1c   : > { %484 = vst [vmem:[%s6980_s27 + $0x60] sm:$0xff] %v483_v12  ;;  %v537_v39 = vld [vmem:[%s6975_s26 + $0x258] sm:$0xff]  ;;  %v539_v40 = vld [vmem:[%s6975_s26 + $0x280] sm:$0xff]  ;;  %v541_v41 = vld [vmem:[%s6975_s26 + $0x288] sm:$0xff] }
  0x1d   : > { %486 = vst [vmem:[%s6980_s27 + $0x68] sm:$0xff] %v485_v13  ;;  %v543_v42 = vld [vmem:[%s6975_s26 + $0x290] sm:$0xff]  ;;  %v545_v43 = vld [vmem:[%s6975_s26 + $0x298] sm:$0xff]  ;;  %v547_v44 = vld [vmem:[%s6975_s26 + $0x2c0] sm:$0xff] }
  0x1e   : > { %488 = vst [vmem:[%s6980_s27 + $0x70] sm:$0xff] %v487_v14  ;;  %v549_v45 = vld [vmem:[%s6975_s26 + $0x2c8] sm:$0xff]  ;;  %v551_v46 = vld [vmem:[%s6975_s26 + $0x2d0] sm:$0xff]  ;;  %v553_v47 = vld [vmem:[%s6975_s26 + $0x2d8] sm:$0xff] }
  0x1f   : > { %490 = vst [vmem:[%s6980_s27 + $0x78] sm:$0xff] %v489_v15  ;;  %v555_v48 = vld [vmem:[%s6975_s26 + $0x300] sm:$0xff]  ;;  %v557_v49 = vld [vmem:[%s6975_s26 + $0x308] sm:$0xff]  ;;  %v559_v50 = vld [vmem:[%s6975_s26 + $0x310] sm:$0xff] }
  0x20   : > { %492 = vst [vmem:[%s6980_s27 + $0x80] sm:$0xff] %v491_v16  ;;  %v561_v51 = vld [vmem:[%s6975_s26 + $0x318] sm:$0xff]  ;;  %v563_v52 = vld [vmem:[%s6975_s26 + $0x340] sm:$0xff]  ;;  %v565_v53 = vld [vmem:[%s6975_s26 + $0x348] sm:$0xff] }
  0x21   : > { %494 = vst [vmem:[%s6980_s27 + $0x88] sm:$0xff] %v493_v17  ;;  %v567_v54 = vld [vmem:[%s6975_s26 + $0x350] sm:$0xff]  ;;  %v569_v55 = vld [vmem:[%s6975_s26 + $0x358] sm:$0xff]  ;;  %v571_v56 = vld [vmem:[%s6975_s26 + $0x380] sm:$0xff] }
  0x22   : > { %496 = vst [vmem:[%s6980_s27 + $0x90] sm:$0xff] %v495_v18  ;;  %v573_v57 = vld [vmem:[%s6975_s26 + $0x388] sm:$0xff]  ;;  %v575_v58 = vld [vmem:[%s6975_s26 + $0x390] sm:$0xff]  ;;  %v577_v59 = vld [vmem:[%s6975_s26 + $0x398] sm:$0xff] }
  0x23   : > { %498 = vst [vmem:[%s6980_s27 + $0x98] sm:$0xff] %v497_v19 }
  0x24   : > { %500 = vst [vmem:[%s6980_s27 + $0xa0] sm:$0xff] %v499_v20 }
  0x25   : > { %502 = vst [vmem:[%s6980_s27 + $0xa8] sm:$0xff] %v501_v21 }
  0x26   : > { %504 = vst [vmem:[%s6980_s27 + $0xb0] sm:$0xff] %v503_v22 }
  0x27   : > { %506 = vst [vmem:[%s6980_s27 + $0xb8] sm:$0xff] %v505_v23 }
  0x28   : > { %508 = vst [vmem:[%s6980_s27 + $0xc0] sm:$0xff] %v507_v24 }
  0x29   : > { %510 = vst [vmem:[%s6980_s27 + $0xc8] sm:$0xff] %v509_v25 }
  0x2a   : > { %512 = vst [vmem:[%s6980_s27 + $0xd0] sm:$0xff] %v511_v26 }
  0x2b   : > { %514 = vst [vmem:[%s6980_s27 + $0xd8] sm:$0xff] %v513_v27 }
  0x2c   : > { %516 = vst [vmem:[%s6980_s27 + $0xe0] sm:$0xff] %v515_v28 }
  0x2d   : > { %518 = vst [vmem:[%s6980_s27 + $0xe8] sm:$0xff] %v517_v29 }
  0x2e   : > { %520 = vst [vmem:[%s6980_s27 + $0xf0] sm:$0xff] %v519_v30 }
  0x2f   : > { %522 = vst [vmem:[%s6980_s27 + $0xf8] sm:$0xff] %v521_v31 }
  0x30   : > { %524 = vst [vmem:[%s6980_s27 + $0x100] sm:$0xff] %v523_v32 }
  0x31   : > { %526 = vst [vmem:[%s6980_s27 + $0x108] sm:$0xff] %v525_v33 }
  0x32   : > { %528 = vst [vmem:[%s6980_s27 + $0x110] sm:$0xff] %v527_v34 }
  0x33   : > { %530 = vst [vmem:[%s6980_s27 + $0x118] sm:$0xff] %v529_v35 }
  0x34   : > { %532 = vst [vmem:[%s6980_s27 + $0x120] sm:$0xff] %v531_v36 }
  0x35   : > { %534 = vst [vmem:[%s6980_s27 + $0x128] sm:$0xff] %v533_v37 }
  0x36   : > { %536 = vst [vmem:[%s6980_s27 + $0x130] sm:$0xff] %v535_v38 }
  0x37   : > { %538 = vst [vmem:[%s6980_s27 + $0x138] sm:$0xff] %v537_v39 }
  0x38   : > { %540 = vst [vmem:[%s6980_s27 + $0x140] sm:$0xff] %v539_v40 }
  0x39   : > { %542 = vst [vmem:[%s6980_s27 + $0x148] sm:$0xff] %v541_v41 }
  0x3a   : > { %544 = vst [vmem:[%s6980_s27 + $0x150] sm:$0xff] %v543_v42 }
  0x3b   : > { %546 = vst [vmem:[%s6980_s27 + $0x158] sm:$0xff] %v545_v43 }
  0x3c   : > { %548 = vst [vmem:[%s6980_s27 + $0x160] sm:$0xff] %v547_v44 }
  0x3d   : > { %550 = vst [vmem:[%s6980_s27 + $0x168] sm:$0xff] %v549_v45 }
  0x3e   : > { %552 = vst [vmem:[%s6980_s27 + $0x170] sm:$0xff] %v551_v46 }
  0x3f   : > { %554 = vst [vmem:[%s6980_s27 + $0x178] sm:$0xff] %v553_v47 }
  0x40   : > { %556 = vst [vmem:[%s6980_s27 + $0x180] sm:$0xff] %v555_v48 }
  0x41   : > { %558 = vst [vmem:[%s6980_s27 + $0x188] sm:$0xff] %v557_v49 }
  0x42   : > { %560 = vst [vmem:[%s6980_s27 + $0x190] sm:$0xff] %v559_v50 }
  0x43   : > { %562 = vst [vmem:[%s6980_s27 + $0x198] sm:$0xff] %v561_v51 }
  0x44   : > { %564 = vst [vmem:[%s6980_s27 + $0x1a0] sm:$0xff] %v563_v52 }
  0x45   : > { %566 = vst [vmem:[%s6980_s27 + $0x1a8] sm:$0xff] %v565_v53 }
  0x46   : > { %568 = vst [vmem:[%s6980_s27 + $0x1b0] sm:$0xff] %v567_v54 }
  0x47   : > { %570 = vst [vmem:[%s6980_s27 + $0x1b8] sm:$0xff] %v569_v55 }
  0x48   : > { %572 = vst [vmem:[%s6980_s27 + $0x1c0] sm:$0xff] %v571_v56 }
  0x49   : > { %574 = vst [vmem:[%s6980_s27 + $0x1c8] sm:$0xff] %v573_v57 }
  0x4a   : > { %576 = vst [vmem:[%s6980_s27 + $0x1d0] sm:$0xff] %v575_v58 }
  0x4b   : > { %578 = vst [vmem:[%s6980_s27 + $0x1d8] sm:$0xff] %v577_v59 }
  0x4c PF: > { %p6103_p5 = scmp.ge.s32.totalorder %s6884_s15, 1  ;;  %p583_p6 = scmp.lt.s32.totalorder %s6884_s15, 3 }
  0x4e   : > { %p584_p7 = pnand %p6103_p5, %p583_p6 }
  0x50   : > { %587 = sbr.rel (%p584_p7) target bundleno = 1983 (0x7bf), region = 94 }
  0x55   : > { %v7104_v60 = vld [vmem:[%s10054_s1 + $0x18] sm:$0xff]  ;;  %v7109_v61 = vld [vmem:[%s10054_s1 + $0x10] sm:$0xff]  ;;  %s590_s12 = sand.u32 1, %s6876_s13   ;;  %v7122_v63 = vld [vmem:[%s10054_s1 + $0x8] sm:$0xff]  ;;  %vm644_vm0 = vcmask 261120   ;;  %vm700_vm1 = vcmask 523264  }
  0x56   : > { %669 = vmatpush.msra.mxu0 %v7104_v60  ;;  %s6802_s18 = smul.u32 480, %s590_s12  ;;  %v7116_v62 = vld [vmem:[%s10055_s2 + $0x38] sm:$0xff]  ;;  %785 = vmatpush.msra.mxu2 %v7104_v60  ;;  %v7130_v0 = vld [vmem:[%s10055_s2 + $0x30] sm:$0xff]  ;;  %v7136_v1 = vld [vmem:[%s10054_s1] sm:$0xff]  ;;  %s6104_s26 = sshll.u32 %s6097_s16, 2  ;;  %vm6030_vm2 = vcmask 64512  }
  0x57   : > { %6797 = vmatpush.msra.mxu3 %v7104_v60  ;;  %6789 = vmatpush.msra.mxu1 %v7116_v62  ;;  %v7147_v3 = vld [vmem:[%s10055_s2 + $0x28] sm:$0xff]  ;;  %v7157_v5 = vld [vmem:[%s10055_s2 + $0x20] sm:$0xff]  ;;  %v7166_v6 = vld [vmem:[%s10055_s2 + $0x18] sm:$0xff]  ;;  %p629_p8 = scmp.lt.s32.totalorder %s6104_s26, 7 }
  0x58   : > { %670 = vmatpush.msra.mxu0 %v7109_v61  ;;  %786 = vmatpush.msra.mxu2 %v7109_v61  ;;  %s7141_s27 = scalar_lea.vmem [#allocation6], %s6802_s18  ;;  %v7176_v8 = vld [vmem:[%s10055_s2 + $0x10] sm:$0xff]  ;;  %v7187_v10 = vld [vmem:[%s10055_s2 + $0x8] sm:$0xff]  ;;  %v7214_v13 = vld [vmem:[%s10055_s2] sm:$0xff] }
  0x59   : > { %6798 = vmatpush.msra.mxu3 %v7109_v61  ;;  %6790 = vmatpush.msra.mxu1 %v7130_v0  ;;  %v634_v2 = vld [vmem:[%s7141_s27] sm:$0xff]  ;;  %v635_v7 = vld [vmem:[%s7141_s27 + $0x8] sm:$0xff]  ;;  %v636_v11 = vld [vmem:[%s7141_s27 + $0x10] sm:$0xff]  ;;  %s10184_s26 = smov (!%p629_p8, %s6104_s26), 7 }
  0x5a   : > { %671 = vmatpush.msra.mxu0 %v7122_v63  ;;  %787 = vmatpush.msra.mxu2 %v7122_v63  ;;  %v6114_v4 = vld [vmem:[%s7141_s27 + $0x20] sm:$0xff]  ;;  %v6115_v9 = vld [vmem:[%s7141_s27 + $0x28] sm:$0xff]  ;;  %v637_v12 = vld [vmem:[%s7141_s27 + $0x18] sm:$0xff]  ;;  %s6105_s28 = sshll.u32 %s10184_s26, 3 }
  0x5b   : > { %6799 = vmatpush.msra.mxu3 %v7122_v63  ;;  %6791 = vmatpush.msra.mxu1 %v7147_v3  ;;  %v6116_v14 = vld [vmem:[%s7141_s27 + $0x30] sm:$0xff]  ;;  %v6117_v15 = vld [vmem:[%s7141_s27 + $0x38] sm:$0xff]  ;;  %v6827_v16 = vld [vmem:[%s10060_s7] ss:$0 sm:$0xff]  ;;  %s632_s18 = scalar_lea.vmem %s10063_s10, %s6105_s28 }
  0x5c   : > { %672 = vmatpush.msra.mxu0 %v7136_v1  ;;  %788 = vmatpush.msra.mxu2 %v7136_v1  ;;  %v6126_v28 = vld [vmem:[%s7141_s27 + $0x40] sm:$0xff]  ;;  %v6127_v30 = vld [vmem:[%s7141_s27 + $0x48] sm:$0xff]  ;;  %v6128_v32 = vld [vmem:[%s7141_s27 + $0x50] sm:$0xff] }
  0x5d   : > { %6106 = vmatmul.msk.f32.vlgmr.msra.gmra.mxu0 %vm644_vm0, %v634_v2  ;;  %6118 = vmatmul.msk.f32.vlgmr.msra.gmra.mxu2 %vm644_vm0, %v6114_v4  ;;  %v6138_v31 = vld [vmem:[%s7141_s27 + $0x60] sm:$0xff]  ;;  %v6139_v33 = vld [vmem:[%s7141_s27 + $0x68] sm:$0xff]  ;;  %v6129_v34 = vld [vmem:[%s7141_s27 + $0x58] sm:$0xff] }
  0x5e   : > { %721 = vmatpush.msrb.mxu0 %v7116_v62  ;;  %6800 = vmatpush.msra.mxu3 %v7136_v1  ;;  %v6140_v35 = vld [vmem:[%s7141_s27 + $0x70] sm:$0xff]  ;;  %v6141_v36 = vld [vmem:[%s7141_s27 + $0x78] sm:$0xff]  ;;  %v6150_v37 = vld [vmem:[%s7141_s27 + $0x80] sm:$0xff] }
  0x5f   : > { %6792 = vmatpush.msra.mxu1 %v7157_v5  ;;  %951 = vmatpush.msrb.mxu2 %v7116_v62  ;;  %v6151_v38 = vld [vmem:[%s7141_s27 + $0x88] sm:$0xff]  ;;  %v6162_v39 = vld [vmem:[%s7141_s27 + $0xa0] sm:$0xff]  ;;  %v6152_v40 = vld [vmem:[%s7141_s27 + $0x90] sm:$0xff] }
  0x60   : > { %836 = vmatpush.msrb.mxu3 %v7116_v62  ;;  %722 = vmatpush.msrb.mxu0 %v7130_v0  ;;  %v6163_v41 = vld [vmem:[%s7141_s27 + $0xa8] sm:$0xff]  ;;  %v6153_v42 = vld [vmem:[%s7141_s27 + $0x98] sm:$0xff]  ;;  %v6164_v43 = vld [vmem:[%s7141_s27 + $0xb0] sm:$0xff] }
  0x61   : > { %6793 = vmatpush.msra.mxu1 %v7166_v6  ;;  %952 = vmatpush.msrb.mxu2 %v7130_v0  ;;  %v6828_v44 = vld [vmem:[%s10060_s7] ss:$0 sm:$0xff]  ;;  %v6165_v48 = vld [vmem:[%s7141_s27 + $0xb8] sm:$0xff]  ;;  %v6175_v50 = vld [vmem:[%s7141_s27 + $0xc8] sm:$0xff] }
  0x62   : > { %837 = vmatpush.msrb.mxu3 %v7130_v0  ;;  %723 = vmatpush.msrb.mxu0 %v7147_v3  ;;  %v6174_v49 = vld [vmem:[%s7141_s27 + $0xc0] sm:$0xff]  ;;  %v6176_v55 = vld [vmem:[%s7141_s27 + $0xd0] sm:$0xff]  ;;  %v6187_v56 = vld [vmem:[%s7141_s27 + $0xe8] sm:$0xff] }
  0x63   : > { %6794 = vmatpush.msra.mxu1 %v7176_v8  ;;  %953 = vmatpush.msrb.mxu2 %v7147_v3  ;;  %v6186_v51 = vld [vmem:[%s7141_s27 + $0xe0] sm:$0xff]  ;;  %v6177_v2 = vld [vmem:[%s7141_s27 + $0xd8] sm:$0xff]  ;;  %v6188_v4 = vld [vmem:[%s7141_s27 + $0xf0] sm:$0xff] }
  0x64   : > { %838 = vmatpush.msrb.mxu3 %v7147_v3  ;;  %724 = vmatpush.msrb.mxu0 %v7157_v5 }
  0x65   : > { %6107 = vmatmul.msk.f32.gmra.mxu0 %vm644_vm0, %v635_v7  ;;  %6119 = vmatmul.msk.f32.gmra.mxu2 %vm644_vm0, %v6115_v9 }
  0x66   : > { %725 = vmatpush.msrb.mxu0 %v7166_v6  ;;  %6795 = vmatpush.msra.mxu1 %v7187_v10 }
  0x67   : > { %839 = vmatpush.msrb.mxu3 %v7157_v5  ;;  %954 = vmatpush.msrb.mxu2 %v7157_v5 }
  0x68   : > { %726 = vmatpush.msrb.mxu0 %v7176_v8  ;;  %6796 = vmatpush.msra.mxu1 %v7214_v13 }
  0x69   : > { %840 = vmatpush.msrb.mxu3 %v7166_v6  ;;  %955 = vmatpush.msrb.mxu2 %v7166_v6 }
  0x6a   : > { %727 = vmatpush.msrb.mxu0 %v7187_v10  ;;  %1015 = vmatpush.msrb.mxu1 %v7104_v60 }
  0x6b   : > { %841 = vmatpush.msrb.mxu3 %v7176_v8  ;;  %956 = vmatpush.msrb.mxu2 %v7176_v8 }
  0x6c   : > { %728 = vmatpush.msrb.mxu0 %v7214_v13  ;;  %6120 = vmatmul.msk.f32.vlgmr.msra.gmra.mxu3 %vm644_vm0, %v6116_v14  ;;  %v6198_v14 = vld [vmem:[%s7141_s27 + $0x100] sm:$0xff] }
  0x6d   : > { %6108 = vmatmul.msk.f32.gmra.mxu0 %vm644_vm0, %v636_v11  ;;  %842 = vmatpush.msrb.mxu3 %v7187_v10 }
  0x6e   : > { %957 = vmatpush.msrb.mxu2 %v7187_v10  ;;  %900 = vmatpush.msra.mxu0 %v7104_v60 }
  0x6f   : > { %1016 = vmatpush.msrb.mxu1 %v7109_v61  ;;  %843 = vmatpush.msrb.mxu3 %v7214_v13 }
  0x70   : > { %958 = vmatpush.msrb.mxu2 %v7214_v13  ;;  %901 = vmatpush.msra.mxu0 %v7109_v61 }
  0x71   : > { %1017 = vmatpush.msrb.mxu1 %v7122_v63  ;;  %1066 = vmatpush.msra.mxu3 %v7116_v62 }
  0x72   : > { %1181 = vmatpush.msra.mxu2 %v7116_v62  ;;  %902 = vmatpush.msra.mxu0 %v7122_v63 }
  0x73   : > { %1018 = vmatpush.msrb.mxu1 %v7136_v1  ;;  %1067 = vmatpush.msra.mxu3 %v7130_v0 }
  0x74   : > { %1182 = vmatpush.msra.mxu2 %v7130_v0  ;;  %903 = vmatpush.msra.mxu0 %v7136_v1 }
  0x75   : > { %6109 = vmatmul.msk.f32.gmra.mxu0 %vm644_vm0, %v637_v12  ;;  %6121 = vmatmul.msk.f32.gmra.mxu3 %vm644_vm0, %v6117_v15  ;;  %v6189_v12 = vld [vmem:[%s7141_s27 + $0xf8] sm:$0xff]  ;;  %v6829_v15 = vld [vmem:[%s10060_s7 + $0x1] ss:$0 sm:$0xff] }
  0x76   : > { %1183 = vmatpush.msra.mxu2 %v7147_v3  ;;  %1068 = vmatpush.msra.mxu3 %v7147_v3 }
  0x78   : > { %1184 = vmatpush.msra.mxu2 %v7157_v5  ;;  %1069 = vmatpush.msra.mxu3 %v7157_v5 }
  0x7a   : > { %1185 = vmatpush.msra.mxu2 %v7166_v6  ;;  %1070 = vmatpush.msra.mxu3 %v7166_v6 }
  0x7c   : > { %1186 = vmatpush.msra.mxu2 %v7176_v8  ;;  %1071 = vmatpush.msra.mxu3 %v7176_v8 }
  0x7e   : > { %1187 = vmatpush.msra.mxu2 %v7187_v10  ;;  %1072 = vmatpush.msra.mxu3 %v7187_v10 }
  0x80   : > { %1188 = vmatpush.msra.mxu2 %v7214_v13  ;;  %1073 = vmatpush.msra.mxu3 %v7214_v13 }
  0xda   : > { %v674_v17 = vpop.f32.mrf.mxu0 }
  0xdb   : > { %v675_v18 = vadd.f32 %v6827_v16, %v674_v17  ;;  %v6199_v17 = vld [vmem:[%s7141_s27 + $0x108] sm:$0xff] }
  0xdd   : > { %v686_v19 = vmax.f32 %v675_v18, 0.0  ;;  %v6210_v18 = vld [vmem:[%s7141_s27 + $0x120] sm:$0xff] }
  0xdf   : > { %6110 = vmatmul.msk.f32.vlgmr.msrb.gmra.mxu0 %vm700_vm1, %v686_v19 }
  0xe0   : > { %1130 = vmatpush.msrb.mxu0 %v7104_v60  ;;  %v790_v45 = vpop.f32.mrf.mxu2 }
  0xe1   : > { %v791_v46 = vadd.f32 %v6828_v44, %v790_v45 }
  0xe2   : > { %v677_v20 = vpop.f32.mrf.mxu0  ;;  %1131 = vmatpush.msrb.mxu0 %v7109_v61 }
  0xe3   : > { %v678_v21 = vadd.f32 %v6827_v16, %v677_v20  ;;  %v802_v47 = vmax.f32 %v791_v46, 0.0 }
  0xe4   : > { %1132 = vmatpush.msrb.mxu0 %v7122_v63 }
  0xe5   : > { %v687_v22 = vmax.f32 %v678_v21, 0.0  ;;  %6122 = vmatmul.msk.f32.vlgmr.msrb.gmra.mxu3 %vm700_vm1, %v802_v47 }
  0xe6   : > { %1133 = vmatpush.msrb.mxu0 %v7136_v1  ;;  %1296 = vmatpush.msrb.mxu3 %v7116_v62 }
  0xe7   : > { %6111 = vmatmul.msk.f32.gmra.mxu0 %vm700_vm1, %v687_v22  ;;  %v6200_v22 = vld [vmem:[%s7141_s27 + $0x110] sm:$0xff] }
  0xe8   : > { %1297 = vmatpush.msrb.mxu3 %v7130_v0  ;;  %v793_v52 = vpop.f32.mrf.mxu2 }
  0xe9   : > { %v794_v53 = vadd.f32 %v6828_v44, %v793_v52 }
  0xea   : > { %v680_v23 = vpop.f32.mrf.mxu0  ;;  %1298 = vmatpush.msrb.mxu3 %v7147_v3 }
  0xeb   : > { %v681_v24 = vadd.f32 %v6827_v16, %v680_v23  ;;  %v803_v54 = vmax.f32 %v794_v53, 0.0  ;;  %v6211_v23 = vld [vmem:[%s7141_s27 + $0x128] sm:$0xff]  ;;  %v6225_v53 = vld [vmem:[%s7141_s27 + $0x158] sm:$0xff] }
  0xec   : > { %1299 = vmatpush.msrb.mxu3 %v7157_v5 }
  0xed   : > { %v688_v25 = vmax.f32 %v681_v24, 0.0  ;;  %6123 = vmatmul.msk.f32.gmra.mxu3 %vm700_vm1, %v803_v54 }
  0xee   : > { %1300 = vmatpush.msrb.mxu3 %v7166_v6 }
  0xef   : > { %6112 = vmatmul.msk.f32.gmra.mxu0 %vm700_vm1, %v688_v25  ;;  %v796_v57 = vpop.f32.mrf.mxu3 }
  0xf0   : > { %1301 = vmatpush.msrb.mxu3 %v7176_v8  ;;  %v797_v58 = vadd.f32 %v6828_v44, %v796_v57  ;;  %v6237_v57 = vld [vmem:[%s7141_s27 + $0x178] sm:$0xff] }
  0xf2   : > { %v683_v26 = vpop.f32.mrf.mxu0  ;;  %1302 = vmatpush.msrb.mxu3 %v7187_v10  ;;  %v804_v59 = vmax.f32 %v797_v58, 0.0  ;;  %v6246_v58 = vld [vmem:[%s7141_s27 + $0x180] sm:$0xff] }
  0xf3   : > { %v684_v27 = vadd.f32 %v6827_v16, %v683_v26 }
  0xf4   : > { %1303 = vmatpush.msrb.mxu3 %v7214_v13 }
  0xf5   : > { %v689_v29 = vmax.f32 %v684_v27, 0.0  ;;  %6124 = vmatmul.msk.f32.gmra.mxu3 %vm700_vm1, %v804_v59  ;;  %v6201_v27 = vld [vmem:[%s7141_s27 + $0x118] sm:$0xff] }
  0xf7   : > { %6113 = vmatmul.msk.f32.vlgmr.msra.gmra.mxu1 %vm700_vm1, %v689_v29  ;;  %6130 = vmatmul.msk.f32.vlgmr.msra.gmra.mxu0 %vm644_vm0, %v6126_v28  ;;  %v6212_v28 = vld [vmem:[%s7141_s27 + $0x130] sm:$0xff] }
  0xf8   : > { %1245 = vmatpush.msra.mxu1 %v7104_v60  ;;  %1360 = vmatpush.msra.mxu0 %v7104_v60  ;;  %v799_v7 = vpop.f32.mrf.mxu3 }
  0xf9   : > { %v800_v9 = vadd.f32 %v6828_v44, %v799_v7  ;;  %v6234_v44 = vld [vmem:[%s7141_s27 + $0x160] sm:$0xff] }
  0xfa   : > { %1246 = vmatpush.msra.mxu1 %v7109_v61  ;;  %1361 = vmatpush.msra.mxu0 %v7109_v61 }
  0xfb   : > { %v805_v11 = vmax.f32 %v800_v9, 0.0 }
  0xfc   : > { %1247 = vmatpush.msra.mxu1 %v7122_v63  ;;  %1362 = vmatpush.msra.mxu0 %v7122_v63 }
  0xfd   : > { %6125 = vmatmul.msk.f32.gmra.mxu3 %vm700_vm1, %v805_v11 }
  0xfe   : > { %1248 = vmatpush.msra.mxu1 %v7136_v1  ;;  %1363 = vmatpush.msra.mxu0 %v7136_v1 }
  0xff   : > { %6131 = vmatmul.msk.f32.gmra.mxu0 %vm644_vm0, %v6127_v30  ;;  %6142 = vmatmul.msk.f32.vlgmr.msrb.gmra.mxu1 %vm644_vm0, %v6138_v31  ;;  %v6830_v31 = vld [vmem:[%s10060_s7] ss:$0 sm:$0xff] }
 0x100   : > { %1475 = vmatpush.msrb.mxu1 %v7104_v60 }
 0x102   : > { %1476 = vmatpush.msrb.mxu1 %v7109_v61 }
 0x104   : > { %1477 = vmatpush.msrb.mxu1 %v7122_v63 }
 0x106   : > { %1478 = vmatpush.msrb.mxu1 %v7136_v1 }
 0x107   : > { %6132 = vmatmul.msk.f32.gmra.mxu0 %vm644_vm0, %v6128_v32  ;;  %6143 = vmatmul.msk.f32.gmra.mxu1 %vm644_vm0, %v6139_v33 }
 0x10f   : > { %6133 = vmatmul.msk.f32.gmra.mxu0 %vm644_vm0, %v6129_v34  ;;  %6144 = vmatmul.msk.f32.gmra.mxu1 %vm644_vm0, %v6140_v35  ;;  %v6213_v34 = vld [vmem:[%s7141_s27 + $0x138] sm:$0xff]  ;;  %v6222_v35 = vld [vmem:[%s7141_s27 + $0x140] sm:$0xff] }
 0x117   : > { %6145 = vmatmul.msk.f32.gmra.mxu1 %vm644_vm0, %v6141_v36  ;;  %6154 = vmatmul.msk.f32.vlgmr.msrb.gmra.mxu0 %vm644_vm0, %v6150_v37 }
 0x118   : > { %1590 = vmatpush.msrb.mxu0 %v7104_v60 }
 0x11a   : > { %1591 = vmatpush.msrb.mxu0 %v7109_v61 }
 0x11c   : > { %1592 = vmatpush.msrb.mxu0 %v7122_v63 }
 0x11e   : > { %1593 = vmatpush.msrb.mxu0 %v7136_v1 }
 0x11f   : > { %6155 = vmatmul.msk.f32.gmra.mxu0 %vm644_vm0, %v6151_v38  ;;  %6166 = vmatmul.msk.f32.vlgmr.msra.gmra.mxu1 %vm644_vm0, %v6162_v39 }
 0x120   : > { %1705 = vmatpush.msra.mxu1 %v7104_v60 }
 0x122   : > { %1706 = vmatpush.msra.mxu1 %v7109_v61 }
 0x124   : > { %1707 = vmatpush.msra.mxu1 %v7122_v63 }
 0x126   : > { %1708 = vmatpush.msra.mxu1 %v7136_v1 }
 0x127   : > { %6156 = vmatmul.msk.f32.gmra.mxu0 %vm644_vm0, %v6152_v40  ;;  %6167 = vmatmul.msk.f32.gmra.mxu1 %vm644_vm0, %v6163_v41  ;;  %v6831_v40 = vld [vmem:[%s10060_s7] ss:$0 sm:$0xff] }
 0x12f   : > { %6157 = vmatmul.msk.f32.gmra.mxu0 %vm644_vm0, %v6153_v42  ;;  %6168 = vmatmul.msk.f32.gmra.mxu1 %vm644_vm0, %v6164_v43  ;;  %v6223_v43 = vld [vmem:[%s7141_s27 + $0x148] sm:$0xff] }
 0x137   : > { %6169 = vmatmul.msk.f32.gmra.mxu1 %vm644_vm0, %v6165_v48  ;;  %6178 = vmatmul.msk.f32.vlgmr.msra.gmra.mxu0 %vm644_vm0, %v6174_v49  ;;  %v6224_v48 = vld [vmem:[%s7141_s27 + $0x150] sm:$0xff] }
 0x138   : > { %1820 = vmatpush.msra.mxu0 %v7104_v60 }
 0x13a   : > { %1821 = vmatpush.msra.mxu0 %v7109_v61 }
 0x13c   : > { %1822 = vmatpush.msra.mxu0 %v7122_v63 }
 0x13e   : > { %1823 = vmatpush.msra.mxu0 %v7136_v1 }
 0x13f   : > { %6179 = vmatmul.msk.f32.gmra.mxu0 %vm644_vm0, %v6175_v50  ;;  %6190 = vmatmul.msk.f32.vlgmr.msrb.gmra.mxu1 %vm644_vm0, %v6186_v51 }
 0x140   : > { %1935 = vmatpush.msrb.mxu1 %v7104_v60 }
 0x142   : > { %1936 = vmatpush.msrb.mxu1 %v7109_v61 }
 0x144   : > { %1937 = vmatpush.msrb.mxu1 %v7122_v63 }
 0x146   : > { %1938 = vmatpush.msrb.mxu1 %v7136_v1 }
 0x147   : > { %6180 = vmatmul.msk.f32.gmra.mxu0 %vm644_vm0, %v6176_v55  ;;  %6191 = vmatmul.msk.f32.gmra.mxu1 %vm644_vm0, %v6187_v56 }
 0x14f   : > { %6181 = vmatmul.msk.f32.gmra.mxu0 %vm644_vm0, %v6177_v2  ;;  %6192 = vmatmul.msk.f32.gmra.mxu1 %vm644_vm0, %v6188_v4 }
 0x157   : > { %6193 = vmatmul.msk.f32.gmra.mxu1 %vm644_vm0, %v6189_v12  ;;  %6202 = vmatmul.msk.f32.vlgmr.msrb.gmra.mxu0 %vm644_vm0, %v6198_v14  ;;  %v6247_v12 = vld [vmem:[%s7141_s27 + $0x188] sm:$0xff]  ;;  %v6258_v14 = vld [vmem:[%s7141_s27 + $0x1a0] sm:$0xff] }
 0x158   : > { %2050 = vmatpush.msrb.mxu0 %v7104_v60 }
 0x15a   : > { %2051 = vmatpush.msrb.mxu0 %v7109_v61 }
 0x15c   : > { %v730_v16 = vpop.f32.mrf.mxu0  ;;  %2052 = vmatpush.msrb.mxu0 %v7122_v63 }
 0x15d   : > { %v731_v19 = vadd.f32 %v6829_v15, %v730_v16 }
 0x15e   : > { %2053 = vmatpush.msrb.mxu0 %v7136_v1 }
 0x15f   : > { %v742_v20 = vmax.f32 %v731_v19, 0.0  ;;  %6203 = vmatmul.msk.f32.gmra.mxu0 %vm644_vm0, %v6199_v17  ;;  %6214 = vmatmul.msk.f32.vlgmr.msra.gmra.mxu1 %vm644_vm0, %v6210_v18 }
 0x160   : > { %2165 = vmatpush.msra.mxu1 %v7104_v60 }
 0x161   : > { %746 = vst.msk [vmem:[#allocation2] sm:$0xff] %vm700_vm1, %v742_v20 }
 0x162   : > { %2166 = vmatpush.msra.mxu1 %v7109_v61 }
 0x164   : > { %v733_v21 = vpop.f32.mrf.mxu0  ;;  %2167 = vmatpush.msra.mxu1 %v7122_v63 }
 0x165   : > { %v734_v24 = vadd.f32 %v6829_v15, %v733_v21  ;;  %v6248_v21 = vld [vmem:[%s7141_s27 + $0x190] sm:$0xff] }
 0x166   : > { %2168 = vmatpush.msra.mxu1 %v7136_v1 }
 0x167   : > { %v743_v25 = vmax.f32 %v734_v24, 0.0  ;;  %6204 = vmatmul.msk.f32.gmra.mxu0 %vm644_vm0, %v6200_v22  ;;  %6215 = vmatmul.msk.f32.gmra.mxu1 %vm644_vm0, %v6211_v23  ;;  %v6259_v22 = vld [vmem:[%s7141_s27 + $0x1a8] sm:$0xff] }
 0x169   : > { %747 = vst.msk [vmem:[#allocation2 + $0x8] sm:$0xff] %vm700_vm1, %v743_v25 }
 0x16c   : > { %v736_v26 = vpop.f32.mrf.mxu0 }
 0x16d   : > { %v737_v29 = vadd.f32 %v6829_v15, %v736_v26 }
 0x16f   : > { %v744_v30 = vmax.f32 %v737_v29, 0.0  ;;  %6205 = vmatmul.msk.f32.gmra.mxu0 %vm644_vm0, %v6201_v27  ;;  %6216 = vmatmul.msk.f32.gmra.mxu1 %vm644_vm0, %v6212_v28  ;;  %v6289_v27 = vld [vmem:[%s10056_s3 + $0x78] sm:$0xff]  ;;  %v7468_v29 = vld [vmem:[%s10055_s2 + $0x30] sm:$0xff] }
 0x170   : > { %v7462_v28 = vld [vmem:[%s10055_s2 + $0x38] sm:$0xff] }
 0x171   : > { %748 = vst.msk [vmem:[#allocation2 + $0x10] sm:$0xff] %vm700_vm1, %v744_v30 }
 0x174   : > { %v739_v32 = vpop.f32.mrf.mxu1  ;;  %v905_v33 = vpop.f32.mrf.mxu0 }
 0x175   : > { %v740_v36 = vadd.f32 %v6829_v15, %v739_v32  ;;  %v906_v37 = vadd.f32 %v6830_v31, %v905_v33  ;;  %v6249_v32 = vld [vmem:[%s7141_s27 + $0x198] sm:$0xff]  ;;  %v6260_v33 = vld [vmem:[%s7141_s27 + $0x1b0] sm:$0xff] }
 0x177   : > { %v745_v38 = vmax.f32 %v740_v36, 0.0  ;;  %v917_v39 = vmax.f32 %v906_v37, 0.0  ;;  %6217 = vmatmul.msk.f32.gmra.mxu1 %vm644_vm0, %v6213_v34  ;;  %6226 = vmatmul.msk.f32.vlgmr.msra.gmra.mxu0 %vm644_vm0, %v6222_v35  ;;  %v7478_v36 = vld [vmem:[%s10055_s2 + $0x28] sm:$0xff] }
 0x178   : > { %2280 = vmatpush.msra.mxu0 %v7104_v60 }
 0x179   : > { %749 = vst.msk [vmem:[#allocation2 + $0x18] sm:$0xff] %vm700_vm1, %v745_v38  ;;  %6134 = vmatmul.msk.f32.vlgmr.msrb.gmra.mxu2 %vm700_vm1, %v917_v39  ;;  %v6288_v39 = vld [vmem:[%s10056_s3 + $0x70] sm:$0xff] }
 0x17a   : > { %1411 = vmatpush.msrb.mxu2 %v7116_v62  ;;  %2281 = vmatpush.msra.mxu0 %v7109_v61 }
 0x17c   : > { %v908_v41 = vpop.f32.mrf.mxu0  ;;  %v1020_v42 = vpop.f32.mrf.mxu1  ;;  %1412 = vmatpush.msrb.mxu2 %v7130_v0  ;;  %2282 = vmatpush.msra.mxu0 %v7122_v63 }
 0x17d   : > { %v909_v60 = vadd.f32 %v6830_v31, %v908_v41  ;;  %v1021_v45 = vadd.f32 %v6831_v40, %v1020_v42  ;;  %v7498_v41 = vld [vmem:[%s10060_s7] ss:$0 sm:$0xff]  ;;  %v6287_v42 = vld [vmem:[%s10056_s3 + $0x68] sm:$0xff] }
 0x17e   : > { %1413 = vmatpush.msrb.mxu2 %v7147_v3  ;;  %2283 = vmatpush.msra.mxu0 %v7136_v1  ;;  %v6235_v1 = vld [vmem:[%s7141_s27 + $0x168] sm:$0xff] }
 0x17f   : > { %v918_v46 = vmax.f32 %v909_v60, 0.0  ;;  %v1032_v47 = vmax.f32 %v1021_v45, 0.0  ;;  %6227 = vmatmul.msk.f32.gmra.mxu0 %vm644_vm0, %v6223_v43  ;;  %6238 = vmatmul.msk.f32.vlgmr.msrb.gmra.mxu1 %vm644_vm0, %v6234_v44  ;;  %v7506_v43 = vld [vmem:[%s10055_s2 + $0x18] sm:$0xff]  ;;  %v7512_v44 = vld [vmem:[%s10055_s2 + $0x10] sm:$0xff] }
 0x180   : > { %1414 = vmatpush.msrb.mxu2 %v7157_v5  ;;  %2565 = vmatpush.msrb.mxu1 %v6289_v27 }
 0x181   : > { %6135 = vmatmul.msk.f32.gmra.mxu2 %vm700_vm1, %v918_v46  ;;  %6146 = vmatmul.msk.f32.vlgmr.msra.gmra.mxu3 %vm700_vm1, %v1032_v47  ;;  %v6261_v46 = vld [vmem:[%s7141_s27 + $0x1b8] sm:$0xff]  ;;  %v6270_v47 = vld [vmem:[%s7141_s27 + $0x1c0] sm:$0xff] }
 0x182   : > { %1415 = vmatpush.msrb.mxu2 %v7166_v6  ;;  %1526 = vmatpush.msra.mxu3 %v7116_v62 }
 0x183   : > { %2566 = vmatpush.msrb.mxu1 %v6288_v39 }
 0x184   : > { %v911_v61 = vpop.f32.mrf.mxu0  ;;  %v1023_v63 = vpop.f32.mrf.mxu1  ;;  %1416 = vmatpush.msrb.mxu2 %v7176_v8  ;;  %1527 = vmatpush.msra.mxu3 %v7130_v0 }
 0x185   : > { %v912_v49 = vadd.f32 %v6830_v31, %v911_v61  ;;  %v1024_v50 = vadd.f32 %v6831_v40, %v1023_v63  ;;  %2567 = vmatpush.msrb.mxu1 %v6287_v42 }
 0x186   : > { %1417 = vmatpush.msrb.mxu2 %v7187_v10  ;;  %1528 = vmatpush.msra.mxu3 %v7147_v3  ;;  %v6236_v3 = vld [vmem:[%s7141_s27 + $0x170] sm:$0xff] }
 0x187   : > { %v919_v51 = vmax.f32 %v912_v49, 0.0  ;;  %v1033_v52 = vmax.f32 %v1024_v50, 0.0  ;;  %6228 = vmatmul.msk.f32.gmra.mxu0 %vm644_vm0, %v6224_v48  ;;  %6239 = vmatmul.msk.f32.gmra.mxu1 %vm644_vm0, %v6235_v1  ;;  %v7523_v48 = vld [vmem:[%s10055_s2 + $0x8] sm:$0xff]  ;;  %v6286_v50 = vld [vmem:[%s10056_s3 + $0x60] sm:$0xff] }
 0x188   : > { %1418 = vmatpush.msrb.mxu2 %v7214_v13  ;;  %1529 = vmatpush.msra.mxu3 %v7157_v5 }
 0x189   : > { %6136 = vmatmul.msk.f32.gmra.mxu2 %vm700_vm1, %v919_v51  ;;  %6147 = vmatmul.msk.f32.gmra.mxu3 %vm700_vm1, %v1033_v52  ;;  %v7535_v51 = vld [vmem:[%s10055_s2] sm:$0xff] }
 0x18a   : > { %1530 = vmatpush.msra.mxu3 %v7166_v6  ;;  %v6832_v6 = vld [vmem:[%s10060_s7] ss:$0 sm:$0xff]  ;;  %2568 = vmatpush.msrb.mxu1 %v6286_v50 }
 0x18b   : > { %v7543_v52 = vld [vmem:[%s10060_s7] ss:$0 sm:$0xff] }
 0x18c   : > { %v914_v62 = vpop.f32.mrf.mxu0  ;;  %v1026_v0 = vpop.f32.mrf.mxu1  ;;  %1531 = vmatpush.msra.mxu3 %v7176_v8 }
 0x18d   : > { %v915_v54 = vadd.f32 %v6830_v31, %v914_v62  ;;  %v1027_v55 = vadd.f32 %v6831_v40, %v1026_v0  ;;  %v6285_v62 = vld [vmem:[%s10056_s3 + $0x58] sm:$0xff]  ;;  %v7551_v0 = vld [vmem:[%s10060_s7 + $0x1] ss:$0 sm:$0xff] }
 0x18e   : > { %1532 = vmatpush.msra.mxu3 %v7187_v10  ;;  %2569 = vmatpush.msrb.mxu1 %v6285_v62  ;;  %v6383_v62 = vld [vmem:[%s10056_s3 + $0xa8] sm:$0xff] }
 0x18f   : > { %v920_v56 = vmax.f32 %v915_v54, 0.0  ;;  %v1034_v5 = vmax.f32 %v1027_v55, 0.0  ;;  %6229 = vmatmul.msk.f32.gmra.mxu0 %vm644_vm0, %v6225_v53  ;;  %6240 = vmatmul.msk.f32.gmra.mxu1 %vm644_vm0, %v6236_v3  ;;  %v845_v53 = vpop.f32.mrf.mxu3 }
 0x190   : > { %1533 = vmatpush.msra.mxu3 %v7214_v13  ;;  %v7440_v13 = vld [vmem:[%s10060_s7] ss:$0 sm:$0xff]  ;;  %v846_v3 = vadd.f32 %v7551_v0, %v845_v53 }
 0x191   : > { %6137 = vmatmul.msk.f32.gmra.mxu2 %vm700_vm1, %v920_v56  ;;  %6148 = vmatmul.msk.f32.gmra.mxu3 %vm700_vm1, %v1034_v5  ;;  %v6271_v56 = vld [vmem:[%s7141_s27 + $0x1c8] sm:$0xff] }
 0x194   : > { %v1029_v8 = vpop.f32.mrf.mxu1  ;;  %v1135_v10 = vpop.f32.mrf.mxu0 }
 0x195   : > { %v1030_v59 = vadd.f32 %v6831_v40, %v1029_v8  ;;  %v1136_v2 = vadd.f32 %v6832_v6, %v1135_v10  ;;  %v7490_v40 = vld [vmem:[%s10055_s2 + $0x20] sm:$0xff]  ;;  %v857_v8 = vmax.f32 %v846_v3, 0.0 }
 0x196   : > { %v6382_v3 = vld [vmem:[%s10056_s3 + $0xa0] sm:$0xff] }
 0x197   : > { %v1035_v4 = vmax.f32 %v1030_v59, 0.0  ;;  %v1147_v7 = vmax.f32 %v1136_v2, 0.0  ;;  %6241 = vmatmul.msk.f32.gmra.mxu1 %vm644_vm0, %v6237_v57  ;;  %6250 = vmatmul.msk.f32.vlgmr.msrb.gmra.mxu0 %vm644_vm0, %v6246_v58  ;;  %861 = vst.msk [vmem:[#allocation2 + $0x20] sm:$0xff] %vm700_vm1, %v857_v8  ;;  %v6284_v58 = vld [vmem:[%s10056_s3 + $0x50] sm:$0xff]  ;;  %v6283_v59 = vld [vmem:[%s10056_s3 + $0x48] sm:$0xff] }
 0x198   : > { %2570 = vmatpush.msrb.mxu1 %v6284_v58 }
 0x199   : > { %6149 = vmatmul.msk.f32.gmra.mxu3 %vm700_vm1, %v1035_v4  ;;  %6158 = vmatmul.msk.f32.vlgmr.msra.gmra.mxu2 %vm700_vm1, %v1147_v7  ;;  %v6272_v7 = vld [vmem:[%s7141_s27 + $0x1d0] sm:$0xff] }
 0x19a   : > { %1641 = vmatpush.msra.mxu2 %v7462_v28  ;;  %2571 = vmatpush.msrb.mxu1 %v6283_v59 }
 0x19c   : > { %v1138_v9 = vpop.f32.mrf.mxu0  ;;  %v1250_v11 = vpop.f32.mrf.mxu1  ;;  %1642 = vmatpush.msra.mxu2 %v7468_v29 }
 0x19d   : > { %v1139_v15 = vadd.f32 %v6832_v6, %v1138_v9  ;;  %v1251_v16 = vadd.f32 %v7440_v13, %v1250_v11  ;;  %v848_v11 = vpop.f32.mrf.mxu3 }
 0x19e   : > { %1643 = vmatpush.msra.mxu2 %v7478_v36 }
 0x19f   : > { %v1148_v17 = vmax.f32 %v1139_v15, 0.0  ;;  %v1262_v18 = vmax.f32 %v1251_v16, 0.0  ;;  %6251 = vmatmul.msk.f32.gmra.mxu0 %vm644_vm0, %v6247_v12  ;;  %6262 = vmatmul.msk.f32.vlgmr.msra.gmra.mxu1 %vm644_vm0, %v6258_v14  ;;  %v849_v12 = vadd.f32 %v7551_v0, %v848_v11  ;;  %v6282_v16 = vld [vmem:[%s10056_s3 + $0x40] sm:$0xff] }
 0x1a0   : > { %1644 = vmatpush.msra.mxu2 %v7490_v40  ;;  %2572 = vmatpush.msrb.mxu1 %v6282_v16 }
 0x1a1   : > { %6159 = vmatmul.msk.f32.gmra.mxu2 %vm700_vm1, %v1148_v17  ;;  %6170 = vmatmul.msk.f32.vlgmr.msrb.gmra.mxu3 %vm700_vm1, %v1262_v18  ;;  %v858_v17 = vmax.f32 %v849_v12, 0.0  ;;  %v7588_v18 = vld [vmem:[#allocation2 + $0x20] sm:$0xff] }
 0x1a2   : > { %1756 = vmatpush.msrb.mxu3 %v7462_v28  ;;  %1645 = vmatpush.msra.mxu2 %v7506_v43 }
 0x1a3   : > { %862 = vst.msk [vmem:[#allocation2 + $0x28] sm:$0xff] %vm700_vm1, %v858_v17 }
 0x1a4   : > { %v1141_v19 = vpop.f32.mrf.mxu0  ;;  %v1253_v20 = vpop.f32.mrf.mxu1  ;;  %1757 = vmatpush.msrb.mxu3 %v7468_v29  ;;  %1646 = vmatpush.msra.mxu2 %v7512_v44 }
 0x1a5   : > { %v1142_v23 = vadd.f32 %v6832_v6, %v1141_v19  ;;  %v1254_v24 = vadd.f32 %v7440_v13, %v1253_v20  ;;  %v6489_v19 = vld [vmem:[%s10056_s3 + $0x138] sm:$0xff] }
 0x1a6   : > { %1758 = vmatpush.msrb.mxu3 %v7478_v36  ;;  %1647 = vmatpush.msra.mxu2 %v7523_v48 }
 0x1a7   : > { %v1149_v25 = vmax.f32 %v1142_v23, 0.0  ;;  %v1263_v26 = vmax.f32 %v1254_v24, 0.0  ;;  %6252 = vmatmul.msk.f32.gmra.mxu0 %vm644_vm0, %v6248_v21  ;;  %6263 = vmatmul.msk.f32.gmra.mxu1 %vm644_vm0, %v6259_v22  ;;  %v6273_v22 = vld [vmem:[%s7141_s27 + $0x1d8] sm:$0xff] }
 0x1a8   : > { %1759 = vmatpush.msrb.mxu3 %v7490_v40  ;;  %1648 = vmatpush.msra.mxu2 %v7535_v51 }
 0x1a9   : > { %6160 = vmatmul.msk.f32.gmra.mxu2 %vm700_vm1, %v1149_v25  ;;  %6171 = vmatmul.msk.f32.gmra.mxu3 %vm700_vm1, %v1263_v26  ;;  %v851_v25 = vpop.f32.mrf.mxu3 }
 0x1aa   : > { %1760 = vmatpush.msrb.mxu3 %v7506_v43  ;;  %3816 = vmatpush.msra.mxu1 %v6489_v19  ;;  %v852_v26 = vadd.f32 %v7551_v0, %v851_v25 }
 0x1ac   : > { %v1144_v30 = vpop.f32.mrf.mxu0  ;;  %v1256_v31 = vpop.f32.mrf.mxu1  ;;  %1761 = vmatpush.msrb.mxu3 %v7512_v44 }
 0x1ad   : > { %v1145_v34 = vadd.f32 %v6832_v6, %v1144_v30  ;;  %v1257_v35 = vadd.f32 %v7440_v13, %v1256_v31  ;;  %v859_v31 = vmax.f32 %v852_v26, 0.0 }
 0x1ae   : > { %1762 = vmatpush.msrb.mxu3 %v7523_v48 }
 0x1af   : > { %v1150_v37 = vmax.f32 %v1145_v34, 0.0  ;;  %v1264_v38 = vmax.f32 %v1257_v35, 0.0  ;;  %6253 = vmatmul.msk.f32.gmra.mxu0 %vm644_vm0, %v6249_v32  ;;  %6264 = vmatmul.msk.f32.gmra.mxu1 %vm644_vm0, %v6260_v33  ;;  %v7613_v32 = vld [vmem:[%s10060_s7] ss:$0 sm:$0xff]  ;;  %v7615_v33 = vld [vmem:[#allocation2 + $0x28] sm:$0xff]  ;;  %863 = vst.msk [vmem:[#allocation2 + $0x30] sm:$0xff] %vm700_vm1, %v859_v31 }
 0x1b0   : > { %1763 = vmatpush.msrb.mxu3 %v7535_v51 }
 0x1b1   : > { %6161 = vmatmul.msk.f32.gmra.mxu2 %vm700_vm1, %v1150_v37  ;;  %6172 = vmatmul.msk.f32.gmra.mxu3 %vm700_vm1, %v1264_v38  ;;  %v854_v39 = vpop.f32.mrf.mxu3 }
 0x1b4   : > { %v1259_v60 = vpop.f32.mrf.mxu1  ;;  %v1365_v45 = vpop.f32.mrf.mxu0 }
 0x1b5   : > { %v1260_v61 = vadd.f32 %v7440_v13, %v1259_v60  ;;  %v1366_v63 = vadd.f32 %v7498_v41, %v1365_v45 }
 0x1b7   : > { %v1265_v1 = vmax.f32 %v1260_v61, 0.0  ;;  %v1377_v49 = vmax.f32 %v1366_v63, 0.0  ;;  %6265 = vmatmul.msk.f32.gmra.mxu1 %vm644_vm0, %v6261_v46  ;;  %6274 = vmatmul.msk.f32.vlgmr.msra.gmra.mxu0 %vm644_vm0, %v6270_v47  ;;  %v7630_v46 = vld [vmem:[%s10060_s7] ss:$0 sm:$0xff]  ;;  %v7632_v47 = vld [vmem:[#allocation2 + $0x30] sm:$0xff]  ;;  %v6385_v61 = vld [vmem:[%s10056_s3 + $0xb8] sm:$0xff] }
 0x1b8   : > { %3060 = vmatpush.msrb.mxu0 %v6385_v61 }
 0x1b9   : > { %6173 = vmatmul.msk.f32.gmra.mxu3 %vm700_vm1, %v1265_v1  ;;  %6182 = vmatmul.msk.f32.vlgmr.msrb.gmra.mxu2 %vm700_vm1, %v1377_v49  ;;  %v6384_v49 = vld [vmem:[%s10056_s3 + $0xb0] sm:$0xff] }
 0x1ba   : > { %1871 = vmatpush.msrb.mxu2 %v7462_v28  ;;  %3061 = vmatpush.msrb.mxu0 %v6384_v49 }
 0x1bc   : > { %v1368_v54 = vpop.f32.mrf.mxu0  ;;  %v1480_v55 = vpop.f32.mrf.mxu1  ;;  %1872 = vmatpush.msrb.mxu2 %v7468_v29  ;;  %3062 = vmatpush.msrb.mxu0 %v6383_v62 }
 0x1bd   : > { %v1369_v5 = vadd.f32 %v7498_v41, %v1368_v54  ;;  %v1481_v6 = vadd.f32 %v7543_v52, %v1480_v55  ;;  %v6381_v55 = vld [vmem:[%s10056_s3 + $0x98] sm:$0xff] }
 0x1be   : > { %1873 = vmatpush.msrb.mxu2 %v7478_v36  ;;  %3063 = vmatpush.msrb.mxu0 %v6382_v3 }
 0x1bf   : > { %v1378_v10 = vmax.f32 %v1369_v5, 0.0  ;;  %v1492_v57 = vmax.f32 %v1481_v6, 0.0  ;;  %6275 = vmatmul.msk.f32.gmra.mxu0 %vm644_vm0, %v6271_v56  ;;  %6290 = vmatmul.msk.f32.vlgmr.msrb.gmra.mxu1 %vm700_vm1, %v7588_v18  ;;  %v6380_v6 = vld [vmem:[%s10056_s3 + $0x90] sm:$0xff] }
 0x1c0   : > { %1874 = vmatpush.msrb.mxu2 %v7490_v40  ;;  %3064 = vmatpush.msrb.mxu0 %v6381_v55 }
 0x1c1   : > { %6183 = vmatmul.msk.f32.gmra.mxu2 %vm700_vm1, %v1378_v10  ;;  %6194 = vmatmul.msk.f32.vlgmr.msra.gmra.mxu3 %vm700_vm1, %v1492_v57  ;;  %v6379_v57 = vld [vmem:[%s10056_s3 + $0x88] sm:$0xff] }
 0x1c2   : > { %1986 = vmatpush.msra.mxu3 %v7462_v28  ;;  %1875 = vmatpush.msrb.mxu2 %v7506_v43 }
 0x1c3   : > { %3065 = vmatpush.msrb.mxu0 %v6380_v6  ;;  %v2411_v6 = vld [vmem:[%s10056_s3 + $0x38] sm:$0xff] }
 0x1c4   : > { %v1371_v2 = vpop.f32.mrf.mxu0  ;;  %v1483_v4 = vpop.f32.mrf.mxu1  ;;  %1987 = vmatpush.msra.mxu3 %v7468_v29  ;;  %1876 = vmatpush.msrb.mxu2 %v7512_v44 }
 0x1c5   : > { %v1372_v13 = vadd.f32 %v7498_v41, %v1371_v2  ;;  %v1484_v9 = vadd.f32 %v7543_v52, %v1483_v4  ;;  %3066 = vmatpush.msrb.mxu0 %v6379_v57  ;;  %v6378_v2 = vld [vmem:[%s10056_s3 + $0x80] sm:$0xff]  ;;  %v2410_v57 = vld [vmem:[%s10056_s3 + $0x30] sm:$0xff] }
 0x1c6   : > { %1988 = vmatpush.msra.mxu3 %v7478_v36  ;;  %1877 = vmatpush.msrb.mxu2 %v7523_v48 }
 0x1c7   : > { %v1379_v14 = vmax.f32 %v1372_v13, 0.0  ;;  %v1493_v15 = vmax.f32 %v1484_v9, 0.0  ;;  %6276 = vmatmul.msk.f32.gmra.mxu0 %vm644_vm0, %v6272_v7  ;;  %6291 = vmatmul.msk.f32.gmra.mxu1 %vm700_vm1, %v7615_v33 }
 0x1c8   : > { %1878 = vmatpush.msrb.mxu2 %v7535_v51  ;;  %1989 = vmatpush.msra.mxu3 %v7490_v40 }
 0x1c9   : > { %6184 = vmatmul.msk.f32.gmra.mxu2 %vm700_vm1, %v1379_v14  ;;  %6195 = vmatmul.msk.f32.gmra.mxu3 %vm700_vm1, %v1493_v15  ;;  %v6839_v14 = vld [vmem:[%s10060_s7] ss:$0 sm:$0xff] }
 0x1ca   : > { %1990 = vmatpush.msra.mxu3 %v7506_v43  ;;  %3067 = vmatpush.msrb.mxu0 %v6378_v2 }
 0x1cc   : > { %v1374_v20 = vpop.f32.mrf.mxu0  ;;  %v1486_v21 = vpop.f32.mrf.mxu1  ;;  %1991 = vmatpush.msra.mxu3 %v7512_v44 }
 0x1cd   : > { %v1375_v23 = vadd.f32 %v7498_v41, %v1374_v20  ;;  %v1487_v24 = vadd.f32 %v7543_v52, %v1486_v21  ;;  %v855_v41 = vadd.f32 %v7551_v0, %v854_v39 }
 0x1ce   : > { %1992 = vmatpush.msra.mxu3 %v7523_v48 }
 0x1cf   : > { %v1380_v27 = vmax.f32 %v1375_v23, 0.0  ;;  %v1494_v30 = vmax.f32 %v1487_v24, 0.0  ;;  %6277 = vmatmul.msk.f32.gmra.mxu0 %vm644_vm0, %v6273_v22  ;;  %v860_v45 = vmax.f32 %v855_v41, 0.0  ;;  %6292 = vmatmul.msk.f32.gmra.mxu1 %vm700_vm1, %v7632_v47  ;;  %v7702_v22 = vld [vmem:[%s10060_s7 + $0x1] ss:$0 sm:$0xff]  ;;  %v6488_v24 = vld [vmem:[%s10056_s3 + $0x130] sm:$0xff] }
 0x1d0   : > { %1993 = vmatpush.msra.mxu3 %v7535_v51  ;;  %v7707_v23 = vld [vmem:[%s10060_s7] ss:$0 sm:$0xff]  ;;  %3817 = vmatpush.msra.mxu1 %v6488_v24  ;;  %v2406_v24 = vld [vmem:[%s10056_s3 + $0x10] sm:$0xff] }
 0x1d1   : > { %6185 = vmatmul.msk.f32.gmra.mxu2 %vm700_vm1, %v1380_v27  ;;  %6196 = vmatmul.msk.f32.gmra.mxu3 %vm700_vm1, %v1494_v30  ;;  %864 = vst.msk [vmem:[#allocation2 + $0x38] sm:$0xff] %vm700_vm1, %v860_v45 }
 0x1d4   : > { %v1489_v34 = vpop.f32.mrf.mxu1  ;;  %v1595_v35 = vpop.f32.mrf.mxu0 }
 0x1d5   : > { %v1490_v37 = vadd.f32 %v7543_v52, %v1489_v34  ;;  %v1596_v38 = vadd.f32 %v7613_v32, %v1595_v35 }
 0x1d7   : > { %v1495_v42 = vmax.f32 %v1490_v37, 0.0  ;;  %v1607_v60 = vmax.f32 %v1596_v38, 0.0 }
 0x1d8   : > { %v7656_v54 = vld [vmem:[#allocation2 + $0x38] sm:$0xff] }
 0x1d9   : > { %6197 = vmatmul.msk.f32.gmra.mxu3 %vm700_vm1, %v1495_v42  ;;  %6206 = vmatmul.msk.f32.vlgmr.msra.gmra.mxu2 %vm700_vm1, %v1607_v60 }
 0x1da   : > { %2101 = vmatpush.msra.mxu2 %v7462_v28  ;;  %6293 = vmatmul.msk.f32.gmra.mxu1 %vm700_vm1, %v7656_v54 }
 0x1dc   : > { %v1598_v63 = vpop.f32.mrf.mxu0  ;;  %v1710_v1 = vpop.f32.mrf.mxu1  ;;  %2102 = vmatpush.msra.mxu2 %v7468_v29 }
 0x1dd   : > { %v1599_v50 = vadd.f32 %v7613_v32, %v1598_v63  ;;  %v1711_v52 = vadd.f32 %v7630_v46, %v1710_v1 }
 0x1de   : > { %2103 = vmatpush.msra.mxu2 %v7478_v36 }
 0x1df   : > { %v1608_v0 = vmax.f32 %v1599_v50, 0.0  ;;  %v1722_v53 = vmax.f32 %v1711_v52, 0.0 }
 0x1e0   : > { %2104 = vmatpush.msra.mxu2 %v7490_v40 }
 0x1e1   : > { %6207 = vmatmul.msk.f32.gmra.mxu2 %vm700_vm1, %v1608_v0  ;;  %6218 = vmatmul.msk.f32.vlgmr.msrb.gmra.mxu3 %vm700_vm1, %v1722_v53 }
 0x1e2   : > { %2216 = vmatpush.msrb.mxu3 %v7462_v28  ;;  %2105 = vmatpush.msra.mxu2 %v7506_v43 }
 0x1e4   : > { %v1601_v56 = vpop.f32.mrf.mxu0  ;;  %v1713_v5 = vpop.f32.mrf.mxu1  ;;  %2217 = vmatpush.msrb.mxu3 %v7468_v29  ;;  %2106 = vmatpush.msra.mxu2 %v7512_v44 }
 0x1e5   : > { %v1602_v8 = vadd.f32 %v7613_v32, %v1601_v56  ;;  %v1714_v10 = vadd.f32 %v7630_v46, %v1713_v5  ;;  %v7759_v5 = vld [vmem:[%s10060_s7] ss:$0 sm:$0xff] }
 0x1e6   : > { %2218 = vmatpush.msrb.mxu3 %v7478_v36  ;;  %2107 = vmatpush.msra.mxu2 %v7523_v48 }
 0x1e7   : > { %v1609_v58 = vmax.f32 %v1602_v8, 0.0  ;;  %v1723_v59 = vmax.f32 %v1714_v10, 0.0 }
 0x1e8   : > { %2219 = vmatpush.msrb.mxu3 %v7490_v40  ;;  %2108 = vmatpush.msra.mxu2 %v7535_v51 }
 0x1e9   : > { %6208 = vmatmul.msk.f32.gmra.mxu2 %vm700_vm1, %v1609_v58  ;;  %6219 = vmatmul.msk.f32.gmra.mxu3 %vm700_vm1, %v1723_v59 }
 0x1ea   : > { %2220 = vmatpush.msrb.mxu3 %v7506_v43 }
 0x1ec   : > { %v1604_v4 = vpop.f32.mrf.mxu0  ;;  %v1716_v7 = vpop.f32.mrf.mxu1  ;;  %2221 = vmatpush.msrb.mxu3 %v7512_v44 }
 0x1ed   : > { %v1605_v13 = vadd.f32 %v7613_v32, %v1604_v4  ;;  %v1717_v9 = vadd.f32 %v7630_v46, %v1716_v7 }
 0x1ee   : > { %2222 = vmatpush.msrb.mxu3 %v7523_v48 }
 0x1ef   : > { %v1610_v11 = vmax.f32 %v1605_v13, 0.0  ;;  %v1724_v12 = vmax.f32 %v1717_v9, 0.0  ;;  %v2409_v9 = vld [vmem:[%s10056_s3 + $0x28] sm:$0xff] }
 0x1f0   : > { %2223 = vmatpush.msrb.mxu3 %v7535_v51 }
 0x1f1   : > { %6209 = vmatmul.msk.f32.gmra.mxu2 %vm700_vm1, %v1610_v11  ;;  %6220 = vmatmul.msk.f32.gmra.mxu3 %vm700_vm1, %v1724_v12 }
 0x1f4   : > { %v1719_v15 = vpop.f32.mrf.mxu1  ;;  %v1825_v16 = vpop.f32.mrf.mxu0 }
 0x1f5   : > { %v1720_v17 = vadd.f32 %v7630_v46, %v1719_v15  ;;  %v1826_v19 = vadd.f32 %v6839_v14, %v1825_v16 }
 0x1f7   : > { %v1725_v20 = vmax.f32 %v1720_v17, 0.0  ;;  %v1837_v21 = vmax.f32 %v1826_v19, 0.0  ;;  %v2408_v17 = vld [vmem:[%s10056_s3 + $0x20] sm:$0xff] }
 0x1f8   : > { %v7787_v19 = vld [vmem:[%s10060_s7 + $0x1] ss:$0 sm:$0xff] }
 0x1f9   : > { %6221 = vmatmul.msk.f32.gmra.mxu3 %vm700_vm1, %v1725_v20  ;;  %6230 = vmatmul.msk.f32.vlgmr.msrb.gmra.mxu2 %vm700_vm1, %v1837_v21  ;;  %v7795_v20 = vld [vmem:[%s10060_s7] ss:$0 sm:$0xff]  ;;  %v2407_v21 = vld [vmem:[%s10056_s3 + $0x18] sm:$0xff] }
 0x1fa   : > { %2331 = vmatpush.msrb.mxu2 %v7462_v28  ;;  %v7723_v28 = vld [vmem:[%s10060_s7 + $0x1] ss:$0 sm:$0xff] }
 0x1fc   : > { %v960_v25 = vpop.f32.mrf.mxu2  ;;  %v1828_v26 = vpop.f32.mrf.mxu0  ;;  %2332 = vmatpush.msrb.mxu2 %v7468_v29 }
 0x1fd   : > { %v961_v27 = vadd.f32 %v7702_v22, %v960_v25  ;;  %v1829_v30 = vadd.f32 %v6839_v14, %v1828_v26  ;;  %v1940_v31 = vpop.f32.mrf.mxu1 }
 0x1fe   : > { %v1941_v32 = vadd.f32 %v7707_v23, %v1940_v31  ;;  %2333 = vmatpush.msrb.mxu2 %v7478_v36 }
 0x1ff   : > { %v972_v34 = vmax.f32 %v961_v27, 0.0  ;;  %v1838_v35 = vmax.f32 %v1829_v30, 0.0 }
 0x200   : > { %v1952_v37 = vmax.f32 %v1941_v32, 0.0  ;;  %2334 = vmatpush.msrb.mxu2 %v7490_v40 }
 0x201   : > { %976 = vst.msk [vmem:[#allocation2 + $0x40] sm:$0xff] %vm700_vm1, %v972_v34  ;;  %6231 = vmatmul.msk.f32.gmra.mxu2 %vm700_vm1, %v1838_v35 }
 0x202   : > { %6242 = vmatmul.msk.f32.vlgmr.msra.gmra.mxu3 %vm700_vm1, %v1952_v37  ;;  %2335 = vmatpush.msrb.mxu2 %v7506_v43 }
 0x203   : > { %2726 = vmatpush.msra.mxu3 %v2411_v6 }
 0x204   : > { %v963_v29 = vpop.f32.mrf.mxu2  ;;  %v1075_v36 = vpop.f32.mrf.mxu3  ;;  %2336 = vmatpush.msrb.mxu2 %v7512_v44 }
 0x205   : > { %v964_v38 = vadd.f32 %v7702_v22, %v963_v29  ;;  %v1076_v40 = vadd.f32 %v7723_v28, %v1075_v36  ;;  %v1831_v39 = vpop.f32.mrf.mxu0  ;;  %v1943_v41 = vpop.f32.mrf.mxu1  ;;  %2727 = vmatpush.msra.mxu3 %v2410_v57 }
 0x206   : > { %v1832_v42 = vadd.f32 %v6839_v14, %v1831_v39  ;;  %v1944_v60 = vadd.f32 %v7707_v23, %v1943_v41  ;;  %2337 = vmatpush.msrb.mxu2 %v7523_v48  ;;  %v6487_v39 = vld [vmem:[%s10056_s3 + $0x128] sm:$0xff] }
 0x207   : > { %v973_v45 = vmax.f32 %v964_v38, 0.0  ;;  %v1087_v46 = vmax.f32 %v1076_v40, 0.0  ;;  %2728 = vmatpush.msra.mxu3 %v2409_v9  ;;  %v7820_v38 = vld [vmem:[%s10060_s7 + $0x1] ss:$0 sm:$0xff]  ;;  %3818 = vmatpush.msra.mxu1 %v6487_v39 }
 0x208   : > { %v1839_v61 = vmax.f32 %v1832_v42, 0.0  ;;  %v1953_v63 = vmax.f32 %v1944_v60, 0.0  ;;  %v7732_v43 = vld [vmem:[#allocation2 + $0x40] sm:$0xff]  ;;  %2338 = vmatpush.msrb.mxu2 %v7535_v51 }
 0x209   : > { %977 = vst.msk [vmem:[#allocation2 + $0x48] sm:$0xff] %vm700_vm1, %v973_v45  ;;  %6294 = vmatmul.msk.f32.gmra.mxu1 %vm700_vm1, %v7732_v43  ;;  %6386 = vmatmul.msk.f32.vlgmr.msrb.gmra.mxu0 %vm700_vm1, %v7732_v43  ;;  %v2404_v40 = vld [vmem:[%s10056_s3] sm:$0xff] }
 0x20a   : > { %1091 = vst.msk [vmem:[#allocation2 + $0x60] sm:$0xff] %vm700_vm1, %v1087_v46  ;;  %6232 = vmatmul.msk.f32.gmra.mxu2 %vm700_vm1, %v1839_v61  ;;  %6243 = vmatmul.msk.f32.gmra.mxu3 %vm700_vm1, %v1953_v63  ;;  %v6434_v9 = vld [vmem:[%s10056_s3 + $0xe0] sm:$0xff] }
 0x20b   : > { %2729 = vmatpush.msra.mxu3 %v2408_v17 }
 0x20c   : > { %v966_v44 = vpop.f32.mrf.mxu2  ;;  %v1078_v48 = vpop.f32.mrf.mxu3 }
 0x20d   : > { %v967_v1 = vadd.f32 %v7702_v22, %v966_v44  ;;  %v1079_v51 = vadd.f32 %v7723_v28, %v1078_v48  ;;  %v1834_v49 = vpop.f32.mrf.mxu0  ;;  %v1946_v50 = vpop.f32.mrf.mxu1  ;;  %2730 = vmatpush.msra.mxu3 %v2407_v21 }
 0x20e   : > { %v1835_v52 = vadd.f32 %v6839_v14, %v1834_v49  ;;  %v1947_v62 = vadd.f32 %v7707_v23, %v1946_v50 }
 0x20f   : > { %v974_v0 = vmax.f32 %v967_v1, 0.0  ;;  %v1088_v53 = vmax.f32 %v1079_v51, 0.0  ;;  %2731 = vmatpush.msra.mxu3 %v2406_v24 }
 0x210   : > { %v1840_v3 = vmax.f32 %v1835_v52, 0.0  ;;  %v1954_v55 = vmax.f32 %v1947_v62, 0.0  ;;  %v7746_v56 = vld [vmem:[#allocation2 + $0x48] sm:$0xff]  ;;  %v6437_v52 = vld [vmem:[%s10056_s3 + $0xf8] sm:$0xff] }
 0x211   : > { %978 = vst.msk [vmem:[#allocation2 + $0x50] sm:$0xff] %vm700_vm1, %v974_v0  ;;  %6295 = vmatmul.msk.f32.gmra.mxu1 %vm700_vm1, %v7746_v56  ;;  %6387 = vmatmul.msk.f32.gmra.mxu0 %vm700_vm1, %v7746_v56  ;;  %v7835_v48 = vld [vmem:[#allocation2 + $0x60] sm:$0xff] }
 0x212   : > { %1092 = vst.msk [vmem:[#allocation2 + $0x68] sm:$0xff] %vm700_vm1, %v1088_v53  ;;  %6233 = vmatmul.msk.f32.gmra.mxu2 %vm700_vm1, %v1840_v3  ;;  %6244 = vmatmul.msk.f32.gmra.mxu3 %vm700_vm1, %v1954_v55  ;;  %v6436_v53 = vld [vmem:[%s10056_s3 + $0xf0] sm:$0xff] }
 0x214   : > { %v969_v8 = vpop.f32.mrf.mxu2  ;;  %v1081_v10 = vpop.f32.mrf.mxu3 }
 0x215   : > { %v970_v58 = vadd.f32 %v7702_v22, %v969_v8  ;;  %v1082_v59 = vadd.f32 %v7723_v28, %v1081_v10  ;;  %v1949_v2 = vpop.f32.mrf.mxu1  ;;  %v2055_v4 = vpop.f32.mrf.mxu0 }
 0x216   : > { %v1950_v7 = vadd.f32 %v7707_v23, %v1949_v2  ;;  %v2056_v13 = vadd.f32 %v7759_v5, %v2055_v4 }
 0x217   : > { %v975_v11 = vmax.f32 %v970_v58, 0.0  ;;  %v1089_v12 = vmax.f32 %v1082_v59, 0.0  ;;  %v6435_v59 = vld [vmem:[%s10056_s3 + $0xe8] sm:$0xff] }
 0x218   : > { %v1955_v14 = vmax.f32 %v1950_v7, 0.0  ;;  %v2067_v15 = vmax.f32 %v2056_v13, 0.0  ;;  %v7774_v16 = vld [vmem:[#allocation2 + $0x50] sm:$0xff] }
 0x219   : > { %979 = vst.msk [vmem:[#allocation2 + $0x58] sm:$0xff] %vm700_vm1, %v975_v11  ;;  %6296 = vmatmul.msk.f32.gmra.mxu1 %vm700_vm1, %v7774_v16  ;;  %6388 = vmatmul.msk.f32.gmra.mxu0 %vm700_vm1, %v7774_v16  ;;  %v7855_v58 = vld [vmem:[#allocation2 + $0x68] sm:$0xff]  ;;  %v6433_v11 = vld [vmem:[%s10056_s3 + $0xd8] sm:$0xff] }
 0x21a   : > { %1093 = vst.msk [vmem:[#allocation2 + $0x70] sm:$0xff] %vm700_vm1, %v1089_v12  ;;  %6245 = vmatmul.msk.f32.gmra.mxu3 %vm700_vm1, %v1955_v14  ;;  %6254 = vmatmul.msk.f32.vlgmr.msra.gmra.mxu2 %vm700_vm1, %v2067_v15  ;;  %v6432_v15 = vld [vmem:[%s10056_s3 + $0xd0] sm:$0xff] }
 0x21b   : > { %3438 = vmatpush.msra.mxu2 %v6437_v52 }
 0x21c   : > { %v1084_v22 = vpop.f32.mrf.mxu3  ;;  %v1190_v23 = vpop.f32.mrf.mxu2 }
 0x21d   : > { %v1085_v25 = vadd.f32 %v7723_v28, %v1084_v22  ;;  %v1191_v26 = vadd.f32 %v7787_v19, %v1190_v23  ;;  %v2058_v27 = vpop.f32.mrf.mxu0  ;;  %v2170_v30 = vpop.f32.mrf.mxu1  ;;  %v2405_v28 = vld [vmem:[%s10056_s3 + $0x8] sm:$0xff]  ;;  %3439 = vmatpush.msra.mxu2 %v6436_v53 }
 0x21e   : > { %v2059_v31 = vadd.f32 %v7759_v5, %v2058_v27  ;;  %v2171_v32 = vadd.f32 %v7795_v20, %v2170_v30  ;;  %2732 = vmatpush.msra.mxu3 %v2405_v28  ;;  %v2361_v53 = vld [vmem:[#allocation2 + $0x8] sm:$0xff] }
 0x21f   : > { %v1090_v34 = vmax.f32 %v1085_v25, 0.0  ;;  %v1202_v35 = vmax.f32 %v1191_v26, 0.0  ;;  %3440 = vmatpush.msra.mxu2 %v6435_v59 }
 0x220   : > { %v2068_v37 = vmax.f32 %v2059_v31, 0.0  ;;  %v2182_v29 = vmax.f32 %v2171_v32, 0.0  ;;  %v7807_v36 = vld [vmem:[#allocation2 + $0x58] sm:$0xff]  ;;  %2733 = vmatpush.msra.mxu3 %v2404_v40 }
 0x221   : > { %1094 = vst.msk [vmem:[#allocation2 + $0x78] sm:$0xff] %vm700_vm1, %v1090_v34  ;;  %6297 = vmatmul.msk.f32.gmra.mxu1 %vm700_vm1, %v7807_v36  ;;  %6389 = vmatmul.msk.f32.gmra.mxu0 %vm700_vm1, %v7807_v36  ;;  %v7886_v26 = vld [vmem:[#allocation2 + $0x70] sm:$0xff]  ;;  %v6430_v34 = vld [vmem:[%s10056_s3 + $0xc0] sm:$0xff] }
 0x222   : > { %1206 = vst.msk [vmem:[#allocation2 + $0x80] sm:$0xff] %vm700_vm1, %v1202_v35  ;;  %6255 = vmatmul.msk.f32.gmra.mxu2 %vm700_vm1, %v2068_v37  ;;  %6266 = vmatmul.msk.f32.vlgmr.msrb.gmra.mxu3 %vm700_vm1, %v2182_v29 }
 0x223   : > { %3441 = vmatpush.msra.mxu2 %v6434_v9  ;;  %v6486_v9 = vld [vmem:[%s10056_s3 + $0x120] sm:$0xff] }
 0x224   : > { %v1193_v41 = vpop.f32.mrf.mxu2  ;;  %v1305_v42 = vpop.f32.mrf.mxu3  ;;  %3819 = vmatpush.msra.mxu1 %v6486_v9  ;;  %v4166_v9 = vld [vmem:[%s10057_s4 + $0x18] sm:$0xff] }
 0x225   : > { %v1194_v60 = vadd.f32 %v7787_v19, %v1193_v41  ;;  %v1306_v45 = vadd.f32 %v7820_v38, %v1305_v42  ;;  %v2061_v46 = vpop.f32.mrf.mxu0  ;;  %v2173_v61 = vpop.f32.mrf.mxu1  ;;  %3442 = vmatpush.msra.mxu2 %v6433_v11  ;;  %4385 = vmatpush.msra.mxu0 %v4166_v9 }
 0x226   : > { %v2062_v63 = vadd.f32 %v7759_v5, %v2061_v46  ;;  %v2174_v44 = vadd.f32 %v7795_v20, %v2173_v61  ;;  %v2360_v46 = vld [vmem:[#allocation2] sm:$0xff] }
 0x227   : > { %v1203_v1 = vmax.f32 %v1194_v60, 0.0  ;;  %v1317_v51 = vmax.f32 %v1306_v45, 0.0  ;;  %3443 = vmatpush.msra.mxu2 %v6432_v15 }
 0x228   : > { %v2069_v49 = vmax.f32 %v2062_v63, 0.0  ;;  %v2183_v50 = vmax.f32 %v2174_v44, 0.0  ;;  %v7910_v41 = vld [vmem:[#allocation2 + $0x78] sm:$0xff] }
 0x229   : > { %1207 = vst.msk [vmem:[#allocation2 + $0x88] sm:$0xff] %vm700_vm1, %v1203_v1  ;;  %6298 = vmatmul.msk.f32.gmra.mxu1 %vm700_vm1, %v7835_v48  ;;  %6390 = vmatmul.msk.f32.gmra.mxu0 %vm700_vm1, %v7835_v48 }
 0x22a   : > { %1321 = vst.msk [vmem:[#allocation2 + $0xa0] sm:$0xff] %vm700_vm1, %v1317_v51  ;;  %6256 = vmatmul.msk.f32.gmra.mxu2 %vm700_vm1, %v2069_v49  ;;  %6267 = vmatmul.msk.f32.gmra.mxu3 %vm700_vm1, %v2183_v50  ;;  %v7925_v50 = vld [vmem:[#allocation2 + $0x80] sm:$0xff] }
 0x22c   : > { %v1196_v62 = vpop.f32.mrf.mxu2  ;;  %v1308_v0 = vpop.f32.mrf.mxu3 }
 0x22d   : > { %v1197_v3 = vadd.f32 %v7787_v19, %v1196_v62  ;;  %v1309_v55 = vadd.f32 %v7820_v38, %v1308_v0  ;;  %v2064_v6 = vpop.f32.mrf.mxu0  ;;  %v2176_v8 = vpop.f32.mrf.mxu1 }
 0x22e   : > { %v2065_v10 = vadd.f32 %v7759_v5, %v2064_v6  ;;  %v2177_v57 = vadd.f32 %v7795_v20, %v2176_v8  ;;  %v7874_v5 = vld [vmem:[%s10060_s7] ss:$0 sm:$0xff] }
 0x22f   : > { %v1204_v2 = vmax.f32 %v1197_v3, 0.0  ;;  %v1318_v4 = vmax.f32 %v1309_v55, 0.0 }
 0x230   : > { %v2070_v7 = vmax.f32 %v2065_v10, 0.0  ;;  %v2184_v13 = vmax.f32 %v2177_v57, 0.0  ;;  %v7937_v59 = vld [vmem:[#allocation2 + $0x88] sm:$0xff] }
 0x231   : > { %1208 = vst.msk [vmem:[#allocation2 + $0x90] sm:$0xff] %vm700_vm1, %v1204_v2  ;;  %6299 = vmatmul.msk.f32.gmra.mxu1 %vm700_vm1, %v7855_v58  ;;  %6391 = vmatmul.msk.f32.gmra.mxu0 %vm700_vm1, %v7855_v58 }
 0x232   : > { %1322 = vst.msk [vmem:[#allocation2 + $0xa8] sm:$0xff] %vm700_vm1, %v1318_v4  ;;  %6257 = vmatmul.msk.f32.gmra.mxu2 %vm700_vm1, %v2070_v7  ;;  %6268 = vmatmul.msk.f32.gmra.mxu3 %vm700_vm1, %v2184_v13  ;;  %v2362_v13 = vld [vmem:[#allocation2 + $0x10] sm:$0xff] }
 0x234   : > { %v1199_v12 = vpop.f32.mrf.mxu2  ;;  %v1311_v14 = vpop.f32.mrf.mxu3 }
 0x235   : > { %v1200_v17 = vadd.f32 %v7787_v19, %v1199_v12  ;;  %v1312_v21 = vadd.f32 %v7820_v38, %v1311_v14  ;;  %v2179_v22 = vpop.f32.mrf.mxu1  ;;  %v2285_v23 = vpop.f32.mrf.mxu0  ;;  %v6431_v19 = vld [vmem:[%s10056_s3 + $0xc8] sm:$0xff] }
 0x236   : > { %v2180_v24 = vadd.f32 %v7795_v20, %v2179_v22  ;;  %v2286_v25 = vadd.f32 %v7874_v5, %v2285_v23  ;;  %v7899_v20 = vld [vmem:[%s10060_s7 + $0x1] ss:$0 sm:$0xff]  ;;  %3444 = vmatpush.msra.mxu2 %v6431_v19  ;;  %v2363_v22 = vld [vmem:[#allocation2 + $0x18] sm:$0xff] }
 0x237   : > { %v1205_v27 = vmax.f32 %v1200_v17, 0.0  ;;  %v1319_v30 = vmax.f32 %v1312_v21, 0.0  ;;  %v6850_v23 = vld [vmem:[%s10060_s7 + $0x1] ss:$0 sm:$0xff] }
 0x238   : > { %v2185_v31 = vmax.f32 %v2180_v24, 0.0  ;;  %v2297_v32 = vmax.f32 %v2286_v25, 0.0  ;;  %3445 = vmatpush.msra.mxu2 %v6430_v34  ;;  %v7951_v15 = vld [vmem:[#allocation2 + $0x90] sm:$0xff]  ;;  %v6851_v34 = vld [vmem:[%s10060_s7 + $0x1] ss:$0 sm:$0xff] }
 0x239   : > { %1209 = vst.msk [vmem:[#allocation2 + $0x98] sm:$0xff] %vm700_vm1, %v1205_v27  ;;  %6300 = vmatmul.msk.f32.gmra.mxu1 %vm700_vm1, %v7886_v26  ;;  %6392 = vmatmul.msk.f32.gmra.mxu0 %vm700_vm1, %v7886_v26 }
 0x23a   : > { %1323 = vst.msk [vmem:[#allocation2 + $0xb0] sm:$0xff] %vm700_vm1, %v1319_v30  ;;  %6269 = vmatmul.msk.f32.gmra.mxu3 %vm700_vm1, %v2185_v31  ;;  %6278 = vmatmul.msk.f32.vlgmr.msrb.gmra.mxu2 %vm700_vm1, %v2297_v32 }
 0x23c   : > { %v1314_v35 = vpop.f32.mrf.mxu3  ;;  %v1420_v37 = vpop.f32.mrf.mxu2 }
 0x23d   : > { %v1315_v29 = vadd.f32 %v7820_v38, %v1314_v35  ;;  %v1421_v28 = vadd.f32 %v7899_v20, %v1420_v37  ;;  %v2288_v40 = vpop.f32.mrf.mxu0  ;;  %v6849_v38 = vld [vmem:[%s10060_s7 + $0x1] ss:$0 sm:$0xff]  ;;  %v7965_v31 = vpop.f32.mrf.mxu1 }
 0x23e   : > { %v2289_v39 = vadd.f32 %v7874_v5, %v2288_v40 }
 0x23f   : > { %v1320_v42 = vmax.f32 %v1315_v29, 0.0  ;;  %v1432_v60 = vmax.f32 %v1421_v28, 0.0 }
 0x240   : > { %v2298_v45 = vmax.f32 %v2289_v39, 0.0  ;;  %v7967_v32 = vld [vmem:[#allocation2 + $0x98] sm:$0xff] }
 0x241   : > { %1324 = vst.msk [vmem:[#allocation2 + $0xb8] sm:$0xff] %vm700_vm1, %v1320_v42  ;;  %6301 = vmatmul.msk.f32.gmra.mxu1 %vm700_vm1, %v7910_v41  ;;  %6393 = vmatmul.msk.f32.gmra.mxu0 %vm700_vm1, %v7910_v41 }
 0x242   : > { %1436 = vst.msk [vmem:[#allocation2 + $0xc0] sm:$0xff] %vm700_vm1, %v1432_v60  ;;  %6279 = vmatmul.msk.f32.gmra.mxu2 %vm700_vm1, %v2298_v45  ;;  %6334 = vmatmul.msk.f32.vlgmr.msra.gmra.mxu3 %vm700_vm1, %v2360_v46  ;;  %v7984_v60 = vld [vmem:[#allocation2 + $0xa0] sm:$0xff] }
 0x244   : > { %v1423_v61 = vpop.f32.mrf.mxu2  ;;  %v1535_v63 = vpop.f32.mrf.mxu3 }
 0x245   : > { %v1424_v44 = vadd.f32 %v7899_v20, %v1423_v61  ;;  %v1536_v1 = vadd.f32 %v6849_v38, %v1535_v63  ;;  %v2291_v51 = vpop.f32.mrf.mxu0  ;;  %v7982_v42 = vpop.f32.mrf.mxu1 }
 0x246   : > { %v2292_v49 = vadd.f32 %v7874_v5, %v2291_v51 }
 0x247   : > { %v1433_v52 = vmax.f32 %v1424_v44, 0.0  ;;  %v1547_v62 = vmax.f32 %v1536_v1, 0.0  ;;  %v7996_v44 = vld [vmem:[#allocation2 + $0xa8] sm:$0xff] }
 0x248   : > { %v2299_v0 = vmax.f32 %v2292_v49, 0.0 }
 0x249   : > { %1437 = vst.msk [vmem:[#allocation2 + $0xc8] sm:$0xff] %vm700_vm1, %v1433_v52  ;;  %6302 = vmatmul.msk.f32.gmra.mxu1 %vm700_vm1, %v7925_v50  ;;  %6394 = vmatmul.msk.f32.gmra.mxu0 %vm700_vm1, %v7925_v50 }
 0x24a   : > { %1551 = vst.msk [vmem:[#allocation2 + $0xe0] sm:$0xff] %vm700_vm1, %v1547_v62  ;;  %6280 = vmatmul.msk.f32.gmra.mxu2 %vm700_vm1, %v2299_v0  ;;  %6335 = vmatmul.msk.f32.gmra.mxu3 %vm700_vm1, %v2361_v53  ;;  %v8010_v53 = vld [vmem:[#allocation2 + $0xb0] sm:$0xff] }
 0x24c   : > { %v1426_v3 = vpop.f32.mrf.mxu2  ;;  %v1538_v55 = vpop.f32.mrf.mxu3 }
 0x24d   : > { %v1427_v6 = vadd.f32 %v7899_v20, %v1426_v3  ;;  %v1539_v8 = vadd.f32 %v6849_v38, %v1538_v55  ;;  %v2294_v10 = vpop.f32.mrf.mxu0  ;;  %v6537_v55 = vld [vmem:[%s10057_s4 + $0x38] sm:$0xff] }
 0x24e   : > { %v2295_v57 = vadd.f32 %v7874_v5, %v2294_v10  ;;  %4272 = vmatpush.msrb.mxu3 %v6537_v55 }
 0x24f   : > { %v1434_v2 = vmax.f32 %v1427_v6, 0.0  ;;  %v1548_v4 = vmax.f32 %v1539_v8, 0.0  ;;  %v6485_v6 = vld [vmem:[%s10056_s3 + $0x118] sm:$0xff] }
 0x250   : > { %v2300_v7 = vmax.f32 %v2295_v57, 0.0  ;;  %3820 = vmatpush.msra.mxu1 %v6485_v6 }
 0x251   : > { %1438 = vst.msk [vmem:[#allocation2 + $0xd0] sm:$0xff] %vm700_vm1, %v1434_v2  ;;  %6303 = vmatmul.msk.f32.gmra.mxu1 %vm700_vm1, %v7937_v59  ;;  %6395 = vmatmul.msk.f32.gmra.mxu0 %vm700_vm1, %v7937_v59 }
 0x252   : > { %1552 = vst.msk [vmem:[#allocation2 + $0xe8] sm:$0xff] %vm700_vm1, %v1548_v4  ;;  %6281 = vmatmul.msk.f32.gmra.mxu2 %vm700_vm1, %v2300_v7  ;;  %6336 = vmatmul.msk.f32.gmra.mxu3 %vm700_vm1, %v2362_v13  ;;  %v8033_v7 = vld [vmem:[#allocation2 + $0xb8] sm:$0xff]  ;;  %v6853_v13 = vld [vmem:[%s10060_s7 + $0x1] ss:$0 sm:$0xff] }
 0x254   : > { %v1429_v5 = vpop.f32.mrf.mxu2  ;;  %v1541_v11 = vpop.f32.mrf.mxu3 }
 0x255   : > { %v1430_v12 = vadd.f32 %v7899_v20, %v1429_v5  ;;  %v1542_v14 = vadd.f32 %v6849_v38, %v1541_v11 }
 0x257   : > { %v1435_v17 = vmax.f32 %v1430_v12, 0.0  ;;  %v1549_v21 = vmax.f32 %v1542_v14, 0.0 }
 0x259   : > { %1439 = vst.msk [vmem:[#allocation2 + $0xd8] sm:$0xff] %vm700_vm1, %v1435_v17  ;;  %6304 = vmatmul.msk.f32.gmra.mxu1 %vm700_vm1, %v7951_v15  ;;  %6396 = vmatmul.msk.f32.gmra.mxu0 %vm700_vm1, %v7951_v15 }
 0x25a   : > { %1553 = vst.msk [vmem:[#allocation2 + $0xf0] sm:$0xff] %vm700_vm1, %v1549_v21  ;;  %6337 = vmatmul.msk.f32.gmra.mxu3 %vm700_vm1, %v2363_v22  ;;  %6438 = vmatmul.msk.f32.vlgmr.msra.gmra.mxu2 %vm700_vm1, %v7835_v48  ;;  %v8053_v21 = vld [vmem:[#allocation2 + $0xc0] sm:$0xff] }
 0x25c   : > { %v1544_v24 = vpop.f32.mrf.mxu3  ;;  %v1650_v25 = vpop.f32.mrf.mxu2 }
 0x25d   : > { %v1545_v27 = vadd.f32 %v6849_v38, %v1544_v24  ;;  %v1651_v30 = vadd.f32 %v6850_v23, %v1650_v25 }
 0x25f   : > { %v1550_v19 = vmax.f32 %v1545_v27, 0.0  ;;  %v1662_v20 = vmax.f32 %v1651_v30, 0.0 }
 0x261   : > { %1554 = vst.msk [vmem:[#allocation2 + $0xf8] sm:$0xff] %vm700_vm1, %v1550_v19  ;;  %6305 = vmatmul.msk.f32.gmra.mxu1 %vm700_vm1, %v7967_v32  ;;  %6397 = vmatmul.msk.f32.gmra.mxu0 %vm700_vm1, %v7967_v32  ;;  %v8067_v19 = vld [vmem:[#allocation2 + $0xc8] sm:$0xff] }
 0x262   : > { %1666 = vst.msk [vmem:[#allocation2 + $0x100] sm:$0xff] %vm700_vm1, %v1662_v20  ;;  %6338 = vmatmul.msk.f32.gmra.mxu3 %vm700_vm1, %v7588_v18  ;;  %6439 = vmatmul.msk.f32.gmra.mxu2 %vm700_vm1, %v7855_v58 }
 0x264   : > { %v1653_v35 = vpop.f32.mrf.mxu2  ;;  %v1765_v37 = vpop.f32.mrf.mxu3 }
 0x265   : > { %v1654_v29 = vadd.f32 %v6850_v23, %v1653_v35  ;;  %v1766_v28 = vadd.f32 %v6851_v34, %v1765_v37 }
 0x267   : > { %v1663_v40 = vmax.f32 %v1654_v29, 0.0  ;;  %v1777_v39 = vmax.f32 %v1766_v28, 0.0 }
 0x269   : > { %1667 = vst.msk [vmem:[#allocation2 + $0x108] sm:$0xff] %vm700_vm1, %v1663_v40  ;;  %6306 = vmatmul.msk.f32.gmra.mxu1 %vm700_vm1, %v7984_v60  ;;  %6398 = vmatmul.msk.f32.gmra.mxu0 %vm700_vm1, %v7984_v60  ;;  %v8081_v40 = vld [vmem:[#allocation2 + $0xd0] sm:$0xff] }
 0x26a   : > { %1781 = vst.msk [vmem:[#allocation2 + $0x120] sm:$0xff] %vm700_vm1, %v1777_v39  ;;  %6339 = vmatmul.msk.f32.gmra.mxu3 %vm700_vm1, %v7615_v33  ;;  %6440 = vmatmul.msk.f32.gmra.mxu2 %vm700_vm1, %v7886_v26  ;;  %v8003_v33 = vpop.f32.mrf.mxu1 }
 0x26c   : > { %v1656_v18 = vpop.f32.mrf.mxu2  ;;  %v1768_v45 = vpop.f32.mrf.mxu3 }
 0x26d   : > { %v1657_v46 = vadd.f32 %v6850_v23, %v1656_v18  ;;  %v1769_v38 = vadd.f32 %v6851_v34, %v1768_v45 }
 0x26f   : > { %v1664_v61 = vmax.f32 %v1657_v46, 0.0  ;;  %v1778_v63 = vmax.f32 %v1769_v38, 0.0 }
 0x271   : > { %1668 = vst.msk [vmem:[#allocation2 + $0x110] sm:$0xff] %vm700_vm1, %v1664_v61  ;;  %6307 = vmatmul.msk.f32.gmra.mxu1 %vm700_vm1, %v7996_v44  ;;  %6399 = vmatmul.msk.f32.gmra.mxu0 %vm700_vm1, %v7996_v44 }
 0x272   : > { %1782 = vst.msk [vmem:[#allocation2 + $0x128] sm:$0xff] %vm700_vm1, %v1778_v63  ;;  %6340 = vmatmul.msk.f32.gmra.mxu3 %vm700_vm1, %v7632_v47  ;;  %6441 = vmatmul.msk.f32.gmra.mxu2 %vm700_vm1, %v7910_v41  ;;  %v6852_v47 = vld [vmem:[%s10060_s7 + $0x1] ss:$0 sm:$0xff]  ;;  %v8025_v3 = vpop.f32.mrf.mxu1 }
 0x274   : > { %v1659_v1 = vpop.f32.mrf.mxu2  ;;  %v1771_v51 = vpop.f32.mrf.mxu3 }
 0x275   : > { %v1660_v49 = vadd.f32 %v6850_v23, %v1659_v1  ;;  %v1772_v52 = vadd.f32 %v6851_v34, %v1771_v51  ;;  %v8100_v51 = vld [vmem:[#allocation2 + $0xd8] sm:$0xff] }
 0x277   : > { %v1665_v62 = vmax.f32 %v1660_v49, 0.0  ;;  %v1779_v0 = vmax.f32 %v1772_v52, 0.0  ;;  %v6855_v52 = vld [vmem:[%s10060_s7 + $0x1] ss:$0 sm:$0xff] }
 0x279   : > { %1669 = vst.msk [vmem:[#allocation2 + $0x118] sm:$0xff] %vm700_vm1, %v1665_v62  ;;  %6308 = vmatmul.msk.f32.gmra.mxu1 %vm700_vm1, %v8010_v53  ;;  %6400 = vmatmul.msk.f32.gmra.mxu0 %vm700_vm1, %v8010_v53 }
 0x27a   : > { %1783 = vst.msk [vmem:[#allocation2 + $0x130] sm:$0xff] %vm700_vm1, %v1779_v0  ;;  %6341 = vmatmul.msk.f32.gmra.mxu3 %vm700_vm1, %v7656_v54  ;;  %6442 = vmatmul.msk.f32.gmra.mxu2 %vm700_vm1, %v7925_v50 }
 0x27c   : > { %v1774_v8 = vpop.f32.mrf.mxu3  ;;  %v1880_v10 = vpop.f32.mrf.mxu2 }
 0x27d   : > { %v1775_v57 = vadd.f32 %v6851_v34, %v1774_v8  ;;  %v1881_v2 = vadd.f32 %v6852_v47, %v1880_v10 }
 0x27f   : > { %v1780_v54 = vmax.f32 %v1775_v57, 0.0  ;;  %v1892_v4 = vmax.f32 %v1881_v2, 0.0  ;;  %v6484_v2 = vld [vmem:[%s10056_s3 + $0x110] sm:$0xff] }
 0x280   : > { %3821 = vmatpush.msra.mxu1 %v6484_v2  ;;  %v6536_v2 = vld [vmem:[%s10057_s4 + $0x30] sm:$0xff] }
 0x281   : > { %1784 = vst.msk [vmem:[#allocation2 + $0x138] sm:$0xff] %vm700_vm1, %v1780_v54  ;;  %6309 = vmatmul.msk.f32.gmra.mxu1 %vm700_vm1, %v8033_v7  ;;  %6401 = vmatmul.msk.f32.gmra.mxu0 %vm700_vm1, %v8033_v7 }
 0x282   : > { %1896 = vst.msk [vmem:[#allocation2 + $0x140] sm:$0xff] %vm700_vm1, %v1892_v4  ;;  %6342 = vmatmul.msk.f32.gmra.mxu3 %vm700_vm1, %v7732_v43  ;;  %6443 = vmatmul.msk.f32.gmra.mxu2 %vm700_vm1, %v7937_v59 }
 0x283   : > { %4273 = vmatpush.msrb.mxu3 %v6536_v2 }
 0x284   : > { %v1883_v5 = vpop.f32.mrf.mxu2 }
 0x285   : > { %v1884_v11 = vadd.f32 %v6852_v47, %v1883_v5  ;;  %v1995_v12 = vpop.f32.mrf.mxu3 }
 0x286   : > { %v1996_v14 = vadd.f32 %v6853_v13, %v1995_v12  ;;  %v8051_v17 = vpop.f32.mrf.mxu1  ;;  %v8096_v38 = vpop.f32.mrf.mxu0 }
 0x287   : > { %v1893_v43 = vmax.f32 %v1884_v11, 0.0 }
 0x288   : > { %v2007_v22 = vmax.f32 %v1996_v14, 0.0  ;;  %v8136_v14 = vld [vmem:[#allocation2 + $0xe8] sm:$0xff] }
 0x289   : > { %1897 = vst.msk [vmem:[#allocation2 + $0x148] sm:$0xff] %vm700_vm1, %v1893_v43  ;;  %6310 = vmatmul.msk.f32.gmra.mxu1 %vm700_vm1, %v8053_v21  ;;  %6402 = vmatmul.msk.f32.gmra.mxu0 %vm700_vm1, %v8053_v21 }
 0x28a   : > { %2011 = vst.msk [vmem:[#allocation2 + $0x160] sm:$0xff] %vm700_vm1, %v2007_v22  ;;  %6343 = vmatmul.msk.f32.gmra.mxu3 %vm700_vm1, %v7746_v56  ;;  %6444 = vmatmul.msk.f32.gmra.mxu2 %vm700_vm1, %v7951_v15 }
 0x28d   : > { %v1886_v23 = vpop.f32.mrf.mxu2  ;;  %v1998_v24 = vpop.f32.mrf.mxu3 }
 0x28e   : > { %v1887_v25 = vadd.f32 %v6852_v47, %v1886_v23  ;;  %v1999_v27 = vadd.f32 %v6853_v13, %v1998_v24  ;;  %v8065_v30 = vpop.f32.mrf.mxu1  ;;  %v8117_v8 = vpop.f32.mrf.mxu0 }
 0x290   : > { %v1894_v20 = vmax.f32 %v1887_v25, 0.0  ;;  %v2008_v34 = vmax.f32 %v1999_v27, 0.0 }
 0x291   : > { %6311 = vmatmul.msk.f32.gmra.mxu1 %vm700_vm1, %v8067_v19  ;;  %6403 = vmatmul.msk.f32.gmra.mxu0 %vm700_vm1, %v8067_v19 }
 0x292   : > { %1898 = vst.msk [vmem:[#allocation2 + $0x150] sm:$0xff] %vm700_vm1, %v1894_v20  ;;  %6344 = vmatmul.msk.f32.gmra.mxu3 %vm700_vm1, %v7774_v16  ;;  %6445 = vmatmul.msk.f32.gmra.mxu2 %vm700_vm1, %v7967_v32  ;;  %v6854_v16 = vld [vmem:[%s10060_s7 + $0x1] ss:$0 sm:$0xff] }
 0x293   : > { %2012 = vst.msk [vmem:[#allocation2 + $0x168] sm:$0xff] %vm700_vm1, %v2008_v34  ;;  %v8152_v34 = vld [vmem:[#allocation2 + $0xf0] sm:$0xff] }
 0x295   : > { %v1889_v56 = vpop.f32.mrf.mxu2  ;;  %v2001_v35 = vpop.f32.mrf.mxu3 }
 0x296   : > { %v1890_v37 = vadd.f32 %v6852_v47, %v1889_v56  ;;  %v2002_v29 = vadd.f32 %v6853_v13, %v2001_v35  ;;  %v8079_v28 = vpop.f32.mrf.mxu1 }
 0x298   : > { %v1895_v39 = vmax.f32 %v1890_v37, 0.0  ;;  %v2009_v18 = vmax.f32 %v2002_v29, 0.0 }
 0x299   : > { %6312 = vmatmul.msk.f32.gmra.mxu1 %vm700_vm1, %v8081_v40  ;;  %6404 = vmatmul.msk.f32.gmra.mxu0 %vm700_vm1, %v8081_v40 }
 0x29a   : > { %1899 = vst.msk [vmem:[#allocation2 + $0x158] sm:$0xff] %vm700_vm1, %v1895_v39  ;;  %6345 = vmatmul.msk.f32.gmra.mxu3 %vm700_vm1, %v7807_v36  ;;  %6446 = vmatmul.msk.f32.gmra.mxu2 %vm700_vm1, %v7984_v60 }
 0x29b   : > { %2013 = vst.msk [vmem:[#allocation2 + $0x170] sm:$0xff] %vm700_vm1, %v2009_v18 }
 0x29d   : > { %v2004_v45 = vpop.f32.mrf.mxu3  ;;  %v2110_v46 = vpop.f32.mrf.mxu2 }
 0x29e   : > { %v2005_v61 = vadd.f32 %v6853_v13, %v2004_v45  ;;  %v2111_v63 = vadd.f32 %v6854_v16, %v2110_v46  ;;  %v8098_v1 = vpop.f32.mrf.mxu1 }
 0x2a0   : > { %v2010_v36 = vmax.f32 %v2005_v61, 0.0  ;;  %v2122_v49 = vmax.f32 %v2111_v63, 0.0 }
 0x2a1   : > { %6313 = vmatmul.msk.f32.gmra.mxu1 %vm700_vm1, %v8100_v51  ;;  %6405 = vmatmul.msk.f32.gmra.mxu0 %vm700_vm1, %v8100_v51 }
 0x2a2   : > { %2014 = vst.msk [vmem:[#allocation2 + $0x178] sm:$0xff] %vm700_vm1, %v2010_v36  ;;  %6346 = vmatmul.msk.f32.gmra.mxu3 %vm700_vm1, %v7835_v48  ;;  %6447 = vmatmul.msk.f32.gmra.mxu2 %vm700_vm1, %v7996_v44  ;;  %v8119_v48 = vld [vmem:[#allocation2 + $0xe0] sm:$0xff] }
 0x2a3   : > { %2126 = vst.msk [vmem:[#allocation2 + $0x180] sm:$0xff] %vm700_vm1, %v2122_v49 }
 0x2a5   : > { %v2113_v62 = vpop.f32.mrf.mxu2  ;;  %v2225_v0 = vpop.f32.mrf.mxu3 }
 0x2a6   : > { %v2114_v47 = vadd.f32 %v6854_v16, %v2113_v62  ;;  %v2226_v55 = vadd.f32 %v6855_v52, %v2225_v0  ;;  %v8115_v6 = vpop.f32.mrf.mxu1  ;;  %v8188_v62 = vld [vmem:[#allocation2 + $0x100] sm:$0xff] }
 0x2a8   : > { %v2123_v10 = vmax.f32 %v2114_v47, 0.0  ;;  %v2237_v57 = vmax.f32 %v2226_v55, 0.0 }
 0x2a9   : > { %6314 = vmatmul.msk.f32.gmra.mxu1 %vm700_vm1, %v8119_v48  ;;  %6406 = vmatmul.msk.f32.gmra.mxu0 %vm700_vm1, %v8119_v48 }
 0x2aa   : > { %2127 = vst.msk [vmem:[#allocation2 + $0x188] sm:$0xff] %vm700_vm1, %v2123_v10  ;;  %6347 = vmatmul.msk.f32.gmra.mxu3 %vm700_vm1, %v7855_v58  ;;  %6448 = vmatmul.msk.f32.gmra.mxu2 %vm700_vm1, %v8010_v53  ;;  %v8142_v58 = vpop.f32.mrf.mxu0 }
 0x2ab   : > { %2241 = vst.msk [vmem:[#allocation2 + $0x1a0] sm:$0xff] %vm700_vm1, %v2237_v57  ;;  %v8203_v57 = vld [vmem:[#allocation2 + $0x108] sm:$0xff] }
 0x2ad   : > { %v2116_v54 = vpop.f32.mrf.mxu2  ;;  %v2228_v4 = vpop.f32.mrf.mxu3 }
 0x2ae   : > { %v2117_v13 = vadd.f32 %v6854_v16, %v2116_v54  ;;  %v2229_v9 = vadd.f32 %v6855_v52, %v2228_v4  ;;  %v8134_v5 = vpop.f32.mrf.mxu1 }
 0x2b0   : > { %v2124_v11 = vmax.f32 %v2117_v13, 0.0  ;;  %v2238_v12 = vmax.f32 %v2229_v9, 0.0 }
 0x2b1   : > { %6315 = vmatmul.msk.f32.gmra.mxu1 %vm700_vm1, %v8136_v14  ;;  %6407 = vmatmul.msk.f32.gmra.mxu0 %vm700_vm1, %v8136_v14 }
 0x2b2   : > { %2128 = vst.msk [vmem:[#allocation2 + $0x190] sm:$0xff] %vm700_vm1, %v2124_v11  ;;  %6348 = vmatmul.msk.f32.gmra.mxu3 %vm700_vm1, %v7886_v26  ;;  %6449 = vmatmul.msk.f32.gmra.mxu2 %vm700_vm1, %v8033_v7  ;;  %v6856_v26 = vld [vmem:[%s10060_s7 + $0x1] ss:$0 sm:$0xff]  ;;  %v8167_v56 = vpop.f32.mrf.mxu0 }
 0x2b3   : > { %2242 = vst.msk [vmem:[#allocation2 + $0x1a8] sm:$0xff] %vm700_vm1, %v2238_v12 }
 0x2b5   : > { %v2119_v43 = vpop.f32.mrf.mxu2  ;;  %v2231_v22 = vpop.f32.mrf.mxu3 }
 0x2b6   : > { %v2120_v23 = vadd.f32 %v6854_v16, %v2119_v43  ;;  %v2232_v24 = vadd.f32 %v6855_v52, %v2231_v22  ;;  %v8150_v25 = vpop.f32.mrf.mxu1  ;;  %v8224_v43 = vld [vmem:[#allocation2 + $0x110] sm:$0xff] }
 0x2b8   : > { %v2125_v27 = vmax.f32 %v2120_v23, 0.0  ;;  %v2239_v20 = vmax.f32 %v2232_v24, 0.0 }
 0x2b9   : > { %6316 = vmatmul.msk.f32.gmra.mxu1 %vm700_vm1, %v8152_v34  ;;  %6408 = vmatmul.msk.f32.gmra.mxu0 %vm700_vm1, %v8152_v34 }
 0x2ba   : > { %2129 = vst.msk [vmem:[#allocation2 + $0x198] sm:$0xff] %vm700_vm1, %v2125_v27  ;;  %6349 = vmatmul.msk.f32.gmra.mxu3 %vm700_vm1, %v7910_v41  ;;  %6450 = vmatmul.msk.f32.gmra.mxu2 %vm700_vm1, %v8053_v21  ;;  %v8171_v41 = vld [vmem:[#allocation2 + $0xf8] sm:$0xff]  ;;  %v8183_v63 = vpop.f32.mrf.mxu0 }
 0x2bb   : > { %2243 = vst.msk [vmem:[#allocation2 + $0x1b0] sm:$0xff] %vm700_vm1, %v2239_v20 }
 0x2bd   : > { %v2234_v35 = vpop.f32.mrf.mxu3  ;;  %v2340_v37 = vpop.f32.mrf.mxu2 }
 0x2be   : > { %v2235_v29 = vadd.f32 %v6855_v52, %v2234_v35  ;;  %v2341_v39 = vadd.f32 %v6856_v26, %v2340_v37  ;;  %v8169_v18 = vpop.f32.mrf.mxu1  ;;  %v8244_v35 = vld [vmem:[#allocation2 + $0x118] sm:$0xff] }
 0x2c0   : > { %v2240_v16 = vmax.f32 %v2235_v29, 0.0  ;;  %v2352_v45 = vmax.f32 %v2341_v39, 0.0 }
 0x2c1   : > { %6317 = vmatmul.msk.f32.gmra.mxu1 %vm700_vm1, %v8171_v41  ;;  %6409 = vmatmul.msk.f32.gmra.mxu0 %vm700_vm1, %v8171_v41 }
 0x2c2   : > { %2244 = vst.msk [vmem:[#allocation2 + $0x1b8] sm:$0xff] %vm700_vm1, %v2240_v16  ;;  %6350 = vmatmul.msk.f32.gmra.mxu3 %vm700_vm1, %v7925_v50  ;;  %6451 = vmatmul.msk.f32.gmra.mxu2 %vm700_vm1, %v8067_v19  ;;  %v3084_v54 = vpop.f32.mrf.mxu0 }
 0x2c3   : > { %2356 = vst.msk [vmem:[#allocation2 + $0x1c0] sm:$0xff] %vm700_vm1, %v2352_v45  ;;  %v8260_v45 = vld [vmem:[#allocation2 + $0x120] sm:$0xff] }
 0x2c5   : > { %v2343_v46 = vpop.f32.mrf.mxu2  ;;  %v2735_v61 = vpop.f32.mrf.mxu3 }
 0x2c6   : > { %v2344_v36 = vadd.f32 %v6856_v26, %v2343_v46  ;;  %v2736_v49 = vadd.f32 %v2735_v61, %v7965_v31  ;;  %v8186_v52 = vpop.f32.mrf.mxu1 }
 0x2c8   : > { %v2353_v0 = vmax.f32 %v2344_v36, 0.0  ;;  %v3201_v47 = vadd.f32 %v8096_v38, %v2736_v49 }
 0x2c9   : > { %6318 = vmatmul.msk.f32.gmra.mxu1 %vm700_vm1, %v8188_v62  ;;  %6410 = vmatmul.msk.f32.gmra.mxu0 %vm700_vm1, %v8188_v62 }
 0x2ca   : > { %2357 = vst.msk [vmem:[#allocation2 + $0x1c8] sm:$0xff] %vm700_vm1, %v2353_v0  ;;  %6351 = vmatmul.msk.f32.gmra.mxu3 %vm700_vm1, %v7937_v59  ;;  %6452 = vmatmul.msk.f32.gmra.mxu2 %vm700_vm1, %v8081_v40  ;;  %v3087_v24 = vpop.f32.mrf.mxu0 }
 0x2cd   : > { %v2346_v50 = vpop.f32.mrf.mxu2  ;;  %v2738_v31 = vpop.f32.mrf.mxu3 }
 0x2ce   : > { %v2347_v55 = vadd.f32 %v6856_v26, %v2346_v50  ;;  %v2739_v10 = vadd.f32 %v2738_v31, %v7982_v42  ;;  %v8201_v38 = vpop.f32.mrf.mxu1  ;;  %v6483_v42 = vld [vmem:[%s10056_s3 + $0x108] sm:$0xff] }
 0x2cf   : > { %3822 = vmatpush.msra.mxu1 %v6483_v42 }
 0x2d0   : > { %v2354_v4 = vmax.f32 %v2347_v55, 0.0  ;;  %v3202_v59 = vadd.f32 %v8117_v8, %v2739_v10 }
 0x2d1   : > { %6319 = vmatmul.msk.f32.gmra.mxu1 %vm700_vm1, %v8203_v57  ;;  %6411 = vmatmul.msk.f32.gmra.mxu0 %vm700_vm1, %v8203_v57 }
 0x2d2   : > { %2358 = vst.msk [vmem:[#allocation2 + $0x1d0] sm:$0xff] %vm700_vm1, %v2354_v4  ;;  %6352 = vmatmul.msk.f32.gmra.mxu3 %vm700_vm1, %v7951_v15  ;;  %6453 = vmatmul.msk.f32.gmra.mxu2 %vm700_vm1, %v8100_v51  ;;  %v4165_v15 = vld [vmem:[%s10057_s4 + $0x10] sm:$0xff] }
 0x2d3   : > { %4386 = vmatpush.msra.mxu0 %v4165_v15  ;;  %v8291_v4 = vld [vmem:[#allocation2 + $0x130] sm:$0xff]  ;;  %v8309_v15 = vld [vmem:[#allocation2 + $0x138] sm:$0xff] }
 0x2d5   : > { %v2349_v8 = vpop.f32.mrf.mxu2  ;;  %v2741_v13 = vpop.f32.mrf.mxu3 }
 0x2d6   : > { %v2350_v9 = vadd.f32 %v6856_v26, %v2349_v8  ;;  %v2742_v11 = vadd.f32 %v2741_v13, %v8003_v33  ;;  %v8222_v12 = vpop.f32.mrf.mxu1 }
 0x2d8   : > { %v2355_v22 = vmax.f32 %v2350_v9, 0.0  ;;  %v3203_v23 = vadd.f32 %v8142_v58, %v2742_v11  ;;  %v6482_v11 = vld [vmem:[%s10056_s3 + $0x100] sm:$0xff] }
 0x2d9   : > { %6320 = vmatmul.msk.f32.gmra.mxu1 %vm700_vm1, %v8224_v43  ;;  %6412 = vmatmul.msk.f32.gmra.mxu0 %vm700_vm1, %v8224_v43 }
 0x2da   : > { %2359 = vst.msk [vmem:[#allocation2 + $0x1d8] sm:$0xff] %vm700_vm1, %v2355_v22  ;;  %6353 = vmatmul.msk.f32.gmra.mxu3 %vm700_vm1, %v7967_v32  ;;  %6454 = vmatmul.msk.f32.gmra.mxu2 %vm700_vm1, %v8119_v48  ;;  %v3090_v32 = vpop.f32.mrf.mxu0 }
 0x2db   : > { %3823 = vmatpush.msra.mxu1 %v6482_v11 }
 0x2dd   : > { %v2744_v33 = vpop.f32.mrf.mxu3  ;;  %v3447_v27 = vpop.f32.mrf.mxu2 }
 0x2de   : > { %v2745_v20 = vadd.f32 %v2744_v33, %v8025_v3  ;;  %v8240_v58 = vadd.f32 %v3447_v27, %v3201_v47  ;;  %v8242_v26 = vpop.f32.mrf.mxu1  ;;  %v8276_v47 = vld [vmem:[#allocation2 + $0x128] sm:$0xff] }
 0x2e0   : > { %v3204_v37 = vadd.f32 %v8167_v56, %v2745_v20 }
 0x2e1   : > { %6321 = vmatmul.msk.f32.gmra.mxu1 %vm700_vm1, %v8244_v35  ;;  %6413 = vmatmul.msk.f32.gmra.mxu0 %vm700_vm1, %v8244_v35 }
 0x2e2   : > { %6354 = vmatmul.msk.f32.gmra.mxu3 %vm700_vm1, %v7984_v60  ;;  %6455 = vmatmul.msk.f32.gmra.mxu2 %vm700_vm1, %v8136_v14  ;;  %v3093_v36 = vpop.f32.mrf.mxu0 }
 0x2e5   : > { %v2747_v3 = vpop.f32.mrf.mxu3  ;;  %v3450_v29 = vpop.f32.mrf.mxu2 }
 0x2e6   : > { %v2748_v39 = vadd.f32 %v2747_v3, %v8051_v17  ;;  %v8256_v16 = vadd.f32 %v3450_v29, %v3202_v59  ;;  %v8258_v56 = vpop.f32.mrf.mxu1 }
 0x2e8   : > { %v3205_v46 = vadd.f32 %v8183_v63, %v2748_v39 }
 0x2e9   : > { %6322 = vmatmul.msk.f32.gmra.mxu1 %vm700_vm1, %v8260_v45  ;;  %6414 = vmatmul.msk.f32.gmra.mxu0 %vm700_vm1, %v8260_v45 }
 0x2ea   : > { %6355 = vmatmul.msk.f32.gmra.mxu3 %vm700_vm1, %v7996_v44  ;;  %6456 = vmatmul.msk.f32.gmra.mxu2 %vm700_vm1, %v8152_v34 }
 0x2ed   : > { %v2750_v17 = vpop.f32.mrf.mxu3  ;;  %v3453_v61 = vpop.f32.mrf.mxu2 }
 0x2ee   : > { %v2751_v49 = vadd.f32 %v2750_v17, %v8065_v30  ;;  %v8272_v0 = vadd.f32 %v3453_v61, %v3203_v23  ;;  %v8274_v63 = vpop.f32.mrf.mxu1  ;;  %v8339_v61 = vld [vmem:[#allocation2 + $0x148] sm:$0xff] }
 0x2f0   : > { %v3206_v50 = vadd.f32 %v3084_v54, %v2751_v49  ;;  %v3096_v54 = vpop.f32.mrf.mxu0 }
 0x2f1   : > { %6323 = vmatmul.msk.f32.gmra.mxu1 %vm700_vm1, %v8276_v47  ;;  %6415 = vmatmul.msk.f32.gmra.mxu0 %vm700_vm1, %v8276_v47 }
 0x2f2   : > { %6356 = vmatmul.msk.f32.gmra.mxu3 %vm700_vm1, %v8010_v53  ;;  %6457 = vmatmul.msk.f32.gmra.mxu2 %vm700_vm1, %v8171_v41 }
 0x2f5   : > { %v2753_v30 = vpop.f32.mrf.mxu3  ;;  %v3456_v31 = vpop.f32.mrf.mxu2 }
 0x2f6   : > { %v2754_v55 = vadd.f32 %v2753_v30, %v8079_v28  ;;  %v8287_v10 = vadd.f32 %v3456_v31, %v3204_v37  ;;  %v8289_v2 = vpop.f32.mrf.mxu1  ;;  %v8324_v37 = vld [vmem:[#allocation2 + $0x140] sm:$0xff] }
 0x2f8   : > { %v3207_v59 = vadd.f32 %v3087_v24, %v2754_v55  ;;  %v3099_v23 = vpop.f32.mrf.mxu0 }
 0x2f9   : > { %6324 = vmatmul.msk.f32.gmra.mxu1 %vm700_vm1, %v8291_v4  ;;  %6416 = vmatmul.msk.f32.gmra.mxu0 %vm700_vm1, %v8291_v4 }
 0x2fa   : > { %6357 = vmatmul.msk.f32.gmra.mxu3 %vm700_vm1, %v8033_v7  ;;  %6458 = vmatmul.msk.f32.gmra.mxu2 %vm700_vm1, %v8188_v62 }
 0x2fd   : > { %v2756_v28 = vpop.f32.mrf.mxu3  ;;  %v3459_v42 = vpop.f32.mrf.mxu2 }
 0x2fe   : > { %v2757_v8 = vadd.f32 %v2756_v28, %v8098_v1  ;;  %v8302_v13 = vadd.f32 %v3459_v42, %v3205_v46  ;;  %v8304_v9 = vpop.f32.mrf.mxu1 }
 0x300   : > { %v3208_v22 = vadd.f32 %v3090_v32, %v2757_v8 }
 0x301   : > { %6325 = vmatmul.msk.f32.gmra.mxu1 %vm700_vm1, %v8309_v15  ;;  %6417 = vmatmul.msk.f32.gmra.mxu0 %vm700_vm1, %v8309_v15 }
 0x302   : > { %6358 = vmatmul.msk.f32.gmra.mxu3 %vm700_vm1, %v8053_v21  ;;  %6459 = vmatmul.msk.f32.gmra.mxu2 %vm700_vm1, %v8203_v57 }
 0x305   : > { %v2759_v1 = vpop.f32.mrf.mxu3  ;;  %v3462_v24 = vpop.f32.mrf.mxu2 }
 0x306   : > { %v2760_v33 = vadd.f32 %v2759_v1, %v8115_v6  ;;  %v8320_v27 = vadd.f32 %v3462_v24, %v3206_v50  ;;  %v8322_v20 = vpop.f32.mrf.mxu1  ;;  %v3102_v6 = vpop.f32.mrf.mxu0 }
 0x307   : > { %10066 = vst [vmem:[#allocation7_spill] sm:$0xff] %v8322_v20  ;;  %v8504_v20 = vld [vmem:[#allocation2 + $0x198] sm:$0xff] }
 0x308   : > { %v3209_v32 = vadd.f32 %v3093_v36, %v2760_v33 }
 0x309   : > { %6326 = vmatmul.msk.f32.gmra.mxu1 %vm700_vm1, %v8324_v37  ;;  %6418 = vmatmul.msk.f32.gmra.mxu0 %vm700_vm1, %v8324_v37 }
 0x30a   : > { %6359 = vmatmul.msk.f32.gmra.mxu3 %vm700_vm1, %v8067_v19  ;;  %6460 = vmatmul.msk.f32.gmra.mxu2 %vm700_vm1, %v8224_v43 }
 0x30d   : > { %v2762_v3 = vpop.f32.mrf.mxu3  ;;  %v3465_v29 = vpop.f32.mrf.mxu2 }
 0x30e   : > { %v2763_v39 = vadd.f32 %v2762_v3, %v8134_v5  ;;  %v8335_v46 = vadd.f32 %v3465_v29, %v3207_v59  ;;  %v8337_v17 = vpop.f32.mrf.mxu1  ;;  %v3105_v50 = vpop.f32.mrf.mxu0  ;;  %v8387_v29 = vld [vmem:[#allocation2 + $0x160] sm:$0xff] }
 0x30f   : > { %10067 = vst [vmem:[#allocation8_spill] sm:$0xff] %v8337_v17  ;;  %v8488_v17 = vld [vmem:[#allocation2 + $0x190] sm:$0xff] }
 0x310   : > { %v3210_v36 = vadd.f32 %v3096_v54, %v2763_v39  ;;  %v8354_v54 = vld [vmem:[#allocation2 + $0x150] sm:$0xff] }
 0x311   : > { %6327 = vmatmul.msk.f32.gmra.mxu1 %vm700_vm1, %v8339_v61  ;;  %6419 = vmatmul.msk.f32.gmra.mxu0 %vm700_vm1, %v8339_v61 }
 0x312   : > { %6360 = vmatmul.msk.f32.gmra.mxu3 %vm700_vm1, %v8081_v40  ;;  %6461 = vmatmul.msk.f32.gmra.mxu2 %vm700_vm1, %v8244_v35 }
 0x315   : > { %v2765_v5 = vpop.f32.mrf.mxu3  ;;  %v3468_v49 = vpop.f32.mrf.mxu2 }
 0x316   : > { %v2766_v30 = vadd.f32 %v2765_v5, %v8150_v25  ;;  %v8350_v31 = vadd.f32 %v3468_v49, %v3208_v22  ;;  %v8352_v55 = vpop.f32.mrf.mxu1  ;;  %v8369_v22 = vld [vmem:[#allocation2 + $0x158] sm:$0xff] }
 0x317   : > { %10068 = vst [vmem:[#allocation9_spill] sm:$0xff] %v8352_v55 }
 0x318   : > { %v3211_v59 = vadd.f32 %v3099_v23, %v2766_v30  ;;  %v3108_v23 = vpop.f32.mrf.mxu0 }
 0x319   : > { %6328 = vmatmul.msk.f32.gmra.mxu1 %vm700_vm1, %v8354_v54  ;;  %6420 = vmatmul.msk.f32.gmra.mxu0 %vm700_vm1, %v8354_v54 }
 0x31a   : > { %6361 = vmatmul.msk.f32.gmra.mxu3 %vm700_vm1, %v8100_v51  ;;  %6462 = vmatmul.msk.f32.gmra.mxu2 %vm700_vm1, %v8260_v45 }
 0x31d   : > { %v2768_v25 = vpop.f32.mrf.mxu3  ;;  %v3471_v28 = vpop.f32.mrf.mxu2 }
 0x31e   : > { %v2769_v42 = vadd.f32 %v2768_v25, %v8169_v18  ;;  %v8365_v8 = vadd.f32 %v3471_v28, %v3209_v32  ;;  %v8367_v11 = vpop.f32.mrf.mxu1  ;;  %v4164_v28 = vld [vmem:[%s10057_s4 + $0x8] sm:$0xff] }
 0x31f   : > { %10069 = vst [vmem:[#allocation10_spill] sm:$0xff] %v8367_v11  ;;  %4387 = vmatpush.msra.mxu0 %v4164_v28 }
 0x320   : > { %v3212_v1 = vadd.f32 %v3102_v6, %v2769_v42  ;;  %v6535_v6 = vld [vmem:[%s10057_s4 + $0x28] sm:$0xff]  ;;  %v3111_v5 = vpop.f32.mrf.mxu0 }
 0x321   : > { %6329 = vmatmul.msk.f32.gmra.mxu1 %vm700_vm1, %v8369_v22  ;;  %6421 = vmatmul.msk.f32.gmra.mxu0 %vm700_vm1, %v8369_v22  ;;  %v8408_v42 = vld [vmem:[#allocation2 + $0x168] sm:$0xff] }
 0x322   : > { %6362 = vmatmul.msk.f32.gmra.mxu3 %vm700_vm1, %v8119_v48  ;;  %6463 = vmatmul.msk.f32.gmra.mxu2 %vm700_vm1, %v8276_v47 }
 0x323   : > { %4274 = vmatpush.msrb.mxu3 %v6535_v6 }
 0x325   : > { %v2771_v18 = vpop.f32.mrf.mxu3  ;;  %v3474_v24 = vpop.f32.mrf.mxu2 }
 0x326   : > { %v2772_v33 = vadd.f32 %v2771_v18, %v8186_v52  ;;  %v8380_v32 = vadd.f32 %v3474_v24, %v3210_v36  ;;  %v8382_v3 = vpop.f32.mrf.mxu1  ;;  %v6597_v52 = vld [vmem:[%s10057_s4 + $0x58] sm:$0xff] }
 0x327   : > { %10070 = vst [vmem:[#allocation11_spill] sm:$0xff] %v8382_v3  ;;  %4603 = vmatpush.msrb.mxu2 %v6597_v52  ;;  %v8423_v52 = vld [vmem:[#allocation2 + $0x170] sm:$0xff] }
 0x328   : > { %v3213_v39 = vadd.f32 %v3105_v50, %v2772_v33 }
 0x329   : > { %6330 = vmatmul.msk.f32.gmra.mxu1 %vm700_vm1, %v8387_v29  ;;  %6422 = vmatmul.msk.f32.gmra.mxu0 %vm700_vm1, %v8387_v29 }
 0x32a   : > { %6363 = vmatmul.msk.f32.gmra.mxu3 %vm700_vm1, %v8136_v14  ;;  %6464 = vmatmul.msk.f32.gmra.mxu2 %vm700_vm1, %v8291_v4 }
 0x32d   : > { %v2774_v36 = vpop.f32.mrf.mxu3  ;;  %v3477_v49 = vpop.f32.mrf.mxu2 }
 0x32e   : > { %v2775_v50 = vadd.f32 %v2774_v36, %v8201_v38  ;;  %v8401_v30 = vadd.f32 %v3477_v49, %v3211_v59  ;;  %v8403_v25 = vpop.f32.mrf.mxu1  ;;  %v3114_v38 = vpop.f32.mrf.mxu0 }
 0x32f   : > { %10071 = vst [vmem:[#allocation12_spill] sm:$0xff] %v8403_v25 }
 0x330   : > { %v3214_v18 = vadd.f32 %v3108_v23, %v2775_v50 }
 0x331   : > { %6331 = vmatmul.msk.f32.gmra.mxu1 %vm700_vm1, %v8408_v42  ;;  %6423 = vmatmul.msk.f32.gmra.mxu0 %vm700_vm1, %v8408_v42 }
 0x332   : > { %6364 = vmatmul.msk.f32.gmra.mxu3 %vm700_vm1, %v8152_v34  ;;  %6465 = vmatmul.msk.f32.gmra.mxu2 %vm700_vm1, %v8309_v15 }
 0x335   : > { %v2777_v59 = vpop.f32.mrf.mxu3  ;;  %v3480_v24 = vpop.f32.mrf.mxu2 }
 0x336   : > { %v2778_v33 = vadd.f32 %v2777_v59, %v8222_v12  ;;  %v8419_v6 = vadd.f32 %v3480_v24, %v3212_v1  ;;  %v8421_v23 = vpop.f32.mrf.mxu1  ;;  %v3117_v49 = vpop.f32.mrf.mxu0  ;;  %v8438_v59 = vld [vmem:[#allocation2 + $0x178] sm:$0xff] }
 0x337   : > { %10072 = vst [vmem:[#allocation13_spill] sm:$0xff] %v8421_v23  ;;  %v8461_v23 = vld [vmem:[#allocation2 + $0x180] sm:$0xff] }
 0x338   : > { %v3215_v36 = vadd.f32 %v3111_v5, %v2778_v33 }
 0x339   : > { %6332 = vmatmul.msk.f32.gmra.mxu1 %vm700_vm1, %v8423_v52  ;;  %6424 = vmatmul.msk.f32.gmra.mxu0 %vm700_vm1, %v8423_v52 }
 0x33a   : > { %6365 = vmatmul.msk.f32.gmra.mxu3 %vm700_vm1, %v8171_v41  ;;  %6466 = vmatmul.msk.f32.gmra.mxu2 %vm700_vm1, %v8324_v37 }
 0x33d   : > { %v2780_v12 = vpop.f32.mrf.mxu3  ;;  %v3483_v1 = vpop.f32.mrf.mxu2 }
 0x33e   : > { %v2781_v50 = vadd.f32 %v2780_v12, %v8242_v26  ;;  %v8434_v28 = vadd.f32 %v3483_v1, %v3213_v39  ;;  %v8436_v5 = vpop.f32.mrf.mxu1  ;;  %v3120_v12 = vpop.f32.mrf.mxu0  ;;  %v3623_v1 = vld [vmem:[#allocation2 + $0x80] sm:$0xff] }
 0x33f   : > { %10073 = vst [vmem:[#allocation14_spill] sm:$0xff] %v8436_v5 }
 0x340   : > { %v3216_v24 = vadd.f32 %v3114_v38, %v2781_v50 }
 0x341   : > { %6333 = vmatmul.msk.f32.gmra.mxu1 %vm700_vm1, %v8438_v59  ;;  %6425 = vmatmul.msk.f32.gmra.mxu0 %vm700_vm1, %v8438_v59 }
 0x342   : > { %6366 = vmatmul.msk.f32.gmra.mxu3 %vm700_vm1, %v8188_v62  ;;  %6467 = vmatmul.msk.f32.gmra.mxu2 %vm700_vm1, %v8339_v61 }
 0x345   : > { %v3486_v26 = vpop.f32.mrf.mxu2 }
 0x346   : > { %v8448_v39 = vadd.f32 %v3486_v26, %v3214_v18  ;;  %v8450_v33 = vpop.f32.mrf.mxu1  ;;  %v2783_v18 = vpop.f32.mrf.mxu3  ;;  %v3624_v26 = vld [vmem:[#allocation2 + $0x88] sm:$0xff] }
 0x347   : > { %10074 = vst [vmem:[#allocation15_spill] sm:$0xff] %v8450_v33  ;;  %v8474_v33 = vld [vmem:[#allocation2 + $0x188] sm:$0xff]  ;;  %v2784_v25 = vadd.f32 %v2783_v18, %v8258_v56  ;;  %v3626_v18 = vld [vmem:[#allocation2 + $0x98] sm:$0xff] }
 0x349   : > { %6490 = vmatmul.msk.f32.vlgmr.msra.gmra.mxu1 %vm700_vm1, %v3623_v1  ;;  %6426 = vmatmul.msk.f32.gmra.mxu0 %vm700_vm1, %v8461_v23  ;;  %v3123_v1 = vpop.f32.mrf.mxu0 }
 0x34a   : > { %6367 = vmatmul.msk.f32.gmra.mxu3 %vm700_vm1, %v8203_v57  ;;  %6468 = vmatmul.msk.f32.gmra.mxu2 %vm700_vm1, %v8354_v54 }
 0x34d   : > { %v3489_v38 = vpop.f32.mrf.mxu2 }
 0x34e   : > { %v8457_v50 = vadd.f32 %v3489_v38, %v3215_v36  ;;  %v8459_v5 = vpop.f32.mrf.mxu1  ;;  %v2786_v3 = vpop.f32.mrf.mxu3 }
 0x34f   : > { %10075 = vst [vmem:[#allocation16_spill] sm:$0xff] %v8459_v5  ;;  %v2787_v56 = vadd.f32 %v2786_v3, %v8274_v63 }
 0x351   : > { %6491 = vmatmul.msk.f32.gmra.mxu1 %vm700_vm1, %v3624_v26  ;;  %6427 = vmatmul.msk.f32.gmra.mxu0 %vm700_vm1, %v8474_v33  ;;  %v3625_v26 = vld [vmem:[#allocation2 + $0x90] sm:$0xff] }
 0x352   : > { %6368 = vmatmul.msk.f32.gmra.mxu3 %vm700_vm1, %v8224_v43  ;;  %6469 = vmatmul.msk.f32.gmra.mxu2 %vm700_vm1, %v8369_v22 }
 0x355   : > { %v3492_v36 = vpop.f32.mrf.mxu2 }
 0x356   : > { %v8470_v38 = vadd.f32 %v3492_v36, %v3216_v24  ;;  %v8472_v5 = vpop.f32.mrf.mxu1  ;;  %v3126_v24 = vpop.f32.mrf.mxu0  ;;  %v3217_v36 = vadd.f32 %v3117_v49, %v2784_v25  ;;  %v3218_v49 = vadd.f32 %v3120_v12, %v2787_v56 }
 0x357   : > { %10076 = vst [vmem:[#allocation17_spill] sm:$0xff] %v8472_v5  ;;  %v2789_v25 = vpop.f32.mrf.mxu3 }
 0x358   : > { %v2790_v63 = vadd.f32 %v2789_v25, %v8289_v2 }
 0x359   : > { %6492 = vmatmul.msk.f32.gmra.mxu1 %vm700_vm1, %v3625_v26  ;;  %6428 = vmatmul.msk.f32.gmra.mxu0 %vm700_vm1, %v8488_v17 }
 0x35a   : > { %6369 = vmatmul.msk.f32.gmra.mxu3 %vm700_vm1, %v8244_v35  ;;  %6470 = vmatmul.msk.f32.gmra.mxu2 %vm700_vm1, %v8387_v29  ;;  %v3219_v3 = vadd.f32 %v3123_v1, %v2790_v63 }
 0x35d   : > { %v3495_v5 = vpop.f32.mrf.mxu2 }
 0x35e   : > { %v8484_v11 = vadd.f32 %v3495_v5, %v3217_v36  ;;  %v8486_v55 = vpop.f32.mrf.mxu1  ;;  %v8498_v26 = vpop.f32.mrf.mxu0 }
 0x35f   : > { %10077 = vst [vmem:[#allocation18_spill] sm:$0xff] %v8486_v55  ;;  %v2792_v12 = vpop.f32.mrf.mxu3 }
 0x360   : > { %v2793_v2 = vadd.f32 %v2792_v12, %v8304_v9  ;;  %v6534_v9 = vld [vmem:[%s10057_s4 + $0x20] sm:$0xff] }
 0x361   : > { %6493 = vmatmul.msk.f32.gmra.mxu1 %vm700_vm1, %v3626_v18  ;;  %6429 = vmatmul.msk.f32.gmra.mxu0 %vm700_vm1, %v8504_v20 }
 0x362   : > { %6370 = vmatmul.msk.f32.gmra.mxu3 %vm700_vm1, %v8260_v45  ;;  %6471 = vmatmul.msk.f32.gmra.mxu2 %vm700_vm1, %v8408_v42 }
 0x363   : > { %4275 = vmatpush.msrb.mxu3 %v6534_v9 }
 0x365   : > { %v3498_v5 = vpop.f32.mrf.mxu2 }
 0x366   : > { %v8500_v36 = vadd.f32 %v3498_v5, %v3218_v49  ;;  %v8502_v55 = vpop.f32.mrf.mxu1  ;;  %v8519_v5 = vpop.f32.mrf.mxu0 }
 0x367   : > { %10078 = vst [vmem:[#allocation19_spill] sm:$0xff] %v8502_v55 }
 0x369   : > { %6494 = vmatmul.msk.f32.gmra.mxu1 %vm700_vm1, %v7984_v60  ;;  %v3220_v60 = vadd.f32 %v3126_v24, %v2793_v2 }
 0x36a   : > { %6371 = vmatmul.msk.f32.gmra.mxu3 %vm700_vm1, %v8276_v47  ;;  %6472 = vmatmul.msk.f32.gmra.mxu2 %vm700_vm1, %v8423_v52 }
 0x36d   : > { %v3501_v56 = vpop.f32.mrf.mxu2 }
 0x36e   : > { %v8515_v18 = vadd.f32 %v3501_v56, %v3219_v3  ;;  %v8517_v49 = vpop.f32.mrf.mxu1  ;;  %v8534_v3 = vpop.f32.mrf.mxu0  ;;  %v4163_v56 = vld [vmem:[%s10057_s4] sm:$0xff] }
 0x36f   : > { %10079 = vst [vmem:[#allocation20_spill] sm:$0xff] %v8517_v49  ;;  %4388 = vmatpush.msra.mxu0 %v4163_v56  ;;  %v8621_v49 = vld [vmem:[#allocation2 + $0x1b8] sm:$0xff] }
 0x370   : > { %10093 = vst [vmem:[#allocation34_spill] sm:$0xff] %v8621_v49 }
 0x371   : > { %6495 = vmatmul.msk.f32.gmra.mxu1 %vm700_vm1, %v7996_v44 }
 0x372   : > { %6372 = vmatmul.msk.f32.gmra.mxu3 %vm700_vm1, %v8291_v4  ;;  %6473 = vmatmul.msk.f32.gmra.mxu2 %vm700_vm1, %v8438_v59 }
 0x375   : > { %v3504_v1 = vpop.f32.mrf.mxu2 }
 0x376   : > { %v8528_v25 = vadd.f32 %v3504_v1, %v3220_v60  ;;  %v8530_v63 = vpop.f32.mrf.mxu1  ;;  %v8554_v24 = vpop.f32.mrf.mxu0 }
 0x377   : > { %10080 = vst [vmem:[#allocation21_spill] sm:$0xff] %v8530_v63 }
 0x378   : > { %10082 = vst [vmem:[#allocation23_spill] sm:$0xff] %v8554_v24 }
 0x379   : > { %6496 = vmatmul.msk.f32.gmra.mxu1 %vm700_vm1, %v8010_v53  ;;  %v6596_v53 = vld [vmem:[%s10057_s4 + $0x50] sm:$0xff] }
 0x37a   : > { %6373 = vmatmul.msk.f32.gmra.mxu3 %vm700_vm1, %v8309_v15  ;;  %6474 = vmatmul.msk.f32.gmra.mxu2 %vm700_vm1, %v8461_v23 }
 0x37b   : > { %4604 = vmatpush.msrb.mxu2 %v6596_v53  ;;  %v8585_v53 = vld [vmem:[#allocation2 + $0x1a0] sm:$0xff] }
 0x37e   : > { %v8540_v44 = vpop.f32.mrf.mxu1  ;;  %v8569_v2 = vpop.f32.mrf.mxu0 }
 0x37f   : > { %10081 = vst [vmem:[#allocation22_spill] sm:$0xff] %v8540_v44  ;;  %v8609_v44 = vld [vmem:[#allocation2 + $0x1b0] sm:$0xff] }
 0x380   : > { %10084 = vst [vmem:[#allocation25_spill] sm:$0xff] %v8569_v2 }
 0x381   : > { %6497 = vmatmul.msk.f32.gmra.mxu1 %vm700_vm1, %v8033_v7  ;;  %v8563_v7 = vpop.f32.mrf.mxu3 }
 0x382   : > { %6374 = vmatmul.msk.f32.gmra.mxu3 %vm700_vm1, %v8324_v37  ;;  %6475 = vmatmul.msk.f32.gmra.mxu2 %vm700_vm1, %v8474_v33 }
 0x386   : > { %v8556_v12 = vpop.f32.mrf.mxu1  ;;  %v8583_v9 = vpop.f32.mrf.mxu0 }
 0x387   : > { %10083 = vst [vmem:[#allocation24_spill] sm:$0xff] %v8556_v12 }
 0x388   : > { %10087 = vst [vmem:[#allocation28_spill] sm:$0xff] %v8583_v9 }
 0x389   : > { %6498 = vmatmul.msk.f32.gmra.mxu1 %vm700_vm1, %v8053_v21  ;;  %v8579_v21 = vpop.f32.mrf.mxu3 }
 0x38a   : > { %6375 = vmatmul.msk.f32.gmra.mxu3 %vm700_vm1, %v8339_v61  ;;  %6476 = vmatmul.msk.f32.gmra.mxu2 %vm700_vm1, %v8488_v17 }
 0x38e   : > { %v8571_v60 = vpop.f32.mrf.mxu1 }
 0x38f   : > { %10085 = vst [vmem:[#allocation26_spill] sm:$0xff] %v8571_v60  ;;  %v8597_v60 = vld [vmem:[#allocation2 + $0x1a8] sm:$0xff] }
 0x391   : > { %6499 = vmatmul.msk.f32.gmra.mxu1 %vm700_vm1, %v8067_v19  ;;  %v8593_v19 = vpop.f32.mrf.mxu3 }
 0x392   : > { %6376 = vmatmul.msk.f32.gmra.mxu3 %vm700_vm1, %v8354_v54  ;;  %6477 = vmatmul.msk.f32.gmra.mxu2 %vm700_vm1, %v8504_v20 }
 0x396   : > { %v8581_v1 = vpop.f32.mrf.mxu1 }
 0x397   : > { %10086 = vst [vmem:[#allocation27_spill] sm:$0xff] %v8581_v1  ;;  %v8601_v1 = vpop.f32.mrf.mxu0 }
 0x398   : > { %10089 = vst [vmem:[#allocation30_spill] sm:$0xff] %v8601_v1 }
 0x399   : > { %6500 = vmatmul.msk.f32.gmra.mxu1 %vm700_vm1, %v8081_v40  ;;  %v8607_v12 = vpop.f32.mrf.mxu3 }
 0x39a   : > { %6377 = vmatmul.msk.f32.gmra.mxu3 %vm700_vm1, %v8369_v22  ;;  %6478 = vmatmul.msk.f32.gmra.mxu2 %vm700_vm1, %v8585_v53 }
 0x39e   : > { %v8595_v56 = vpop.f32.mrf.mxu1 }
 0x39f   : > { %10088 = vst [vmem:[#allocation29_spill] sm:$0xff] %v8595_v56  ;;  %v8615_v56 = vpop.f32.mrf.mxu2 }
 0x3a1   : > { %6501 = vmatmul.msk.f32.gmra.mxu1 %vm700_vm1, %v8100_v51  ;;  %v8617_v51 = vpop.f32.mrf.mxu0 }
 0x3a2   : > { %6479 = vmatmul.msk.f32.gmra.mxu2 %vm700_vm1, %v8597_v60  ;;  %10091 = vst [vmem:[#allocation32_spill] sm:$0xff] %v8617_v51 }
 0x3a6   : > { %v8605_v40 = vpop.f32.mrf.mxu1 }
 0x3a7   : > { %10090 = vst [vmem:[#allocation31_spill] sm:$0xff] %v8605_v40  ;;  %v8625_v40 = vpop.f32.mrf.mxu3 }
 0x3a8   : > { %10094 = vst [vmem:[#allocation35_spill] sm:$0xff] %v8625_v40 }
 0x3a9   : > { %6502 = vmatmul.msk.f32.gmra.mxu1 %vm700_vm1, %v8119_v48  ;;  %v8629_v48 = vpop.f32.mrf.mxu2  ;;  %v8631_v55 = vpop.f32.mrf.mxu0 }
 0x3aa   : > { %6480 = vmatmul.msk.f32.gmra.mxu2 %vm700_vm1, %v8609_v44  ;;  %10095 = vst [vmem:[#allocation36_spill] sm:$0xff] %v8631_v55  ;;  %v8650_v55 = vld [vmem:[%s10061_s8] ss:$0 sm:$0xff] }
 0x3ae   : > { %v8619_v63 = vpop.f32.mrf.mxu1 }
 0x3af   : > { %10092 = vst [vmem:[#allocation33_spill] sm:$0xff] %v8619_v63  ;;  %v8637_v63 = vpop.f32.mrf.mxu3 }
 0x3b0   : > { %10097 = vst [vmem:[#allocation38_spill] sm:$0xff] %v8637_v63 }
 0x3b1   : > { %6503 = vmatmul.msk.f32.gmra.mxu1 %vm700_vm1, %v8136_v14  ;;  %v8641_v9 = vpop.f32.mrf.mxu2  ;;  %v8643_v14 = vpop.f32.mrf.mxu0 }
 0x3b2   : > { %6481 = vmatmul.msk.f32.gmra.mxu2 %vm700_vm1, %v8621_v49  ;;  %10099 = vst [vmem:[#allocation40_spill] sm:$0xff] %v8643_v14 }
 0x3b6   : > { %v8633_v1 = vpop.f32.mrf.mxu1 }
 0x3b7   : > { %10096 = vst [vmem:[#allocation37_spill] sm:$0xff] %v8633_v1  ;;  %v8652_v1 = vpop.f32.mrf.mxu3 }
 0x3b8   : > { %10100 = vst [vmem:[#allocation41_spill] sm:$0xff] %v8652_v1 }
 0x3b9   : > { %6504 = vmatmul.msk.f32.gmra.mxu1 %vm700_vm1, %v8152_v34  ;;  %v8655_v63 = vpop.f32.mrf.mxu2  ;;  %v8660_v14 = vpop.f32.mrf.mxu0 }
 0x3be   : > { %v8639_v51 = vpop.f32.mrf.mxu1 }
 0x3bf   : > { %10098 = vst [vmem:[#allocation39_spill] sm:$0xff] %v8639_v51  ;;  %v8664_v24 = vpop.f32.mrf.mxu3 }
 0x3c1   : > { %6505 = vmatmul.msk.f32.gmra.mxu1 %vm700_vm1, %v8171_v41 }
 0x3c6   : > { %v3825_v2 = vpop.f32.mrf.mxu1 }
 0x3c7   : > { %v3957_v34 = vadd.f32 %v3825_v2, %v8240_v58  ;;  %v8669_v58 = vpop.f32.mrf.mxu2 }
 0x3c9   : > { %v4003_v51 = vadd.f32 %v8650_v55, %v3957_v34  ;;  %6506 = vmatmul.msk.f32.gmra.mxu1 %vm700_vm1, %v8188_v62  ;;  %v8671_v34 = vpop.f32.mrf.mxu0 }
 0x3ca   : > { %10101 = vst [vmem:[#allocation42_spill] sm:$0xff] %v8671_v34 }
 0x3cb   : > { %v4047_v41 = vmax.f32 %v4003_v51, 0.0 }
 0x3cd   : > { %4091 = vst.msk [vmem:[#allocation3] sm:$0xff] %vm644_vm0, %v4047_v41 }
 0x3ce   : > { %v3828_v49 = vpop.f32.mrf.mxu1 }
 0x3cf   : > { %v3958_v40 = vadd.f32 %v3828_v49, %v8256_v16  ;;  %v6629_v16 = vld [vmem:[%s10057_s4 + $0x78] sm:$0xff] }
 0x3d0   : > { %4849 = vmatpush.msra.mxu3 %v6629_v16 }
 0x3d1   : > { %v4004_v1 = vadd.f32 %v8650_v55, %v3958_v40  ;;  %6507 = vmatmul.msk.f32.gmra.mxu1 %vm700_vm1, %v8203_v57 }
 0x3d3   : > { %v4048_v2 = vmax.f32 %v4004_v1, 0.0  ;;  %v8682_v1 = vpop.f32.mrf.mxu3 }
 0x3d4   : > { %v4135_v62 = vld [vmem:[#allocation3] sm:$0xff] }
 0x3d5   : > { %4092 = vst.msk [vmem:[#allocation3 + $0x8] sm:$0xff] %vm644_vm0, %v4048_v2  ;;  %6566 = vmatmul.msk.f32.vlgmr.msra.gmra.mxu0 %vm644_vm0, %v4135_v62  ;;  %v8684_v2 = vpop.f32.mrf.mxu2  ;;  %v8691_v62 = vpop.f32.mrf.mxu0 }
 0x3d6   : > { %v3831_v51 = vpop.f32.mrf.mxu1  ;;  %10102 = vst [vmem:[#allocation43_spill] sm:$0xff] %v8691_v62 }
 0x3d7   : > { %v3959_v49 = vadd.f32 %v3831_v51, %v8272_v0  ;;  %v6595_v0 = vld [vmem:[%s10057_s4 + $0x48] sm:$0xff] }
 0x3d8   : > { %4605 = vmatpush.msrb.mxu2 %v6595_v0 }
 0x3d9   : > { %v4005_v57 = vadd.f32 %v8650_v55, %v3959_v49  ;;  %6508 = vmatmul.msk.f32.gmra.mxu1 %vm700_vm1, %v8224_v43  ;;  %v6661_v43 = vld [vmem:[%s10057_s4 + $0x98] sm:$0xff] }
 0x3da   : > { %5095 = vmatpush.msrb.mxu0 %v6661_v43 }
 0x3db   : > { %v4049_v40 = vmax.f32 %v4005_v57, 0.0 }
 0x3dc   : > { %v4136_v41 = vld [vmem:[#allocation3 + $0x8] sm:$0xff] }
 0x3dd   : > { %4093 = vst.msk [vmem:[#allocation3 + $0x10] sm:$0xff] %vm644_vm0, %v4049_v40  ;;  %6567 = vmatmul.msk.f32.gmra.mxu0 %vm644_vm0, %v4136_v41  ;;  %v8700_v40 = vpop.f32.mrf.mxu3  ;;  %v8704_v62 = vpop.f32.mrf.mxu2 }
 0x3de   : > { %v3834_v51 = vpop.f32.mrf.mxu1 }
 0x3df   : > { %v3960_v16 = vadd.f32 %v3834_v51, %v8287_v10  ;;  %v8707_v10 = vpop.f32.mrf.mxu0 }
 0x3e1   : > { %v4006_v49 = vadd.f32 %v8650_v55, %v3960_v16  ;;  %6509 = vmatmul.msk.f32.gmra.mxu1 %vm700_vm1, %v8244_v35 }
 0x3e3   : > { %v4050_v57 = vmax.f32 %v4006_v49, 0.0 }
 0x3e4   : > { %v4137_v41 = vld [vmem:[#allocation3 + $0x10] sm:$0xff] }
 0x3e5   : > { %4094 = vst.msk [vmem:[#allocation3 + $0x18] sm:$0xff] %vm644_vm0, %v4050_v57  ;;  %6568 = vmatmul.msk.f32.gmra.mxu0 %vm644_vm0, %v4137_v41  ;;  %v8714_v16 = vpop.f32.mrf.mxu3  ;;  %v8717_v41 = vpop.f32.mrf.mxu2 }
 0x3e6   : > { %v3837_v0 = vpop.f32.mrf.mxu1 }
 0x3e7   : > { %v3961_v34 = vadd.f32 %v3837_v0, %v8302_v13 }
 0x3e9   : > { %v4007_v51 = vadd.f32 %v8650_v55, %v3961_v34  ;;  %6510 = vmatmul.msk.f32.gmra.mxu1 %vm700_vm1, %v8260_v45  ;;  %v8722_v34 = vpop.f32.mrf.mxu0 }
 0x3eb   : > { %v4051_v35 = vmax.f32 %v4007_v51, 0.0  ;;  %v6594_v51 = vld [vmem:[%s10057_s4 + $0x40] sm:$0xff] }
 0x3ec   : > { %v4138_v43 = vld [vmem:[#allocation3 + $0x18] sm:$0xff]  ;;  %4606 = vmatpush.msrb.mxu2 %v6594_v51 }
 0x3ed   : > { %4095 = vst.msk [vmem:[#allocation3 + $0x20] sm:$0xff] %vm644_vm0, %v4051_v35  ;;  %6569 = vmatmul.msk.f32.gmra.mxu0 %vm644_vm0, %v4138_v43  ;;  %v8731_v43 = vpop.f32.mrf.mxu3 }
 0x3ee   : > { %v3840_v49 = vpop.f32.mrf.mxu1 }
 0x3ef   : > { %v3962_v57 = vadd.f32 %v3840_v49, %v8320_v27  ;;  %v8736_v49 = vpop.f32.mrf.mxu2 }
 0x3f1   : > { %v4008_v13 = vadd.f32 %v8650_v55, %v3962_v57  ;;  %6511 = vmatmul.msk.f32.gmra.mxu1 %vm700_vm1, %v8276_v47 }
 0x3f3   : > { %v4052_v45 = vmax.f32 %v4008_v13, 0.0  ;;  %v8738_v13 = vpop.f32.mrf.mxu0 }
 0x3f4   : > { %v4139_v0 = vld [vmem:[#allocation3 + $0x20] sm:$0xff] }
 0x3f5   : > { %4096 = vst.msk [vmem:[#allocation3 + $0x28] sm:$0xff] %vm644_vm0, %v4052_v45  ;;  %6538 = vmatmul.msk.f32.vlgmr.msrb.gmra.mxu3 %vm644_vm0, %v4139_v0  ;;  %6570 = vmatmul.msk.f32.gmra.mxu0 %vm644_vm0, %v4139_v0 }
 0x3f6   : > { %v3843_v27 = vpop.f32.mrf.mxu1 }
 0x3f7   : > { %v3963_v35 = vadd.f32 %v3843_v27, %v8335_v46 }
 0x3f9   : > { %v4009_v47 = vadd.f32 %v8650_v55, %v3963_v35  ;;  %6512 = vmatmul.msk.f32.gmra.mxu1 %vm700_vm1, %v8291_v4  ;;  %v8747_v4 = vpop.f32.mrf.mxu3 }
 0x3fb   : > { %v4053_v57 = vmax.f32 %v4009_v47, 0.0  ;;  %v8749_v47 = vpop.f32.mrf.mxu2 }
 0x3fc   : > { %v4140_v45 = vld [vmem:[#allocation3 + $0x28] sm:$0xff] }
 0x3fd   : > { %4097 = vst.msk [vmem:[#allocation3 + $0x30] sm:$0xff] %vm644_vm0, %v4053_v57  ;;  %6539 = vmatmul.msk.f32.gmra.mxu3 %vm644_vm0, %v4140_v45  ;;  %6571 = vmatmul.msk.f32.gmra.mxu0 %vm644_vm0, %v4140_v45  ;;  %v8754_v57 = vpop.f32.mrf.mxu0 }
 0x3fe   : > { %v3846_v46 = vpop.f32.mrf.mxu1 }
 0x3ff   : > { %v3964_v0 = vadd.f32 %v3846_v46, %v8350_v31 }
 0x401   : > { %v4010_v51 = vadd.f32 %v8650_v55, %v3964_v0  ;;  %6513 = vmatmul.msk.f32.gmra.mxu1 %vm700_vm1, %v8309_v15  ;;  %v8760_v0 = vpop.f32.mrf.mxu3 }
 0x403   : > { %v4054_v27 = vmax.f32 %v4010_v51, 0.0 }
 0x404   : > { %v4141_v35 = vld [vmem:[#allocation3 + $0x30] sm:$0xff] }
 0x405   : > { %4098 = vst.msk [vmem:[#allocation3 + $0x38] sm:$0xff] %vm644_vm0, %v4054_v27  ;;  %6540 = vmatmul.msk.f32.gmra.mxu3 %vm644_vm0, %v4141_v35  ;;  %6572 = vmatmul.msk.f32.gmra.mxu0 %vm644_vm0, %v4141_v35  ;;  %v8768_v35 = vpop.f32.mrf.mxu2 }
 0x406   : > { %v3849_v31 = vpop.f32.mrf.mxu1 }
 0x407   : > { %v3965_v45 = vadd.f32 %v3849_v31, %v8365_v8  ;;  %v6628_v8 = vld [vmem:[%s10057_s4 + $0x70] sm:$0xff] }
 0x408   : > { %4850 = vmatpush.msra.mxu3 %v6628_v8 }
 0x409   : > { %v4011_v46 = vadd.f32 %v8650_v55, %v3965_v45  ;;  %6514 = vmatmul.msk.f32.gmra.mxu1 %vm700_vm1, %v8324_v37  ;;  %v8771_v37 = vpop.f32.mrf.mxu0 }
 0x40a   : > { %10103 = vst [vmem:[#allocation44_spill] sm:$0xff] %v8771_v37 }
 0x40b   : > { %v4055_v15 = vmax.f32 %v4011_v46, 0.0 }
 0x40c   : > { %v4142_v51 = vld [vmem:[#allocation3 + $0x38] sm:$0xff] }
 0x40d   : > { %4099 = vst.msk [vmem:[#allocation3 + $0x40] sm:$0xff] %vm644_vm0, %v4055_v15  ;;  %6541 = vmatmul.msk.f32.gmra.mxu3 %vm644_vm0, %v4142_v51  ;;  %6573 = vmatmul.msk.f32.gmra.mxu0 %vm644_vm0, %v4142_v51  ;;  %v8779_v51 = vpop.f32.mrf.mxu3 }
 0x40e   : > { %v3852_v27 = vpop.f32.mrf.mxu1 }
 0x40f   : > { %v3966_v31 = vadd.f32 %v3852_v27, %v8380_v32  ;;  %v6660_v27 = vld [vmem:[%s10057_s4 + $0x90] sm:$0xff] }
 0x410   : > { %5096 = vmatpush.msrb.mxu0 %v6660_v27 }
 0x411   : > { %v4012_v45 = vadd.f32 %v8650_v55, %v3966_v31  ;;  %6515 = vmatmul.msk.f32.gmra.mxu1 %vm700_vm1, %v8339_v61  ;;  %v8786_v61 = vpop.f32.mrf.mxu2 }
 0x413   : > { %v4056_v46 = vmax.f32 %v4012_v45, 0.0  ;;  %v8791_v45 = vpop.f32.mrf.mxu0 }
 0x414   : > { %v4143_v15 = vld [vmem:[#allocation3 + $0x40] sm:$0xff]  ;;  %10104 = vst [vmem:[#allocation45_spill] sm:$0xff] %v8791_v45 }
 0x415   : > { %4100 = vst.msk [vmem:[#allocation3 + $0x48] sm:$0xff] %vm644_vm0, %v4056_v46  ;;  %6542 = vmatmul.msk.f32.gmra.mxu3 %vm644_vm0, %v4143_v15  ;;  %6574 = vmatmul.msk.f32.gmra.mxu0 %vm644_vm0, %v4143_v15 }
 0x416   : > { %6598 = vmatmul.msk.f32.vlgmr.msrb.gmra.mxu2 %vm644_vm0, %v4143_v15  ;;  %v3855_v32 = vpop.f32.mrf.mxu1 }
 0x417   : > { %v3967_v8 = vadd.f32 %v3855_v32, %v8401_v30  ;;  %v8798_v32 = vpop.f32.mrf.mxu3 }
 0x419   : > { %v4013_v31 = vadd.f32 %v8650_v55, %v3967_v8  ;;  %6516 = vmatmul.msk.f32.gmra.mxu1 %vm700_vm1, %v8354_v54  ;;  %v8803_v54 = vpop.f32.mrf.mxu2 }
 0x41b   : > { %v4057_v46 = vmax.f32 %v4013_v31, 0.0  ;;  %v8805_v31 = vpop.f32.mrf.mxu0 }
 0x41c   : > { %v4144_v37 = vld [vmem:[#allocation3 + $0x48] sm:$0xff]  ;;  %10105 = vst [vmem:[#allocation46_spill] sm:$0xff] %v8805_v31 }
 0x41d   : > { %4101 = vst.msk [vmem:[#allocation3 + $0x50] sm:$0xff] %vm644_vm0, %v4057_v46  ;;  %6543 = vmatmul.msk.f32.gmra.mxu3 %vm644_vm0, %v4144_v37  ;;  %6575 = vmatmul.msk.f32.gmra.mxu0 %vm644_vm0, %v4144_v37 }
 0x41e   : > { %6599 = vmatmul.msk.f32.gmra.mxu2 %vm644_vm0, %v4144_v37  ;;  %v3858_v30 = vpop.f32.mrf.mxu1 }
 0x41f   : > { %v3968_v15 = vadd.f32 %v3858_v30, %v8419_v6 }
 0x421   : > { %v4014_v27 = vadd.f32 %v8650_v55, %v3968_v15  ;;  %6517 = vmatmul.msk.f32.gmra.mxu1 %vm700_vm1, %v8369_v22  ;;  %v8815_v22 = vpop.f32.mrf.mxu3  ;;  %v8819_v31 = vpop.f32.mrf.mxu2 }
 0x423   : > { %v4058_v8 = vmax.f32 %v4014_v27, 0.0  ;;  %v8817_v27 = vpop.f32.mrf.mxu0 }
 0x424   : > { %v4145_v46 = vld [vmem:[#allocation3 + $0x50] sm:$0xff]  ;;  %10106 = vst [vmem:[#allocation47_spill] sm:$0xff] %v8817_v27 }
 0x425   : > { %4102 = vst.msk [vmem:[#allocation3 + $0x58] sm:$0xff] %vm644_vm0, %v4058_v8  ;;  %6544 = vmatmul.msk.f32.gmra.mxu3 %vm644_vm0, %v4145_v46  ;;  %6576 = vmatmul.msk.f32.gmra.mxu0 %vm644_vm0, %v4145_v46 }
 0x426   : > { %6600 = vmatmul.msk.f32.gmra.mxu2 %vm644_vm0, %v4145_v46  ;;  %v3861_v6 = vpop.f32.mrf.mxu1 }
 0x427   : > { %v3969_v37 = vadd.f32 %v3861_v6, %v8434_v28 }
 0x429   : > { %v4015_v30 = vadd.f32 %v8650_v55, %v3969_v37  ;;  %6518 = vmatmul.msk.f32.gmra.mxu1 %vm700_vm1, %v8387_v29  ;;  %v8829_v37 = vpop.f32.mrf.mxu3 }
 0x42b   : > { %v4059_v15 = vmax.f32 %v4015_v30, 0.0 }
 0x42c   : > { %v4146_v8 = vld [vmem:[#allocation3 + $0x58] sm:$0xff] }
 0x42d   : > { %4103 = vst.msk [vmem:[#allocation3 + $0x60] sm:$0xff] %vm644_vm0, %v4059_v15  ;;  %6545 = vmatmul.msk.f32.gmra.mxu3 %vm644_vm0, %v4146_v8  ;;  %6577 = vmatmul.msk.f32.gmra.mxu0 %vm644_vm0, %v4146_v8  ;;  %v8838_v15 = vpop.f32.mrf.mxu0 }
 0x42e   : > { %6601 = vmatmul.msk.f32.gmra.mxu2 %vm644_vm0, %v4146_v8  ;;  %v3864_v28 = vpop.f32.mrf.mxu1  ;;  %10107 = vst [vmem:[#allocation48_spill] sm:$0xff] %v8838_v15 }
 0x42f   : > { %v3970_v46 = vadd.f32 %v3864_v28, %v8448_v39 }
 0x431   : > { %v4016_v29 = vadd.f32 %v8650_v55, %v3970_v46  ;;  %6519 = vmatmul.msk.f32.gmra.mxu1 %vm700_vm1, %v8408_v42  ;;  %v8842_v42 = vpop.f32.mrf.mxu2 }
 0x433   : > { %v4060_v6 = vmax.f32 %v4016_v29, 0.0 }
 0x434   : > { %v8831_v30 = vld [vmem:[#allocation3 + $0x60] sm:$0xff] }
 0x435   : > { %4104 = vst.msk [vmem:[#allocation3 + $0x68] sm:$0xff] %vm644_vm0, %v4060_v6  ;;  %6546 = vmatmul.msk.f32.gmra.mxu3 %vm644_vm0, %v8831_v30  ;;  %6578 = vmatmul.msk.f32.gmra.mxu0 %vm644_vm0, %v8831_v30  ;;  %v8855_v6 = vpop.f32.mrf.mxu3 }
 0x436   : > { %6602 = vmatmul.msk.f32.gmra.mxu2 %vm644_vm0, %v8831_v30  ;;  %v3867_v39 = vpop.f32.mrf.mxu1  ;;  %10108 = vst [vmem:[#allocation49_spill] sm:$0xff] %v8855_v6 }
 0x437   : > { %v3971_v8 = vadd.f32 %v3867_v39, %v8457_v50 }
 0x439   : > { %v4017_v28 = vadd.f32 %v8650_v55, %v3971_v8  ;;  %6520 = vmatmul.msk.f32.gmra.mxu1 %vm700_vm1, %v8423_v52  ;;  %v8860_v52 = vpop.f32.mrf.mxu0  ;;  %v8862_v8 = vpop.f32.mrf.mxu2 }
 0x43a   : > { %10109 = vst [vmem:[#allocation50_spill] sm:$0xff] %v8860_v52 }
 0x43b   : > { %v4061_v46 = vmax.f32 %v4017_v28, 0.0 }
 0x43c   : > { %v8848_v29 = vld [vmem:[#allocation3 + $0x68] sm:$0xff] }
 0x43d   : > { %4105 = vst.msk [vmem:[#allocation3 + $0x70] sm:$0xff] %vm644_vm0, %v4061_v46  ;;  %6547 = vmatmul.msk.f32.gmra.mxu3 %vm644_vm0, %v8848_v29  ;;  %6579 = vmatmul.msk.f32.gmra.mxu0 %vm644_vm0, %v8848_v29 }
 0x43e   : > { %6603 = vmatmul.msk.f32.gmra.mxu2 %vm644_vm0, %v8848_v29  ;;  %v3870_v50 = vpop.f32.mrf.mxu1 }
 0x43f   : > { %v3972_v39 = vadd.f32 %v3870_v50, %v8470_v38  ;;  %v6627_v50 = vld [vmem:[%s10057_s4 + $0x68] sm:$0xff] }
 0x440   : > { %4851 = vmatpush.msra.mxu3 %v6627_v50 }
 0x441   : > { %v4018_v28 = vadd.f32 %v8650_v55, %v3972_v39  ;;  %6521 = vmatmul.msk.f32.gmra.mxu1 %vm700_vm1, %v8438_v59  ;;  %v8880_v39 = vpop.f32.mrf.mxu3  ;;  %v8887_v52 = vpop.f32.mrf.mxu2 }
 0x442   : > { %10110 = vst [vmem:[#allocation51_spill] sm:$0xff] %v8880_v39 }
 0x443   : > { %v4062_v46 = vmax.f32 %v4018_v28, 0.0 }
 0x444   : > { %v8867_v15 = vld [vmem:[#allocation3 + $0x70] sm:$0xff] }
 0x445   : > { %4106 = vst.msk [vmem:[#allocation3 + $0x78] sm:$0xff] %vm644_vm0, %v4062_v46  ;;  %6548 = vmatmul.msk.f32.gmra.mxu3 %vm644_vm0, %v8867_v15  ;;  %6580 = vmatmul.msk.f32.gmra.mxu0 %vm644_vm0, %v8867_v15  ;;  %v8885_v46 = vpop.f32.mrf.mxu0 }
 0x446   : > { %6604 = vmatmul.msk.f32.gmra.mxu2 %vm644_vm0, %v8867_v15  ;;  %v3873_v38 = vpop.f32.mrf.mxu1  ;;  %10111 = vst [vmem:[#allocation52_spill] sm:$0xff] %v8885_v46 }
 0x447   : > { %v3973_v59 = vadd.f32 %v3873_v38, %v8484_v11 }
 0x449   : > { %v4019_v28 = vadd.f32 %v8650_v55, %v3973_v59  ;;  %6522 = vmatmul.msk.f32.gmra.mxu1 %vm700_vm1, %v8461_v23  ;;  %v6659_v23 = vld [vmem:[%s10057_s4 + $0x88] sm:$0xff]  ;;  %v8911_v39 = vpop.f32.mrf.mxu2 }
 0x44a   : > { %5097 = vmatpush.msrb.mxu0 %v6659_v23  ;;  %10114 = vst [vmem:[#allocation55_spill] sm:$0xff] %v8911_v39 }
 0x44b   : > { %v4063_v27 = vmax.f32 %v4019_v28, 0.0 }
 0x44c   : > { %v8889_v45 = vld [vmem:[#allocation3 + $0x78] sm:$0xff] }
 0x44d   : > { %10112 = vst [vmem:[#allocation53_spill] sm:$0xff] %v8889_v45  ;;  %6549 = vmatmul.msk.f32.gmra.mxu3 %vm644_vm0, %v8889_v45  ;;  %6581 = vmatmul.msk.f32.gmra.mxu0 %vm644_vm0, %v8889_v45 }
 0x44e   : > { %4107 = vst.msk [vmem:[#allocation3 + $0x80] sm:$0xff] %vm644_vm0, %v4063_v27  ;;  %6605 = vmatmul.msk.f32.gmra.mxu2 %vm644_vm0, %v8889_v45  ;;  %v3876_v11 = vpop.f32.mrf.mxu1  ;;  %v8905_v27 = vpop.f32.mrf.mxu3 }
 0x44f   : > { %v3974_v38 = vadd.f32 %v3876_v11, %v8500_v36  ;;  %10113 = vst [vmem:[#allocation54_spill] sm:$0xff] %v8905_v27 }
 0x451   : > { %v4020_v50 = vadd.f32 %v8650_v55, %v3974_v38  ;;  %6523 = vmatmul.msk.f32.gmra.mxu1 %vm700_vm1, %v8474_v33 }
 0x452   : > { %v8907_v59 = vpop.f32.mrf.mxu0 }
 0x453   : > { %v4064_v28 = vmax.f32 %v4020_v50, 0.0 }
 0x455   : > { %v8909_v46 = vld [vmem:[#allocation3 + $0x80] sm:$0xff]  ;;  %4108 = vst.msk [vmem:[#allocation3 + $0x88] sm:$0xff] %vm644_vm0, %v4064_v28 }
 0x456   : > { %6550 = vmatmul.msk.f32.gmra.mxu3 %vm644_vm0, %v8909_v46  ;;  %6582 = vmatmul.msk.f32.gmra.mxu0 %vm644_vm0, %v8909_v46  ;;  %v3879_v33 = vpop.f32.mrf.mxu1  ;;  %v8926_v50 = vpop.f32.mrf.mxu3 }
 0x457   : > { %6606 = vmatmul.msk.f32.gmra.mxu2 %vm644_vm0, %v8909_v46  ;;  %v3975_v36 = vadd.f32 %v3879_v33, %v8515_v18  ;;  %10115 = vst [vmem:[#allocation56_spill] sm:$0xff] %v8926_v50 }
 0x459   : > { %v4021_v11 = vadd.f32 %v8650_v55, %v3975_v36  ;;  %6524 = vmatmul.msk.f32.gmra.mxu1 %vm700_vm1, %v8488_v17  ;;  %v10116_v17 = vld [vmem:[#allocation7_spill] sm:$0xff]  ;;  %v8939_v36 = vpop.f32.mrf.mxu2 }
 0x45a   : > { %v8924_v23 = vpop.f32.mrf.mxu0  ;;  %v2796_v33 = vadd.f32 %v8563_v7, %v10116_v17  ;;  %10117 = vst [vmem:[#allocation7_spill] sm:$0xff] %v8939_v36 }
 0x45b   : > { %v4065_v38 = vmax.f32 %v4021_v11, 0.0 }
 0x45c   : > { %v8928_v28 = vld [vmem:[#allocation3 + $0x88] sm:$0xff]  ;;  %v3221_v27 = vadd.f32 %v8498_v26, %v2796_v33 }
 0x45d   : > { %4109 = vst.msk [vmem:[#allocation3 + $0x90] sm:$0xff] %vm644_vm0, %v4065_v38  ;;  %v10119_v26 = vld [vmem:[#allocation8_spill] sm:$0xff] }
 0x45e   : > { %6551 = vmatmul.msk.f32.gmra.mxu3 %vm644_vm0, %v8928_v28  ;;  %6583 = vmatmul.msk.f32.gmra.mxu0 %vm644_vm0, %v8928_v28  ;;  %v3882_v18 = vpop.f32.mrf.mxu1  ;;  %v3599_v39 = vadd.f32 %v8615_v56, %v3221_v27  ;;  %v2799_v7 = vadd.f32 %v8579_v21, %v10119_v26 }
 0x45f   : > { %6607 = vmatmul.msk.f32.gmra.mxu2 %vm644_vm0, %v8928_v28  ;;  %v3976_v11 = vadd.f32 %v3882_v18, %v8528_v25  ;;  %v8956_v25 = vpop.f32.mrf.mxu3 }
 0x460   : > { %10118 = vst [vmem:[#allocation57_spill] sm:$0xff] %v8956_v25  ;;  %v3222_v27 = vadd.f32 %v8519_v5, %v2799_v7 }
 0x461   : > { %v4022_v50 = vadd.f32 %v8650_v55, %v3976_v11  ;;  %6525 = vmatmul.msk.f32.gmra.mxu1 %vm700_vm1, %v8504_v20  ;;  %v8962_v18 = vpop.f32.mrf.mxu2 }
 0x462   : > { %v8945_v38 = vpop.f32.mrf.mxu0  ;;  %10120 = vst [vmem:[#allocation8_spill] sm:$0xff] %v8962_v18  ;;  %v3600_v11 = vadd.f32 %v8629_v48, %v3222_v27 }
 0x463   : > { %v4066_v6 = vmax.f32 %v4022_v50, 0.0 }
 0x464   : > { %v8948_v45 = vld [vmem:[#allocation3 + $0x90] sm:$0xff] }
 0x465   : > { %4110 = vst.msk [vmem:[#allocation3 + $0x98] sm:$0xff] %vm644_vm0, %v4066_v6 }
 0x466   : > { %6552 = vmatmul.msk.f32.gmra.mxu3 %vm644_vm0, %v8948_v45  ;;  %6584 = vmatmul.msk.f32.gmra.mxu0 %vm644_vm0, %v8948_v45  ;;  %v3885_v20 = vpop.f32.mrf.mxu1 }
 0x467   : > { %6608 = vmatmul.msk.f32.gmra.mxu2 %vm644_vm0, %v8948_v45  ;;  %v3977_v50 = vadd.f32 %v3885_v20, %v3599_v39  ;;  %v8982_v20 = vpop.f32.mrf.mxu3 }
 0x469   : > { %v4023_v56 = vadd.f32 %v8650_v55, %v3977_v50  ;;  %6526 = vmatmul.msk.f32.gmra.mxu1 %vm700_vm1, %v8585_v53  ;;  %v10121_v53 = vld [vmem:[#allocation9_spill] sm:$0xff]  ;;  %v8990_v50 = vpop.f32.mrf.mxu2 }
 0x46a   : > { %v8967_v6 = vpop.f32.mrf.mxu0  ;;  %v2802_v5 = vadd.f32 %v8593_v19, %v10121_v53  ;;  %10122 = vst [vmem:[#allocation9_spill] sm:$0xff] %v8982_v20  ;;  %v10124_v19 = vld [vmem:[#allocation10_spill] sm:$0xff] }
 0x46b   : > { %v4067_v17 = vmax.f32 %v4023_v56, 0.0  ;;  %10123 = vst [vmem:[#allocation58_spill] sm:$0xff] %v8990_v50 }
 0x46c   : > { %v8970_v33 = vld [vmem:[#allocation3 + $0x98] sm:$0xff]  ;;  %v3223_v7 = vadd.f32 %v8534_v3, %v2802_v5 }
 0x46d   : > { %4111 = vst.msk [vmem:[#allocation3 + $0xa0] sm:$0xff] %vm644_vm0, %v4067_v17 }
 0x46e   : > { %6553 = vmatmul.msk.f32.gmra.mxu3 %vm644_vm0, %v8970_v33  ;;  %6585 = vmatmul.msk.f32.gmra.mxu0 %vm644_vm0, %v8970_v33  ;;  %v3888_v21 = vpop.f32.mrf.mxu1  ;;  %v3601_v17 = vadd.f32 %v8641_v9, %v3223_v7  ;;  %v2805_v9 = vadd.f32 %v8607_v12, %v10124_v19 }
 0x46f   : > { %6609 = vmatmul.msk.f32.gmra.mxu2 %vm644_vm0, %v8970_v33  ;;  %v3978_v39 = vadd.f32 %v3888_v21, %v3600_v11 }
 0x471   : > { %v4024_v48 = vadd.f32 %v8650_v55, %v3978_v39  ;;  %6527 = vmatmul.msk.f32.gmra.mxu1 %vm700_vm1, %v8597_v60  ;;  %v6721_v60 = vld [vmem:[%s10058_s5 + $0x58] sm:$0xff]  ;;  %v9019_v12 = vpop.f32.mrf.mxu2 }
 0x472   : > { %v8987_v26 = vpop.f32.mrf.mxu0  ;;  %5542 = vmatpush.msrb.mxu1 %v6721_v60  ;;  %10126 = vst [vmem:[#allocation10_spill] sm:$0xff] %v9019_v12 }
 0x473   : > { %v4068_v56 = vmax.f32 %v4024_v48, 0.0  ;;  %v10125_v48 = vld [vmem:[#allocation23_spill] sm:$0xff] }
 0x474   : > { %v8992_v27 = vld [vmem:[#allocation3 + $0xa0] sm:$0xff]  ;;  %v3224_v7 = vadd.f32 %v10125_v48, %v2805_v9 }
 0x475   : > { %4112 = vst.msk [vmem:[#allocation3 + $0xa8] sm:$0xff] %vm644_vm0, %v4068_v56 }
 0x476   : > { %6554 = vmatmul.msk.f32.gmra.mxu3 %vm644_vm0, %v8992_v27  ;;  %6586 = vmatmul.msk.f32.gmra.mxu0 %vm644_vm0, %v8992_v27  ;;  %v3891_v3 = vpop.f32.mrf.mxu1  ;;  %v3602_v60 = vadd.f32 %v8655_v63, %v3224_v7  ;;  %v10128_v63 = vld [vmem:[#allocation35_spill] sm:$0xff]  ;;  %v10130_v7 = vld [vmem:[#allocation25_spill] sm:$0xff] }
 0x477   : > { %6610 = vmatmul.msk.f32.gmra.mxu2 %vm644_vm0, %v8992_v27  ;;  %v3979_v11 = vadd.f32 %v3891_v3, %v3601_v17  ;;  %v10127_v17 = vld [vmem:[#allocation11_spill] sm:$0xff] }
 0x478   : > { %v4277_v21 = vpop.f32.mrf.mxu3  ;;  %v2808_v3 = vadd.f32 %v10128_v63, %v10127_v17 }
 0x479   : > { %v4025_v53 = vadd.f32 %v8650_v55, %v3979_v11  ;;  %v9009_v5 = vadd.f32 %v8907_v59, %v4277_v21  ;;  %6528 = vmatmul.msk.f32.gmra.mxu1 %vm700_vm1, %v8609_v44  ;;  %v6626_v59 = vld [vmem:[%s10057_s4 + $0x60] sm:$0xff] }
 0x47a   : > { %v9013_v39 = vpop.f32.mrf.mxu0  ;;  %4852 = vmatpush.msra.mxu3 %v6626_v59  ;;  %v10132_v59 = vld [vmem:[#allocation38_spill] sm:$0xff] }
 0x47b   : > { %v4069_v56 = vmax.f32 %v4025_v53, 0.0  ;;  %v10129_v53 = vld [vmem:[#allocation34_spill] sm:$0xff] }
 0x47c   : > { %v9016_v20 = vld [vmem:[#allocation3 + $0xa8] sm:$0xff] }
 0x47d   : > { %4113 = vst.msk [vmem:[#allocation3 + $0xb0] sm:$0xff] %vm644_vm0, %v4069_v56  ;;  %v3225_v56 = vadd.f32 %v10130_v7, %v2808_v3  ;;  %v10134_v7 = vld [vmem:[#allocation28_spill] sm:$0xff] }
 0x47e   : > { %6555 = vmatmul.msk.f32.gmra.mxu3 %vm644_vm0, %v9016_v20  ;;  %6587 = vmatmul.msk.f32.gmra.mxu0 %vm644_vm0, %v9016_v20  ;;  %v3894_v44 = vpop.f32.mrf.mxu1 }
 0x47f   : > { %6611 = vmatmul.msk.f32.gmra.mxu2 %vm644_vm0, %v9016_v20  ;;  %v3980_v19 = vadd.f32 %v3894_v44, %v3602_v60  ;;  %v3603_v17 = vadd.f32 %v8669_v58, %v3225_v56  ;;  %v6658_v60 = vld [vmem:[%s10057_s4 + $0x80] sm:$0xff]  ;;  %v10131_v44 = vld [vmem:[#allocation12_spill] sm:$0xff]  ;;  %v9057_v58 = vpop.f32.mrf.mxu2 }
 0x480   : > { %v4280_v9 = vpop.f32.mrf.mxu3  ;;  %v2811_v63 = vadd.f32 %v10132_v59, %v10131_v44  ;;  %10133 = vst [vmem:[#allocation23_spill] sm:$0xff] %v9057_v58  ;;  %5098 = vmatpush.msrb.mxu0 %v6658_v60  ;;  %v10136_v60 = vld [vmem:[#allocation41_spill] sm:$0xff] }
 0x481   : > { %v4026_v11 = vadd.f32 %v8650_v55, %v3980_v19  ;;  %v9035_v21 = vadd.f32 %v8924_v23, %v4280_v9  ;;  %6529 = vmatmul.msk.f32.gmra.mxu1 %vm700_vm1, %v10129_v53  ;;  %v3663_v19 = vld [vmem:[#allocation2 + $0x1c0] sm:$0xff] }
 0x482   : > { %v9039_v48 = vpop.f32.mrf.mxu0  ;;  %v3226_v56 = vadd.f32 %v10134_v7, %v2811_v63  ;;  %v3664_v63 = vld [vmem:[#allocation2 + $0x1c8] sm:$0xff]  ;;  %v10137_v7 = vld [vmem:[#allocation30_spill] sm:$0xff] }
 0x483   : > { %v4070_v25 = vmax.f32 %v4026_v11, 0.0 }
 0x484   : > { %v9042_v12 = vld [vmem:[#allocation3 + $0xb0] sm:$0xff]  ;;  %v3604_v44 = vadd.f32 %v8684_v2, %v3226_v56 }
 0x485   : > { %4114 = vst.msk [vmem:[#allocation3 + $0xb8] sm:$0xff] %vm644_vm0, %v4070_v25 }
 0x486   : > { %6556 = vmatmul.msk.f32.gmra.mxu3 %vm644_vm0, %v9042_v12  ;;  %6588 = vmatmul.msk.f32.gmra.mxu0 %vm644_vm0, %v9042_v12  ;;  %v3897_v23 = vpop.f32.mrf.mxu1 }
 0x487   : > { %6612 = vmatmul.msk.f32.gmra.mxu2 %vm644_vm0, %v9042_v12  ;;  %v3981_v25 = vadd.f32 %v3897_v23, %v3603_v17  ;;  %v10135_v23 = vld [vmem:[#allocation13_spill] sm:$0xff] }
 0x488   : > { %v4283_v3 = vpop.f32.mrf.mxu3  ;;  %v2814_v59 = vadd.f32 %v10136_v60, %v10135_v23 }
 0x489   : > { %v4027_v9 = vadd.f32 %v8650_v55, %v3981_v25  ;;  %v9061_v11 = vadd.f32 %v8945_v38, %v4283_v3  ;;  %6530 = vmatmul.msk.f32.gmra.mxu1 %vm700_vm1, %v3663_v19  ;;  %v6693_v38 = vld [vmem:[%s10058_s5 + $0x38] sm:$0xff]  ;;  %v9082_v25 = vpop.f32.mrf.mxu2 }
 0x48a   : > { %v9064_v53 = vpop.f32.mrf.mxu0  ;;  %5371 = vmatpush.msra.mxu2 %v6693_v38  ;;  %v3227_v56 = vadd.f32 %v10137_v7, %v2814_v59  ;;  %v10138_v38 = vld [vmem:[#allocation14_spill] sm:$0xff]  ;;  %v3665_v59 = vld [vmem:[#allocation2 + $0x1d0] sm:$0xff] }
 0x48b   : > { %v4071_v50 = vmax.f32 %v4027_v9, 0.0 }
 0x48c   : > { %v9067_v18 = vld [vmem:[#allocation3 + $0xb8] sm:$0xff] }
 0x48d   : > { %4115 = vst.msk [vmem:[#allocation3 + $0xc0] sm:$0xff] %vm644_vm0, %v4071_v50 }
 0x48e   : > { %6557 = vmatmul.msk.f32.gmra.mxu3 %vm644_vm0, %v9067_v18  ;;  %6589 = vmatmul.msk.f32.gmra.mxu0 %vm644_vm0, %v9067_v18  ;;  %v3900_v17 = vpop.f32.mrf.mxu1 }
 0x48f   : > { %6613 = vmatmul.msk.f32.gmra.mxu2 %vm644_vm0, %v9067_v18  ;;  %v3982_v2 = vadd.f32 %v3900_v17, %v3604_v44  ;;  %v3605_v44 = vadd.f32 %v8704_v62, %v3227_v56  ;;  %v2817_v17 = vadd.f32 %v8664_v24, %v10138_v38 }
 0x490   : > { %v4286_v50 = vpop.f32.mrf.mxu3 }
 0x491   : > { %v4028_v3 = vadd.f32 %v8650_v55, %v3982_v2  ;;  %v9086_v19 = vadd.f32 %v8967_v6, %v4286_v50  ;;  %6531 = vmatmul.msk.f32.gmra.mxu1 %vm700_vm1, %v3664_v63 }
 0x492   : > { %v9089_v9 = vpop.f32.mrf.mxu0 }
 0x493   : > { %v4072_v58 = vmax.f32 %v4028_v3, 0.0  ;;  %v10139_v3 = vld [vmem:[#allocation32_spill] sm:$0xff] }
 0x494   : > { %v9092_v36 = vld [vmem:[#allocation3 + $0xc0] sm:$0xff]  ;;  %v3228_v7 = vadd.f32 %v10139_v3, %v2817_v17  ;;  %v10141_v3 = vld [vmem:[#allocation36_spill] sm:$0xff] }
 0x495   : > { %4116 = vst.msk [vmem:[#allocation3 + $0xc8] sm:$0xff] %vm644_vm0, %v4072_v58 }
 0x496   : > { %6558 = vmatmul.msk.f32.gmra.mxu3 %vm644_vm0, %v9092_v36  ;;  %6590 = vmatmul.msk.f32.gmra.mxu0 %vm644_vm0, %v9092_v36  ;;  %v3903_v6 = vpop.f32.mrf.mxu1 }
 0x497   : > { %6614 = vmatmul.msk.f32.gmra.mxu2 %vm644_vm0, %v9092_v36  ;;  %v3983_v23 = vadd.f32 %v3903_v6, %v3605_v44  ;;  %v3606_v44 = vadd.f32 %v8717_v41, %v3228_v7 }
 0x498   : > { %v4289_v60 = vpop.f32.mrf.mxu3 }
 0x499   : > { %v4029_v62 = vadd.f32 %v8650_v55, %v3983_v23  ;;  %v9106_v58 = vadd.f32 %v8987_v26, %v4289_v60  ;;  %v4608_v2 = vpop.f32.mrf.mxu2  ;;  %6532 = vmatmul.msk.f32.gmra.mxu1 %vm700_vm1, %v3665_v59  ;;  %v3666_v23 = vld [vmem:[#allocation2 + $0x1d8] sm:$0xff] }
 0x49a   : > { %v9110_v50 = vadd.f32 %v4608_v2, %v9009_v5  ;;  %v9112_v63 = vpop.f32.mrf.mxu0  ;;  %v10140_v5 = vld [vmem:[#allocation15_spill] sm:$0xff] }
 0x49b   : > { %v4073_v56 = vmax.f32 %v4029_v62, 0.0  ;;  %v2820_v6 = vadd.f32 %v8682_v1, %v10140_v5 }
 0x49c   : > { %v9115_v24 = vld [vmem:[#allocation3 + $0xc8] sm:$0xff] }
 0x49d   : > { %4117 = vst.msk [vmem:[#allocation3 + $0xd0] sm:$0xff] %vm644_vm0, %v4073_v56  ;;  %v3229_v7 = vadd.f32 %v10141_v3, %v2820_v6 }
 0x49e   : > { %6559 = vmatmul.msk.f32.gmra.mxu3 %vm644_vm0, %v9115_v24  ;;  %6591 = vmatmul.msk.f32.gmra.mxu0 %vm644_vm0, %v9115_v24  ;;  %v3906_v26 = vpop.f32.mrf.mxu1 }
 0x49f   : > { %6615 = vmatmul.msk.f32.gmra.mxu2 %vm644_vm0, %v9115_v24  ;;  %v3984_v38 = vadd.f32 %v3906_v26, %v3606_v44  ;;  %v3607_v44 = vadd.f32 %v8736_v49, %v3229_v7 }
 0x4a0   : > { %v4292_v17 = vpop.f32.mrf.mxu3 }
 0x4a1   : > { %v4030_v41 = vadd.f32 %v8650_v55, %v3984_v38  ;;  %v9129_v60 = vadd.f32 %v9013_v39, %v4292_v17  ;;  %v4611_v59 = vpop.f32.mrf.mxu2  ;;  %6533 = vmatmul.msk.f32.gmra.mxu1 %vm700_vm1, %v3666_v23 }
 0x4a2   : > { %v9133_v62 = vadd.f32 %v4611_v59, %v9035_v21  ;;  %v9135_v2 = vpop.f32.mrf.mxu0  ;;  %v10142_v21 = vld [vmem:[#allocation16_spill] sm:$0xff] }
 0x4a3   : > { %v4074_v56 = vmax.f32 %v4030_v41, 0.0  ;;  %v2823_v26 = vadd.f32 %v8700_v40, %v10142_v21  ;;  %v10143_v59 = vld [vmem:[#allocation40_spill] sm:$0xff] }
 0x4a4   : > { %v9138_v1 = vld [vmem:[#allocation3 + $0xd0] sm:$0xff] }
 0x4a5   : > { %4118 = vst.msk [vmem:[#allocation3 + $0xd8] sm:$0xff] %vm644_vm0, %v4074_v56  ;;  %v3230_v3 = vadd.f32 %v10143_v59, %v2823_v26 }
 0x4a6   : > { %6560 = vmatmul.msk.f32.gmra.mxu3 %vm644_vm0, %v9138_v1  ;;  %6592 = vmatmul.msk.f32.gmra.mxu0 %vm644_vm0, %v9138_v1  ;;  %v3909_v39 = vpop.f32.mrf.mxu1 }
 0x4a7   : > { %6616 = vmatmul.msk.f32.gmra.mxu2 %vm644_vm0, %v9138_v1  ;;  %v3985_v5 = vadd.f32 %v3909_v39, %v3607_v44  ;;  %v3608_v40 = vadd.f32 %v8749_v47, %v3230_v3 }
 0x4a8   : > { %v4295_v6 = vpop.f32.mrf.mxu3 }
 0x4a9   : > { %v4031_v38 = vadd.f32 %v8650_v55, %v3985_v5  ;;  %v9152_v49 = vadd.f32 %v9039_v48, %v4295_v6  ;;  %v4614_v17 = vpop.f32.mrf.mxu2 }
 0x4aa   : > { %v9155_v23 = vadd.f32 %v4614_v17, %v9061_v11  ;;  %v9157_v41 = vpop.f32.mrf.mxu0  ;;  %v10144_v11 = vld [vmem:[#allocation17_spill] sm:$0xff] }
 0x4ab   : > { %v4075_v7 = vmax.f32 %v4031_v38, 0.0  ;;  %v2826_v44 = vadd.f32 %v8714_v16, %v10144_v11 }
 0x4ac   : > { %v9160_v56 = vld [vmem:[#allocation3 + $0xd8] sm:$0xff] }
 0x4ad   : > { %4119 = vst.msk [vmem:[#allocation3 + $0xe0] sm:$0xff] %vm644_vm0, %v4075_v7  ;;  %v3231_v17 = vadd.f32 %v8660_v14, %v2826_v44  ;;  %v10146_v44 = vld [vmem:[#allocation42_spill] sm:$0xff] }
 0x4ae   : > { %6561 = vmatmul.msk.f32.gmra.mxu3 %vm644_vm0, %v9160_v56  ;;  %6593 = vmatmul.msk.f32.gmra.mxu0 %vm644_vm0, %v9160_v56  ;;  %v3912_v48 = vpop.f32.mrf.mxu1 }
 0x4af   : > { %6617 = vmatmul.msk.f32.gmra.mxu2 %vm644_vm0, %v9160_v56  ;;  %v3986_v39 = vadd.f32 %v3912_v48, %v3608_v40  ;;  %v3609_v16 = vadd.f32 %v8768_v35, %v3231_v17 }
 0x4b0   : > { %v4298_v21 = vpop.f32.mrf.mxu3 }
 0x4b1   : > { %v4032_v26 = vadd.f32 %v8650_v55, %v3986_v39  ;;  %v9174_v47 = vadd.f32 %v9064_v53, %v4298_v21  ;;  %v4617_v5 = vpop.f32.mrf.mxu2 }
 0x4b2   : > { %v9177_v6 = vadd.f32 %v4617_v5, %v9086_v19  ;;  %v9179_v38 = vpop.f32.mrf.mxu0  ;;  %v10145_v19 = vld [vmem:[#allocation18_spill] sm:$0xff] }
 0x4b3   : > { %v4076_v59 = vmax.f32 %v4032_v26, 0.0  ;;  %v2829_v14 = vadd.f32 %v8731_v43, %v10145_v19 }
 0x4b4   : > { %v9182_v3 = vld [vmem:[#allocation3 + $0xe0] sm:$0xff] }
 0x4b5   : > { %4120 = vst.msk [vmem:[#allocation3 + $0xe8] sm:$0xff] %vm644_vm0, %v4076_v59  ;;  %v3232_v39 = vadd.f32 %v10146_v44, %v2829_v14  ;;  %v10148_v14 = vld [vmem:[#allocation43_spill] sm:$0xff] }
 0x4b6   : > { %6562 = vmatmul.msk.f32.gmra.mxu3 %vm644_vm0, %v9182_v3  ;;  %6662 = vmatmul.msk.f32.vlgmr.msrb.gmra.mxu0 %vm644_vm0, %v8909_v46  ;;  %v3915_v53 = vpop.f32.mrf.mxu1 }
 0x4b7   : > { %6618 = vmatmul.msk.f32.gmra.mxu2 %vm644_vm0, %v9182_v3  ;;  %v3987_v7 = vadd.f32 %v3915_v53, %v3609_v16  ;;  %v3610_v5 = vadd.f32 %v8786_v61, %v3232_v39  ;;  %v10149_v39 = vld [vmem:[#allocation20_spill] sm:$0xff] }
 0x4b8   : > { %v4301_v40 = vpop.f32.mrf.mxu3 }
 0x4b9   : > { %v4033_v48 = vadd.f32 %v8650_v55, %v3987_v7  ;;  %v9196_v35 = vadd.f32 %v9089_v9, %v4301_v40  ;;  %v10147_v9 = vld [vmem:[#allocation19_spill] sm:$0xff] }
 0x4ba   : > { %v9198_v11 = vpop.f32.mrf.mxu0  ;;  %v2832_v17 = vadd.f32 %v8747_v4, %v10147_v9  ;;  %v6692_v4 = vld [vmem:[%s10058_s5 + $0x30] sm:$0xff] }
 0x4bb   : > { %v4077_v21 = vmax.f32 %v4033_v48, 0.0  ;;  %5372 = vmatpush.msra.mxu2 %v6692_v4 }
 0x4bc   : > { %v9201_v26 = vld [vmem:[#allocation3 + $0xe8] sm:$0xff]  ;;  %v3233_v7 = vadd.f32 %v10148_v14, %v2832_v17 }
 0x4bd   : > { %4121 = vst.msk [vmem:[#allocation3 + $0xf0] sm:$0xff] %vm644_vm0, %v4077_v21  ;;  %v2835_v21 = vadd.f32 %v8760_v0, %v10149_v39  ;;  %v6720_v0 = vld [vmem:[%s10058_s5 + $0x50] sm:$0xff] }
 0x4be   : > { %6563 = vmatmul.msk.f32.gmra.mxu3 %vm644_vm0, %v9201_v26  ;;  %6663 = vmatmul.msk.f32.gmra.mxu0 %vm644_vm0, %v8928_v28  ;;  %v3918_v43 = vpop.f32.mrf.mxu1  ;;  %v3611_v44 = vadd.f32 %v8803_v54, %v3233_v7 }
 0x4bf   : > { %6619 = vmatmul.msk.f32.gmra.mxu2 %vm644_vm0, %v9201_v26  ;;  %v3988_v59 = vadd.f32 %v3918_v43, %v3610_v5  ;;  %5543 = vmatpush.msrb.mxu1 %v6720_v0 }
 0x4c0   : > { %v4304_v16 = vpop.f32.mrf.mxu3 }
 0x4c1   : > { %v4034_v53 = vadd.f32 %v8650_v55, %v3988_v59  ;;  %v9215_v61 = vadd.f32 %v9112_v63, %v4304_v16  ;;  %v3234_v59 = vadd.f32 %v8707_v10, %v2835_v21 }
 0x4c2   : > { %v9217_v19 = vpop.f32.mrf.mxu0 }
 0x4c3   : > { %v4078_v40 = vmax.f32 %v4034_v53, 0.0  ;;  %v3612_v14 = vadd.f32 %v8819_v31, %v3234_v59 }
 0x4c4   : > { %v9220_v48 = vld [vmem:[#allocation3 + $0xf0] sm:$0xff] }
 0x4c5   : > { %4122 = vst.msk [vmem:[#allocation3 + $0xf8] sm:$0xff] %vm644_vm0, %v4078_v40 }
 0x4c6   : > { %6564 = vmatmul.msk.f32.gmra.mxu3 %vm644_vm0, %v9220_v48  ;;  %6664 = vmatmul.msk.f32.gmra.mxu0 %vm644_vm0, %v8948_v45  ;;  %v3921_v63 = vpop.f32.mrf.mxu1 }
 0x4c7   : > { %6620 = vmatmul.msk.f32.gmra.mxu2 %vm644_vm0, %v9220_v48  ;;  %v3989_v54 = vadd.f32 %v3921_v63, %v3611_v44 }
 0x4c8   : > { %v4307_v5 = vpop.f32.mrf.mxu3 }
 0x4c9   : > { %v4035_v43 = vadd.f32 %v8650_v55, %v3989_v54  ;;  %v9237_v9 = vadd.f32 %v9135_v2, %v4307_v5  ;;  %v10150_v2 = vld [vmem:[#allocation21_spill] sm:$0xff] }
 0x4ca   : > { %v9239_v17 = vpop.f32.mrf.mxu0  ;;  %v2838_v31 = vadd.f32 %v8779_v51, %v10150_v2 }
 0x4cb   : > { %v4079_v16 = vmax.f32 %v4035_v43, 0.0 }
 0x4cc   : > { %v9242_v53 = vld [vmem:[#allocation3 + $0xf8] sm:$0xff]  ;;  %v3235_v39 = vadd.f32 %v8722_v34, %v2838_v31 }
 0x4cd   : > { %4123 = vst.msk [vmem:[#allocation3 + $0x100] sm:$0xff] %vm644_vm0, %v4079_v16 }
 0x4ce   : > { %6565 = vmatmul.msk.f32.gmra.mxu3 %vm644_vm0, %v9242_v53  ;;  %6665 = vmatmul.msk.f32.gmra.mxu0 %vm644_vm0, %v8970_v33  ;;  %v3924_v10 = vpop.f32.mrf.mxu1  ;;  %v3613_v5 = vadd.f32 %v8842_v42, %v3235_v39 }
 0x4cf   : > { %6621 = vmatmul.msk.f32.gmra.mxu2 %vm644_vm0, %v9242_v53  ;;  %v3990_v7 = vadd.f32 %v3924_v10, %v3612_v14 }
 0x4d0   : > { %v4310_v40 = vpop.f32.mrf.mxu3 }
 0x4d1   : > { %v4036_v44 = vadd.f32 %v8650_v55, %v3990_v7  ;;  %v9259_v4 = vadd.f32 %v9157_v41, %v4310_v40  ;;  %v10151_v41 = vld [vmem:[#allocation22_spill] sm:$0xff] }
 0x4d2   : > { %v2841_v34 = vadd.f32 %v8798_v32, %v10151_v41  ;;  %v10152_v32 = vld [vmem:[#allocation24_spill] sm:$0xff] }
 0x4d3   : > { %v9261_v63 = vpop.f32.mrf.mxu0  ;;  %v4080_v21 = vmax.f32 %v4036_v44, 0.0 }
 0x4d4   : > { %v9264_v54 = vld [vmem:[#allocation3 + $0x100] sm:$0xff] }
 0x4d5   : > { %4124 = vst.msk [vmem:[#allocation3 + $0x108] sm:$0xff] %vm644_vm0, %v4080_v21 }
 0x4d6   : > { %6630 = vmatmul.msk.f32.vlgmr.msra.gmra.mxu3 %vm644_vm0, %v8831_v30  ;;  %6666 = vmatmul.msk.f32.gmra.mxu0 %vm644_vm0, %v8992_v27  ;;  %v3927_v51 = vpop.f32.mrf.mxu1  ;;  %v3236_v30 = vadd.f32 %v8738_v13, %v2841_v34  ;;  %v2844_v13 = vadd.f32 %v8815_v22, %v10152_v32  ;;  %v10158_v32 = vld [vmem:[#allocation49_spill] sm:$0xff] }
 0x4d7   : > { %6622 = vmatmul.msk.f32.gmra.mxu2 %vm644_vm0, %v9264_v54  ;;  %v3991_v43 = vadd.f32 %v3927_v51, %v3613_v5  ;;  %v10153_v5 = vld [vmem:[#allocation26_spill] sm:$0xff] }
 0x4d8   : > { %v3614_v2 = vadd.f32 %v8862_v8, %v3236_v30  ;;  %v9298_v8 = vld [vmem:[%s10061_s8] ss:$0 sm:$0xff]  ;;  %v3237_v44 = vadd.f32 %v8754_v57, %v2844_v13  ;;  %v2847_v57 = vadd.f32 %v8829_v37, %v10153_v5 }
 0x4d9   : > { %v4313_v59 = vpop.f32.mrf.mxu3  ;;  %v4037_v16 = vadd.f32 %v8650_v55, %v3991_v43 }
 0x4da   : > { %v9278_v42 = vadd.f32 %v9179_v38, %v4313_v59  ;;  %v3615_v22 = vadd.f32 %v8887_v52, %v3237_v44 }
 0x4db   : > { %v9280_v14 = vpop.f32.mrf.mxu0  ;;  %v4081_v0 = vmax.f32 %v4037_v16, 0.0 }
 0x4dc   : > { %v9283_v10 = vld [vmem:[#allocation3 + $0x108] sm:$0xff] }
 0x4dd   : > { %4125 = vst.msk [vmem:[#allocation3 + $0x110] sm:$0xff] %vm644_vm0, %v4081_v0  ;;  %v10155_v0 = vld [vmem:[#allocation55_spill] sm:$0xff] }
 0x4de   : > { %6631 = vmatmul.msk.f32.gmra.mxu3 %vm644_vm0, %v8848_v29  ;;  %6667 = vmatmul.msk.f32.gmra.mxu0 %vm644_vm0, %v9016_v20  ;;  %v3930_v55 = vpop.f32.mrf.mxu1 }
 0x4df   : > { %6623 = vmatmul.msk.f32.gmra.mxu2 %vm644_vm0, %v9283_v10  ;;  %v3992_v38 = vadd.f32 %v3930_v55, %v3614_v2  ;;  %v10156_v55 = vld [vmem:[#allocation53_spill] sm:$0xff] }
 0x4e1   : > { %v4316_v31 = vpop.f32.mrf.mxu3  ;;  %v4038_v7 = vadd.f32 %v9298_v8, %v3992_v38 }
 0x4e2   : > { %v9302_v29 = vadd.f32 %v9198_v11, %v4316_v31 }
 0x4e3   : > { %v9304_v40 = vpop.f32.mrf.mxu0  ;;  %v4082_v39 = vmax.f32 %v4038_v7, 0.0 }
 0x4e4   : > { %v9307_v21 = vld [vmem:[#allocation3 + $0x110] sm:$0xff] }
 0x4e5   : > { %4126 = vst.msk [vmem:[#allocation3 + $0x118] sm:$0xff] %vm644_vm0, %v4082_v39 }
 0x4e6   : > { %6632 = vmatmul.msk.f32.gmra.mxu3 %vm644_vm0, %v8867_v15  ;;  %6668 = vmatmul.msk.f32.gmra.mxu0 %vm644_vm0, %v9042_v12  ;;  %v3933_v11 = vpop.f32.mrf.mxu1  ;;  %v10154_v15 = vld [vmem:[#allocation44_spill] sm:$0xff] }
 0x4e7   : > { %6624 = vmatmul.msk.f32.gmra.mxu2 %vm644_vm0, %v9307_v21  ;;  %v3993_v51 = vadd.f32 %v3933_v11, %v3615_v22  ;;  %v3238_v59 = vadd.f32 %v10154_v15, %v2847_v57  ;;  %v10159_v22 = vld [vmem:[#allocation45_spill] sm:$0xff]  ;;  %v10160_v57 = vld [vmem:[#allocation7_spill] sm:$0xff] }
 0x4e8   : > { %v10162_v15 = vld [vmem:[#allocation51_spill] sm:$0xff] }
 0x4e9   : > { %v4319_v41 = vpop.f32.mrf.mxu3  ;;  %v4039_v34 = vadd.f32 %v9298_v8, %v3993_v51  ;;  %v3616_v2 = vadd.f32 %v10155_v0, %v3238_v59 }
 0x4ea   : > { %v9321_v52 = vadd.f32 %v9217_v19, %v4319_v41  ;;  %v10157_v19 = vld [vmem:[#allocation27_spill] sm:$0xff] }
 0x4eb   : > { %v9323_v43 = vpop.f32.mrf.mxu0  ;;  %v4083_v16 = vmax.f32 %v4039_v34, 0.0  ;;  %v2850_v13 = vadd.f32 %v10158_v32, %v10157_v19  ;;  %v10161_v34 = vld [vmem:[#allocation29_spill] sm:$0xff] }
 0x4ec   : > { %v9326_v30 = vld [vmem:[#allocation3 + $0x118] sm:$0xff] }
 0x4ed   : > { %4127 = vst.msk [vmem:[#allocation3 + $0x120] sm:$0xff] %vm644_vm0, %v4083_v16  ;;  %v3239_v11 = vadd.f32 %v10159_v22, %v2850_v13 }
 0x4ee   : > { %6633 = vmatmul.msk.f32.gmra.mxu3 %vm644_vm0, %v10156_v55  ;;  %6669 = vmatmul.msk.f32.gmra.mxu0 %vm644_vm0, %v9067_v18  ;;  %v3936_v37 = vpop.f32.mrf.mxu1 }
 0x4ef   : > { %6625 = vmatmul.msk.f32.gmra.mxu2 %vm644_vm0, %v9326_v30  ;;  %v3994_v38 = vadd.f32 %v3936_v37, %v3616_v2  ;;  %v3617_v51 = vadd.f32 %v10160_v57, %v3239_v11  ;;  %v10163_v37 = vld [vmem:[#allocation46_spill] sm:$0xff] }
 0x4f1   : > { %v4322_v31 = vpop.f32.mrf.mxu3  ;;  %v4040_v7 = vadd.f32 %v9298_v8, %v3994_v38 }
 0x4f2   : > { %v9340_v44 = vadd.f32 %v9239_v17, %v4322_v31  ;;  %v2853_v17 = vadd.f32 %v10162_v15, %v10161_v34  ;;  %v10165_v31 = vld [vmem:[#allocation31_spill] sm:$0xff] }
 0x4f3   : > { %v9342_v39 = vpop.f32.mrf.mxu0  ;;  %v4084_v5 = vmax.f32 %v4040_v7, 0.0  ;;  %v10166_v7 = vld [vmem:[#allocation54_spill] sm:$0xff] }
 0x4f4   : > { %v3240_v19 = vadd.f32 %v10163_v37, %v2853_v17  ;;  %v2856_v22 = vadd.f32 %v10166_v7, %v10165_v31  ;;  %v10168_v17 = vld [vmem:[#allocation58_spill] sm:$0xff]  ;;  %v10170_v37 = vld [vmem:[#allocation56_spill] sm:$0xff] }
 0x4f5   : > { %4128 = vst.msk [vmem:[#allocation3 + $0x128] sm:$0xff] %vm644_vm0, %v4084_v5 }
 0x4f6   : > { %6634 = vmatmul.msk.f32.gmra.mxu3 %vm644_vm0, %v8909_v46  ;;  %6670 = vmatmul.msk.f32.gmra.mxu0 %vm644_vm0, %v9092_v36  ;;  %v3939_v41 = vpop.f32.mrf.mxu1  ;;  %v10164_v46 = vld [vmem:[#allocation8_spill] sm:$0xff] }
 0x4f7   : > { %v3995_v59 = vadd.f32 %v3939_v41, %v3617_v51  ;;  %v3618_v13 = vadd.f32 %v10164_v46, %v3240_v19  ;;  %v10167_v41 = vld [vmem:[#allocation47_spill] sm:$0xff] }
 0x4f8   : > { %v3241_v34 = vadd.f32 %v10167_v41, %v2856_v22  ;;  %v10172_v22 = vld [vmem:[#allocation10_spill] sm:$0xff] }
 0x4f9   : > { %v4325_v16 = vpop.f32.mrf.mxu3  ;;  %v4041_v0 = vadd.f32 %v9298_v8, %v3995_v59 }
 0x4fa   : > { %v9355_v2 = vadd.f32 %v9261_v63, %v4325_v16  ;;  %v6691_v63 = vld [vmem:[%s10058_s5 + $0x28] sm:$0xff]  ;;  %v3619_v59 = vadd.f32 %v10168_v17, %v3241_v34 }
 0x4fb   : > { %v9357_v55 = vpop.f32.mrf.mxu0  ;;  %v4085_v32 = vmax.f32 %v4041_v0, 0.0  ;;  %5373 = vmatpush.msra.mxu2 %v6691_v63  ;;  %v10169_v0 = vld [vmem:[#allocation33_spill] sm:$0xff] }
 0x4fc   : > { %v2859_v19 = vadd.f32 %v10170_v37, %v10169_v0 }
 0x4fd   : > { %4129 = vst.msk [vmem:[#allocation3 + $0x130] sm:$0xff] %vm644_vm0, %v4085_v32 }
 0x4fe   : > { %6635 = vmatmul.msk.f32.gmra.mxu3 %vm644_vm0, %v8928_v28  ;;  %6671 = vmatmul.msk.f32.gmra.mxu0 %vm644_vm0, %v9115_v24  ;;  %v3942_v38 = vpop.f32.mrf.mxu1 }
 0x4ff   : > { %v3996_v11 = vadd.f32 %v3942_v38, %v3618_v13  ;;  %v10171_v38 = vld [vmem:[#allocation48_spill] sm:$0xff] }
 0x500   : > { %v3242_v31 = vadd.f32 %v10171_v38, %v2859_v19  ;;  %v10176_v19 = vld [vmem:[#allocation23_spill] sm:$0xff] }
 0x501   : > { %v4328_v5 = vpop.f32.mrf.mxu3  ;;  %v4042_v57 = vadd.f32 %v9298_v8, %v3996_v11 }
 0x502   : > { %v9373_v51 = vadd.f32 %v9280_v14, %v4328_v5  ;;  %v10173_v5 = vld [vmem:[#allocation37_spill] sm:$0xff] }
 0x503   : > { %v4456_v28 = vpop.f32.mrf.mxu0  ;;  %v4086_v15 = vmax.f32 %v4042_v57, 0.0  ;;  %v10174_v57 = vld [vmem:[#allocation57_spill] sm:$0xff] }
 0x504   : > { %v2862_v41 = vadd.f32 %v10174_v57, %v10173_v5 }
 0x505   : > { %4130 = vst.msk [vmem:[#allocation3 + $0x138] sm:$0xff] %vm644_vm0, %v4086_v15 }
 0x506   : > { %6636 = vmatmul.msk.f32.gmra.mxu3 %vm644_vm0, %v8948_v45  ;;  %6672 = vmatmul.msk.f32.gmra.mxu0 %vm644_vm0, %v9138_v1  ;;  %v3945_v16 = vpop.f32.mrf.mxu1  ;;  %v3620_v45 = vadd.f32 %v10172_v22, %v3242_v31 }
 0x507   : > { %v3997_v14 = vadd.f32 %v3945_v16, %v3619_v59  ;;  %v10175_v16 = vld [vmem:[#allocation50_spill] sm:$0xff] }
 0x508   : > { %v3243_v0 = vadd.f32 %v10175_v16, %v2862_v41  ;;  %v9421_v41 = vpop.f32.mrf.mxu2 }
 0x509   : > { %v4331_v32 = vpop.f32.mrf.mxu3  ;;  %v4043_v46 = vadd.f32 %v9298_v8, %v3997_v14 }
 0x50a   : > { %v9386_v13 = vadd.f32 %v9304_v40, %v4331_v32  ;;  %v10177_v32 = vld [vmem:[#allocation39_spill] sm:$0xff] }
 0x50b   : > { %v4459_v63 = vpop.f32.mrf.mxu0  ;;  %v4087_v7 = vmax.f32 %v4043_v46, 0.0  ;;  %v10178_v46 = vld [vmem:[#allocation9_spill] sm:$0xff] }
 0x50c   : > { %v2865_v38 = vadd.f32 %v10178_v46, %v10177_v32  ;;  %v6690_v46 = vld [vmem:[%s10058_s5 + $0x20] sm:$0xff] }
 0x50d   : > { %4131 = vst.msk [vmem:[#allocation3 + $0x140] sm:$0xff] %vm644_vm0, %v4087_v7  ;;  %5374 = vmatpush.msra.mxu2 %v6690_v46  ;;  %v9507_v46 = vld [vmem:[#allocation3 + $0x130] sm:$0xff] }
 0x50e   : > { %6637 = vmatmul.msk.f32.gmra.mxu3 %vm644_vm0, %v8970_v33  ;;  %6673 = vmatmul.msk.f32.gmra.mxu0 %vm644_vm0, %v9160_v56  ;;  %v3948_v11 = vpop.f32.mrf.mxu1  ;;  %v3621_v33 = vadd.f32 %v10176_v19, %v3243_v0 }
 0x50f   : > { %v3998_v40 = vadd.f32 %v3948_v11, %v3620_v45  ;;  %v10179_v11 = vld [vmem:[#allocation52_spill] sm:$0xff] }
 0x510   : > { %v3244_v5 = vadd.f32 %v10179_v11, %v2865_v38 }
 0x511   : > { %v4334_v34 = vpop.f32.mrf.mxu3  ;;  %v4044_v15 = vadd.f32 %v9298_v8, %v3998_v40 }
 0x512   : > { %v9399_v17 = vadd.f32 %v9323_v43, %v4334_v34 }
 0x513   : > { %v4462_v59 = vpop.f32.mrf.mxu0  ;;  %v4088_v37 = vmax.f32 %v4044_v15, 0.0 }
 0x515   : > { %4132 = vst.msk [vmem:[#allocation3 + $0x148] sm:$0xff] %vm644_vm0, %v4088_v37 }
 0x516   : > { %6638 = vmatmul.msk.f32.gmra.mxu3 %vm644_vm0, %v8992_v27  ;;  %6674 = vmatmul.msk.f32.gmra.mxu0 %vm644_vm0, %v9182_v3  ;;  %v3951_v14 = vpop.f32.mrf.mxu1  ;;  %v3622_v27 = vadd.f32 %v9082_v25, %v3244_v5  ;;  %v6719_v25 = vld [vmem:[%s10058_s5 + $0x48] sm:$0xff] }
 0x517   : > { %v3999_v43 = vadd.f32 %v3951_v14, %v3621_v33  ;;  %5544 = vmatpush.msrb.mxu1 %v6719_v25  ;;  %v9494_v25 = vld [vmem:[#allocation3 + $0x128] sm:$0xff] }
 0x519   : > { %v4337_v31 = vpop.f32.mrf.mxu3  ;;  %v4045_v7 = vadd.f32 %v9298_v8, %v3999_v43 }
 0x51a   : > { %v9412_v22 = vadd.f32 %v9342_v39, %v4337_v31 }
 0x51b   : > { %v4465_v45 = vpop.f32.mrf.mxu0  ;;  %v4089_v57 = vmax.f32 %v4045_v7, 0.0 }
 0x51d   : > { %4133 = vst.msk [vmem:[#allocation3 + $0x150] sm:$0xff] %vm644_vm0, %v4089_v57 }
 0x51e   : > { %6639 = vmatmul.msk.f32.gmra.mxu3 %vm644_vm0, %v9016_v20  ;;  %6675 = vmatmul.msk.f32.gmra.mxu0 %vm644_vm0, %v9201_v26  ;;  %v3954_v40 = vpop.f32.mrf.mxu1  ;;  %v9435_v20 = vpop.f32.mrf.mxu2 }
 0x51f   : > { %v4000_v34 = vadd.f32 %v3954_v40, %v3622_v27  ;;  %v9480_v27 = vld [vmem:[#allocation3 + $0x120] sm:$0xff] }
 0x521   : > { %v4340_v39 = vpop.f32.mrf.mxu3  ;;  %v4046_v15 = vadd.f32 %v9298_v8, %v4000_v34  ;;  %v9490_v34 = vld [vmem:[%s10061_s8 + $0x1] ss:$0 sm:$0xff] }
 0x522   : > { %v9425_v16 = vadd.f32 %v9357_v55, %v4340_v39 }
 0x523   : > { %v4468_v0 = vpop.f32.mrf.mxu0  ;;  %v4090_v37 = vmax.f32 %v4046_v15, 0.0 }
 0x525   : > { %4134 = vst.msk [vmem:[#allocation3 + $0x158] sm:$0xff] %vm644_vm0, %v4090_v37 }
 0x526   : > { %6640 = vmatmul.msk.f32.gmra.mxu3 %vm644_vm0, %v9042_v12  ;;  %6676 = vmatmul.msk.f32.gmra.mxu0 %vm644_vm0, %v9220_v48  ;;  %v9445_v32 = vpop.f32.mrf.mxu2 }
 0x529   : > { %v4343_v8 = vpop.f32.mrf.mxu3 }
 0x52a   : > { %v9437_v55 = vadd.f32 %v4456_v28, %v4343_v8 }
 0x52b   : > { %v4471_v19 = vpop.f32.mrf.mxu0 }
 0x52e   : > { %6641 = vmatmul.msk.f32.gmra.mxu3 %vm644_vm0, %v9067_v18  ;;  %6677 = vmatmul.msk.f32.gmra.mxu0 %vm644_vm0, %v9242_v53 }
 0x531   : > { %v4346_v33 = vpop.f32.mrf.mxu3 }
 0x532   : > { %v9443_v14 = vadd.f32 %v4459_v63, %v4346_v33  ;;  %v9456_v63 = vpop.f32.mrf.mxu2 }
 0x533   : > { %v5100_v12 = vpop.f32.mrf.mxu0 }
 0x536   : > { %6642 = vmatmul.msk.f32.gmra.mxu3 %vm644_vm0, %v9092_v36  ;;  %6678 = vmatmul.msk.f32.gmra.mxu0 %vm644_vm0, %v9264_v54 }
 0x539   : > { %v4349_v18 = vpop.f32.mrf.mxu3 }
 0x53a   : > { %v9454_v28 = vadd.f32 %v4462_v59, %v4349_v18  ;;  %v9468_v36 = vpop.f32.mrf.mxu2 }
 0x53b   : > { %v5103_v38 = vpop.f32.mrf.mxu0 }
 0x53e   : > { %6643 = vmatmul.msk.f32.gmra.mxu3 %vm644_vm0, %v9115_v24  ;;  %6679 = vmatmul.msk.f32.gmra.mxu0 %vm644_vm0, %v9283_v10 }
 0x541   : > { %v4352_v43 = vpop.f32.mrf.mxu3 }
 0x542   : > { %v9462_v31 = vadd.f32 %v4465_v45, %v4352_v43  ;;  %v9476_v24 = vpop.f32.mrf.mxu2 }
 0x543   : > { %v5106_v7 = vpop.f32.mrf.mxu0 }
 0x546   : > { %6644 = vmatmul.msk.f32.gmra.mxu3 %vm644_vm0, %v9138_v1  ;;  %6680 = vmatmul.msk.f32.gmra.mxu0 %vm644_vm0, %v9307_v21 }
 0x549   : > { %v4355_v59 = vpop.f32.mrf.mxu3 }
 0x54a   : > { %v9470_v11 = vadd.f32 %v4468_v0, %v4355_v59  ;;  %v9492_v39 = vpop.f32.mrf.mxu2 }
 0x54b   : > { %v5109_v5 = vpop.f32.mrf.mxu0 }
 0x54e   : > { %6645 = vmatmul.msk.f32.gmra.mxu3 %vm644_vm0, %v9160_v56  ;;  %6681 = vmatmul.msk.f32.gmra.mxu0 %vm644_vm0, %v9326_v30 }
 0x551   : > { %v4358_v45 = vpop.f32.mrf.mxu3 }
 0x552   : > { %v9478_v57 = vadd.f32 %v4471_v19, %v4358_v45  ;;  %v9518_v45 = vld [vmem:[#allocation3 + $0x138] sm:$0xff] }
 0x553   : > { %v5112_v1 = vpop.f32.mrf.mxu0 }
 0x556   : > { %6646 = vmatmul.msk.f32.gmra.mxu3 %vm644_vm0, %v9182_v3  ;;  %6682 = vmatmul.msk.f32.gmra.mxu0 %vm644_vm0, %v9480_v27 }
 0x559   : > { %v4854_v40 = vpop.f32.mrf.mxu3 }
 0x55a   : > { %v4938_v56 = vadd.f32 %v4854_v40, %v9110_v50 }
 0x55b   : > { %v5115_v15 = vpop.f32.mrf.mxu0 }
 0x55c   : > { %v5184_v0 = vadd.f32 %v5100_v12, %v4938_v56  ;;  %v9505_v12 = vpop.f32.mrf.mxu2 }
 0x55e   : > { %v5214_v37 = vadd.f32 %v9490_v34, %v5184_v0  ;;  %6647 = vmatmul.msk.f32.gmra.mxu3 %vm644_vm0, %v9201_v26  ;;  %6683 = vmatmul.msk.f32.gmra.mxu0 %vm644_vm0, %v9494_v25 }
 0x560   : > { %v5242_v50 = vmax.f32 %v5214_v37, 0.0 }
 0x561   : > { %v4857_v3 = vpop.f32.mrf.mxu3 }
 0x562   : > { %5270 = vst.msk [vmem:[#allocation4] sm:$0xff] %vm644_vm0, %v5242_v50  ;;  %v4939_v8 = vadd.f32 %v4857_v3, %v9133_v62 }
 0x563   : > { %v9503_v19 = vpop.f32.mrf.mxu0 }
 0x564   : > { %v5185_v33 = vadd.f32 %v5103_v38, %v4939_v8  ;;  %v4696_v8 = vadd.f32 %v9421_v41, %v9106_v58  ;;  %v4697_v58 = vadd.f32 %v9435_v20, %v9129_v60  ;;  %v4698_v60 = vadd.f32 %v9445_v32, %v9152_v49  ;;  %v4993_v49 = vld [vmem:[#allocation3 + $0x158] sm:$0xff] }
 0x566   : > { %v5215_v18 = vadd.f32 %v9490_v34, %v5185_v33  ;;  %6648 = vmatmul.msk.f32.gmra.mxu3 %vm644_vm0, %v9220_v48  ;;  %6684 = vmatmul.msk.f32.gmra.mxu0 %vm644_vm0, %v9507_v46  ;;  %v9525_v48 = vpop.f32.mrf.mxu2 }
 0x568   : > { %v5243_v26 = vmax.f32 %v5215_v18, 0.0 }
 0x569   : > { %v4860_v43 = vpop.f32.mrf.mxu3 }
 0x56a   : > { %5271 = vst.msk [vmem:[#allocation4 + $0x8] sm:$0xff] %vm644_vm0, %v5243_v26  ;;  %v4940_v62 = vadd.f32 %v4860_v43, %v9155_v23  ;;  %v4991_v43 = vld [vmem:[#allocation3 + $0x148] sm:$0xff] }
 0x56b   : > { %v9516_v59 = vpop.f32.mrf.mxu0 }
 0x56c   : > { %v5186_v38 = vadd.f32 %v5106_v7, %v4940_v62  ;;  %v5313_v7 = vld [vmem:[%s10058_s5 + $0x18] sm:$0xff] }
 0x56d   : > { %5436 = vmatpush.msrb.mxu2 %v5313_v7 }
 0x56e   : > { %v5216_v40 = vadd.f32 %v9490_v34, %v5186_v38  ;;  %6649 = vmatmul.msk.f32.gmra.mxu3 %vm644_vm0, %v9242_v53  ;;  %6685 = vmatmul.msk.f32.gmra.mxu0 %vm644_vm0, %v9518_v45  ;;  %v4990_v53 = vld [vmem:[#allocation3 + $0x140] sm:$0xff]  ;;  %v9540_v33 = vpop.f32.mrf.mxu2 }
 0x570   : > { %v5244_v56 = vmax.f32 %v5216_v40, 0.0 }
 0x571   : > { %v4863_v0 = vpop.f32.mrf.mxu3 }
 0x572   : > { %5272 = vst.msk [vmem:[#allocation4 + $0x10] sm:$0xff] %vm644_vm0, %v5244_v56  ;;  %v4941_v23 = vadd.f32 %v4863_v0, %v9177_v6  ;;  %v4992_v0 = vld [vmem:[#allocation3 + $0x150] sm:$0xff] }
 0x573   : > { %v9532_v50 = vpop.f32.mrf.mxu0 }
 0x574   : > { %v5187_v37 = vadd.f32 %v5109_v5, %v4941_v23 }
 0x576   : > { %v5217_v3 = vadd.f32 %v9490_v34, %v5187_v37  ;;  %6650 = vmatmul.msk.f32.gmra.mxu3 %vm644_vm0, %v9264_v54  ;;  %6686 = vmatmul.msk.f32.gmra.mxu0 %vm644_vm0, %v4990_v53  ;;  %v9555_v56 = vpop.f32.mrf.mxu2 }
 0x578   : > { %v5245_v6 = vmax.f32 %v5217_v3, 0.0 }
 0x579   : > { %v4866_v18 = vpop.f32.mrf.mxu3 }
 0x57a   : > { %5273 = vst.msk [vmem:[#allocation4 + $0x18] sm:$0xff] %vm644_vm0, %v5245_v6  ;;  %v4942_v5 = vadd.f32 %v4866_v18, %v4696_v8  ;;  %v4699_v6 = vadd.f32 %v9456_v63, %v9174_v47  ;;  %v4700_v47 = vadd.f32 %v9468_v36, %v9196_v35  ;;  %v4701_v35 = vadd.f32 %v9476_v24, %v9215_v61 }
 0x57b   : > { %v9547_v54 = vpop.f32.mrf.mxu0 }
 0x57c   : > { %v5188_v26 = vadd.f32 %v5112_v1, %v4942_v5  ;;  %v6718_v1 = vld [vmem:[%s10058_s5 + $0x40] sm:$0xff] }
 0x57d   : > { %5545 = vmatpush.msrb.mxu1 %v6718_v1 }
 0x57e   : > { %v5218_v62 = vadd.f32 %v9490_v34, %v5188_v26  ;;  %6651 = vmatmul.msk.f32.gmra.mxu3 %vm644_vm0, %v9283_v10  ;;  %6687 = vmatmul.msk.f32.gmra.mxu0 %vm644_vm0, %v4991_v43  ;;  %v9572_v8 = vpop.f32.mrf.mxu2 }
 0x580   : > { %v5246_v41 = vmax.f32 %v5218_v62, 0.0 }
 0x581   : > { %v4869_v38 = vpop.f32.mrf.mxu3 }
 0x582   : > { %5274 = vst.msk [vmem:[#allocation4 + $0x20] sm:$0xff] %vm644_vm0, %v5246_v41  ;;  %v4943_v40 = vadd.f32 %v4869_v38, %v4697_v58 }
 0x583   : > { %v5130_v7 = vpop.f32.mrf.mxu0 }
 0x584   : > { %v5189_v10 = vadd.f32 %v5115_v15, %v4943_v40 }
 0x586   : > { %v5219_v23 = vadd.f32 %v9490_v34, %v5189_v10  ;;  %6652 = vmatmul.msk.f32.gmra.mxu3 %vm644_vm0, %v9307_v21  ;;  %6688 = vmatmul.msk.f32.gmra.mxu0 %vm644_vm0, %v4992_v0  ;;  %v5312_v21 = vld [vmem:[%s10058_s5 + $0x10] sm:$0xff]  ;;  %v9589_v58 = vpop.f32.mrf.mxu2 }
 0x587   : > { %5437 = vmatpush.msrb.mxu2 %v5312_v21 }
 0x588   : > { %v5247_v20 = vmax.f32 %v5219_v23, 0.0 }
 0x589   : > { %v4872_v37 = vpop.f32.mrf.mxu3  ;;  %v9563_v53 = vld [vmem:[#allocation4 + $0x20] sm:$0xff] }
 0x58a   : > { %5275 = vst.msk [vmem:[#allocation4 + $0x28] sm:$0xff] %vm644_vm0, %v5247_v20  ;;  %v4944_v3 = vadd.f32 %v4872_v37, %v4698_v60  ;;  %6694 = vmatmul.msk.f32.vlgmr.msra.gmra.mxu2 %vm644_vm0, %v9563_v53  ;;  %v4702_v20 = vadd.f32 %v9492_v39, %v9237_v9  ;;  %v4703_v9 = vadd.f32 %v9505_v12, %v9259_v4 }
 0x58b   : > { %v5133_v43 = vpop.f32.mrf.mxu0  ;;  %v4704_v4 = vadd.f32 %v9525_v48, %v9278_v42 }
 0x58c   : > { %v5190_v15 = vadd.f32 %v9503_v19, %v4944_v3 }
 0x58e   : > { %v5220_v32 = vadd.f32 %v9490_v34, %v5190_v15  ;;  %6653 = vmatmul.msk.f32.gmra.mxu3 %vm644_vm0, %v9326_v30  ;;  %6689 = vmatmul.msk.f32.gmra.mxu0 %vm644_vm0, %v4993_v49  ;;  %v9604_v10 = vpop.f32.mrf.mxu2 }
 0x590   : > { %v5248_v18 = vmax.f32 %v5220_v32, 0.0 }
 0x591   : > { %v4875_v5 = vpop.f32.mrf.mxu3  ;;  %v9580_v26 = vld [vmem:[#allocation4 + $0x28] sm:$0xff] }
 0x592   : > { %5276 = vst.msk [vmem:[#allocation4 + $0x30] sm:$0xff] %vm644_vm0, %v5248_v18  ;;  %v4945_v19 = vadd.f32 %v4875_v5, %v4699_v6  ;;  %6695 = vmatmul.msk.f32.gmra.mxu2 %vm644_vm0, %v9580_v26 }
 0x593   : > { %v5136_v1 = vpop.f32.mrf.mxu0 }
 0x594   : > { %v5191_v62 = vadd.f32 %v9516_v59, %v4945_v19 }
 0x596   : > { %v5221_v30 = vadd.f32 %v9490_v34, %v5191_v62  ;;  %6654 = vmatmul.msk.f32.gmra.mxu3 %vm644_vm0, %v9480_v27 }
 0x598   : > { %v5249_v63 = vmax.f32 %v5221_v30, 0.0 }
 0x599   : > { %v4878_v41 = vpop.f32.mrf.mxu3  ;;  %v9593_v38 = vld [vmem:[#allocation4 + $0x30] sm:$0xff] }
 0x59a   : > { %5277 = vst.msk [vmem:[#allocation4 + $0x38] sm:$0xff] %vm644_vm0, %v5249_v63  ;;  %v4946_v40 = vadd.f32 %v4878_v41, %v4700_v47  ;;  %6696 = vmatmul.msk.f32.gmra.mxu2 %vm644_vm0, %v9593_v38 }
 0x59b   : > { %v5139_v24 = vpop.f32.mrf.mxu0 }
 0x59c   : > { %v5192_v59 = vadd.f32 %v9532_v50, %v4946_v40  ;;  %v5311_v50 = vld [vmem:[%s10058_s5 + $0x8] sm:$0xff]  ;;  %v4705_v40 = vadd.f32 %v9540_v33, %v9302_v29  ;;  %v4706_v29 = vadd.f32 %v9555_v56, %v9321_v52  ;;  %v4707_v52 = vadd.f32 %v9572_v8, %v9340_v44 }
 0x59d   : > { %5438 = vmatpush.msrb.mxu2 %v5311_v50 }
 0x59e   : > { %v5222_v27 = vadd.f32 %v9490_v34, %v5192_v59  ;;  %6655 = vmatmul.msk.f32.gmra.mxu3 %vm644_vm0, %v9494_v25 }
 0x5a0   : > { %v5250_v36 = vmax.f32 %v5222_v27, 0.0 }
 0x5a1   : > { %v4881_v0 = vpop.f32.mrf.mxu3  ;;  %v9606_v23 = vld [vmem:[#allocation4 + $0x38] sm:$0xff] }
 0x5a2   : > { %5278 = vst.msk [vmem:[#allocation4 + $0x40] sm:$0xff] %vm644_vm0, %v5250_v36  ;;  %v4947_v60 = vadd.f32 %v4881_v0, %v4701_v35  ;;  %6697 = vmatmul.msk.f32.gmra.mxu2 %vm644_vm0, %v9606_v23 }
 0x5a3   : > { %v5142_v32 = vpop.f32.mrf.mxu0 }
 0x5a4   : > { %v5193_v25 = vadd.f32 %v9547_v54, %v4947_v60  ;;  %v9627_v54 = vpop.f32.mrf.mxu2 }
 0x5a6   : > { %v5223_v61 = vadd.f32 %v9490_v34, %v5193_v25  ;;  %6656 = vmatmul.msk.f32.gmra.mxu3 %vm644_vm0, %v9507_v46 }
 0x5a8   : > { %v5251_v37 = vmax.f32 %v5223_v61, 0.0 }
 0x5a9   : > { %v4884_v3 = vpop.f32.mrf.mxu3  ;;  %v9620_v21 = vld [vmem:[#allocation4 + $0x40] sm:$0xff] }
 0x5aa   : > { %5279 = vst.msk [vmem:[#allocation4 + $0x48] sm:$0xff] %vm644_vm0, %v5251_v37  ;;  %v4948_v15 = vadd.f32 %v4884_v3, %v4702_v20  ;;  %6698 = vmatmul.msk.f32.gmra.mxu2 %vm644_vm0, %v9620_v21  ;;  %6722 = vmatmul.msk.f32.vlgmr.msrb.gmra.mxu1 %vm644_vm0, %v9620_v21 }
 0x5ab   : > { %v5145_v63 = vpop.f32.mrf.mxu0 }
 0x5ac   : > { %v5194_v46 = vadd.f32 %v5130_v7, %v4948_v15  ;;  %v9641_v19 = vpop.f32.mrf.mxu2 }
 0x5ae   : > { %v5224_v49 = vadd.f32 %v9490_v34, %v5194_v46  ;;  %6657 = vmatmul.msk.f32.gmra.mxu3 %vm644_vm0, %v9518_v45 }
 0x5b0   : > { %v5252_v39 = vmax.f32 %v5224_v49, 0.0 }
 0x5b1   : > { %v4887_v6 = vpop.f32.mrf.mxu3  ;;  %v9634_v18 = vld [vmem:[#allocation4 + $0x48] sm:$0xff] }
 0x5b2   : > { %5280 = vst.msk [vmem:[#allocation4 + $0x50] sm:$0xff] %vm644_vm0, %v5252_v39  ;;  %v4949_v5 = vadd.f32 %v4887_v6, %v4703_v9  ;;  %6699 = vmatmul.msk.f32.gmra.mxu2 %vm644_vm0, %v9634_v18  ;;  %6723 = vmatmul.msk.f32.gmra.mxu1 %vm644_vm0, %v9634_v18  ;;  %v6737_v9 = vld [vmem:[%s10058_s5 + $0x78] sm:$0xff] }
 0x5b3   : > { %v5148_v0 = vpop.f32.mrf.mxu0 }
 0x5b4   : > { %v5195_v7 = vadd.f32 %v5133_v43, %v4949_v5  ;;  %v5310_v43 = vld [vmem:[%s10058_s5] sm:$0xff]  ;;  %v9657_v41 = vpop.f32.mrf.mxu2 }
 0x5b5   : > { %5439 = vmatpush.msrb.mxu2 %v5310_v43 }
 0x5b6   : > { %v5225_v45 = vadd.f32 %v9490_v34, %v5195_v7 }
 0x5b7   : > { %5660 = vmatpush.msra.mxu2 %v6737_v9 }
 0x5b8   : > { %v5253_v12 = vmax.f32 %v5225_v45, 0.0 }
 0x5b9   : > { %v4890_v62 = vpop.f32.mrf.mxu3  ;;  %v9646_v30 = vld [vmem:[#allocation4 + $0x50] sm:$0xff] }
 0x5ba   : > { %5281 = vst.msk [vmem:[#allocation4 + $0x58] sm:$0xff] %vm644_vm0, %v5253_v12  ;;  %v4950_v47 = vadd.f32 %v4890_v62, %v4704_v4  ;;  %6700 = vmatmul.msk.f32.gmra.mxu2 %vm644_vm0, %v9646_v30  ;;  %6724 = vmatmul.msk.f32.gmra.mxu1 %vm644_vm0, %v9646_v30  ;;  %v6753_v12 = vld [vmem:[%s10058_s5 + $0x98] sm:$0xff] }
 0x5bb   : > { %v5151_v3 = vpop.f32.mrf.mxu0  ;;  %5778 = vmatpush.msra.mxu1 %v6753_v12 }
 0x5bc   : > { %v5196_v42 = vadd.f32 %v5136_v1, %v4950_v47  ;;  %v9671_v50 = vpop.f32.mrf.mxu2  ;;  %v4709_v47 = vadd.f32 %v9604_v10, %v9373_v51 }
 0x5be   : > { %v5226_v48 = vadd.f32 %v9490_v34, %v5196_v42 }
 0x5c0   : > { %v5254_v59 = vmax.f32 %v5226_v48, 0.0 }
 0x5c1   : > { %v4893_v27 = vpop.f32.mrf.mxu3  ;;  %v9661_v35 = vld [vmem:[#allocation4 + $0x58] sm:$0xff] }
 0x5c2   : > { %5282 = vst.msk [vmem:[#allocation4 + $0x60] sm:$0xff] %vm644_vm0, %v5254_v59  ;;  %v4951_v36 = vadd.f32 %v4893_v27, %v4705_v40  ;;  %6701 = vmatmul.msk.f32.gmra.mxu2 %vm644_vm0, %v9661_v35  ;;  %6725 = vmatmul.msk.f32.gmra.mxu1 %vm644_vm0, %v9661_v35  ;;  %v6752_v27 = vld [vmem:[%s10058_s5 + $0x90] sm:$0xff] }
 0x5c3   : > { %v5154_v5 = vpop.f32.mrf.mxu0  ;;  %5779 = vmatpush.msra.mxu1 %v6752_v27  ;;  %v6735_v27 = vld [vmem:[%s10058_s5 + $0x68] sm:$0xff] }
 0x5c4   : > { %v5197_v1 = vadd.f32 %v5139_v24, %v4951_v36  ;;  %v9693_v39 = vpop.f32.mrf.mxu2  ;;  %v6751_v36 = vld [vmem:[%s10058_s5 + $0x88] sm:$0xff] }
 0x5c5   : > { %5780 = vmatpush.msra.mxu1 %v6751_v36 }
 0x5c6   : > { %v5227_v60 = vadd.f32 %v9490_v34, %v5197_v1  ;;  %v4710_v1 = vadd.f32 %v9627_v54, %v9386_v13  ;;  %v6736_v13 = vld [vmem:[%s10058_s5 + $0x70] sm:$0xff] }
 0x5c7   : > { %5661 = vmatpush.msra.mxu2 %v6736_v13 }
 0x5c8   : > { %v5255_v33 = vmax.f32 %v5227_v60, 0.0 }
 0x5c9   : > { %v4896_v25 = vpop.f32.mrf.mxu3  ;;  %v9673_v61 = vld [vmem:[#allocation4 + $0x60] sm:$0xff]  ;;  %5662 = vmatpush.msra.mxu2 %v6735_v27 }
 0x5ca   : > { %5283 = vst.msk [vmem:[#allocation4 + $0x68] sm:$0xff] %vm644_vm0, %v5255_v33  ;;  %v4952_v20 = vadd.f32 %v4896_v25, %v4706_v29  ;;  %6702 = vmatmul.msk.f32.gmra.mxu2 %vm644_vm0, %v9673_v61  ;;  %6726 = vmatmul.msk.f32.gmra.mxu1 %vm644_vm0, %v9673_v61  ;;  %v5298_v29 = vld [vmem:[#allocation4] sm:$0xff] }
 0x5cb   : > { %v5157_v40 = vpop.f32.mrf.mxu0  ;;  %v6750_v25 = vld [vmem:[%s10058_s5 + $0x80] sm:$0xff] }
 0x5cc   : > { %v5198_v24 = vadd.f32 %v5142_v32, %v4952_v20  ;;  %v4708_v32 = vadd.f32 %v9589_v58, %v9355_v2  ;;  %v9708_v58 = vpop.f32.mrf.mxu2  ;;  %5781 = vmatpush.msra.mxu1 %v6750_v25 }
 0x5ce   : > { %v5228_v37 = vadd.f32 %v9490_v34, %v5198_v24 }
 0x5d0   : > { %v5256_v56 = vmax.f32 %v5228_v37, 0.0 }
 0x5d1   : > { %v4899_v15 = vpop.f32.mrf.mxu3  ;;  %v9683_v46 = vld [vmem:[#allocation4 + $0x68] sm:$0xff] }
 0x5d2   : > { %5284 = vst.msk [vmem:[#allocation4 + $0x70] sm:$0xff] %vm644_vm0, %v5256_v56  ;;  %v4953_v49 = vadd.f32 %v4899_v15, %v4707_v52  ;;  %6703 = vmatmul.msk.f32.gmra.mxu2 %vm644_vm0, %v9683_v46  ;;  %6727 = vmatmul.msk.f32.gmra.mxu1 %vm644_vm0, %v9683_v46 }
 0x5d3   : > { %v5160_v24 = vpop.f32.mrf.mxu0 }
 0x5d4   : > { %v5199_v44 = vadd.f32 %v5145_v63, %v4953_v49  ;;  %v9724_v10 = vpop.f32.mrf.mxu2  ;;  %v5299_v49 = vld [vmem:[#allocation4 + $0x8] sm:$0xff] }
 0x5d6   : > { %v5229_v8 = vadd.f32 %v9490_v34, %v5199_v44 }
 0x5d8   : > { %v5257_v6 = vmax.f32 %v5229_v8, 0.0 }
 0x5d9   : > { %v4902_v7 = vpop.f32.mrf.mxu3  ;;  %v9698_v45 = vld [vmem:[#allocation4 + $0x70] sm:$0xff] }
 0x5da   : > { %5285 = vst.msk [vmem:[#allocation4 + $0x78] sm:$0xff] %vm644_vm0, %v5257_v6  ;;  %v4954_v4 = vadd.f32 %v4902_v7, %v4708_v32  ;;  %6704 = vmatmul.msk.f32.gmra.mxu2 %vm644_vm0, %v9698_v45  ;;  %6728 = vmatmul.msk.f32.gmra.mxu1 %vm644_vm0, %v9698_v45  ;;  %v5300_v7 = vld [vmem:[#allocation4 + $0x10] sm:$0xff] }
 0x5db   : > { %v5163_v6 = vpop.f32.mrf.mxu0 }
 0x5dc   : > { %v5200_v2 = vadd.f32 %v5148_v0, %v4954_v4  ;;  %v9746_v56 = vpop.f32.mrf.mxu2 }
 0x5de   : > { %v5230_v62 = vadd.f32 %v9490_v34, %v5200_v2 }
 0x5e0   : > { %v5258_v43 = vmax.f32 %v5230_v62, 0.0 }
 0x5e1   : > { %v4905_v63 = vpop.f32.mrf.mxu3  ;;  %v9713_v42 = vld [vmem:[#allocation4 + $0x78] sm:$0xff] }
 0x5e2   : > { %5286 = vst.msk [vmem:[#allocation4 + $0x80] sm:$0xff] %vm644_vm0, %v5258_v43  ;;  %v4955_v48 = vadd.f32 %v4905_v63, %v4709_v47  ;;  %6705 = vmatmul.msk.f32.gmra.mxu2 %vm644_vm0, %v9713_v42  ;;  %6729 = vmatmul.msk.f32.gmra.mxu1 %vm644_vm0, %v9713_v42 }
 0x5e3   : > { %v5166_v43 = vpop.f32.mrf.mxu0 }
 0x5e4   : > { %v5201_v59 = vadd.f32 %v5151_v3, %v4955_v48  ;;  %v4711_v3 = vadd.f32 %v9641_v19, %v9399_v17  ;;  %v4712_v17 = vadd.f32 %v9657_v41, %v9412_v22  ;;  %v9763_v2 = vpop.f32.mrf.mxu2  ;;  %v4713_v22 = vadd.f32 %v9671_v50, %v9425_v16  ;;  %v5301_v48 = vld [vmem:[#allocation4 + $0x18] sm:$0xff] }
 0x5e5   : > { %v6769_v16 = vld [vmem:[%s10059_s6 + $0x38] sm:$0xff] }
 0x5e6   : > { %v5231_v51 = vadd.f32 %v9490_v34, %v5201_v59  ;;  %5910 = vmatpush.msrb.mxu3 %v6769_v16 }
 0x5e8   : > { %v5259_v0 = vmax.f32 %v5231_v51, 0.0 }
 0x5e9   : > { %v4908_v60 = vpop.f32.mrf.mxu3  ;;  %v9731_v33 = vld [vmem:[#allocation4 + $0x80] sm:$0xff] }
 0x5ea   : > { %5287 = vst.msk [vmem:[#allocation4 + $0x88] sm:$0xff] %vm644_vm0, %v5259_v0  ;;  %v4956_v20 = vadd.f32 %v4908_v60, %v4710_v1  ;;  %6706 = vmatmul.msk.f32.vlgmr.msrb.gmra.mxu2 %vm644_vm0, %v5298_v29  ;;  %6730 = vmatmul.msk.f32.gmra.mxu1 %vm644_vm0, %v9731_v33  ;;  %v4714_v1 = vadd.f32 %v9693_v39, %v9437_v55 }
 0x5eb   : > { %v5169_v25 = vpop.f32.mrf.mxu0  ;;  %v4715_v55 = vadd.f32 %v9708_v58, %v9443_v14  ;;  %v4716_v14 = vadd.f32 %v9724_v10, %v9454_v28 }
 0x5ec   : > { %v5202_v54 = vadd.f32 %v5154_v5, %v4956_v20  ;;  %v4689_v51 = vpop.f32.mrf.mxu2 }
 0x5ee   : > { %v5232_v37 = vadd.f32 %v9490_v34, %v5202_v54 }
 0x5f0   : > { %v5260_v52 = vmax.f32 %v5232_v37, 0.0 }
 0x5f1   : > { %v4911_v15 = vpop.f32.mrf.mxu3  ;;  %v9748_v9 = vld [vmem:[#allocation4 + $0x88] sm:$0xff] }
 0x5f2   : > { %5288 = vst.msk [vmem:[#allocation4 + $0x90] sm:$0xff] %vm644_vm0, %v5260_v52  ;;  %v4957_v44 = vadd.f32 %v4911_v15, %v4711_v3  ;;  %6707 = vmatmul.msk.f32.gmra.mxu2 %vm644_vm0, %v5299_v49  ;;  %6731 = vmatmul.msk.f32.gmra.mxu1 %vm644_vm0, %v9748_v9 }
 0x5f3   : > { %v5172_v3 = vpop.f32.mrf.mxu0 }
 0x5f4   : > { %v5203_v8 = vadd.f32 %v5157_v40, %v4957_v44 }
 0x5f6   : > { %v5233_v32 = vadd.f32 %v9490_v34, %v5203_v8 }
 0x5f8   : > { %v5261_v19 = vmax.f32 %v5233_v32, 0.0 }
 0x5f9   : > { %v4914_v5 = vpop.f32.mrf.mxu3  ;;  %v9757_v4 = vld [vmem:[#allocation4 + $0x90] sm:$0xff] }
 0x5fa   : > { %5289 = vst.msk [vmem:[#allocation4 + $0x98] sm:$0xff] %vm644_vm0, %v5261_v19  ;;  %v4958_v12 = vadd.f32 %v4914_v5, %v4712_v17  ;;  %6708 = vmatmul.msk.f32.gmra.mxu2 %vm644_vm0, %v5300_v7  ;;  %6732 = vmatmul.msk.f32.gmra.mxu1 %vm644_vm0, %v9757_v4  ;;  %v5876_v5 = vld [vmem:[%s10059_s6 + $0x18] sm:$0xff] }
 0x5fb   : > { %v5175_v10 = vpop.f32.mrf.mxu0  ;;  %5951 = vmatpush.msra.mxu0 %v5876_v5 }
 0x5fc   : > { %v5204_v62 = vadd.f32 %v5160_v24, %v4958_v12 }
 0x5fe   : > { %v5234_v47 = vadd.f32 %v9490_v34, %v5204_v62 }
 0x600   : > { %v5262_v41 = vmax.f32 %v5234_v47, 0.0 }
 0x601   : > { %v4917_v63 = vpop.f32.mrf.mxu3  ;;  %v9768_v40 = vld [vmem:[#allocation4 + $0x98] sm:$0xff] }
 0x602   : > { %5290 = vst.msk [vmem:[#allocation4 + $0xa0] sm:$0xff] %vm644_vm0, %v5262_v41  ;;  %v4959_v59 = vadd.f32 %v4917_v63, %v4713_v22  ;;  %6709 = vmatmul.msk.f32.gmra.mxu2 %vm644_vm0, %v5301_v48  ;;  %6733 = vmatmul.msk.f32.gmra.mxu1 %vm644_vm0, %v9768_v40 }
 0x603   : > { %v5178_v47 = vpop.f32.mrf.mxu0 }
 0x604   : > { %v5205_v50 = vadd.f32 %v5163_v6, %v4959_v59  ;;  %v4717_v6 = vadd.f32 %v9746_v56, %v9462_v31  ;;  %v4718_v56 = vadd.f32 %v9763_v2, %v9470_v11  ;;  %v4719_v11 = vadd.f32 %v4689_v51, %v9478_v57 }
 0x606   : > { %v5235_v36 = vadd.f32 %v9490_v34, %v5205_v50 }
 0x608   : > { %v5263_v0 = vmax.f32 %v5235_v36, 0.0 }
 0x609   : > { %v4920_v60 = vpop.f32.mrf.mxu3 }
 0x60a   : > { %5291 = vst.msk [vmem:[#allocation4 + $0xa8] sm:$0xff] %vm644_vm0, %v5263_v0  ;;  %v4960_v29 = vadd.f32 %v4920_v60, %v4714_v1  ;;  %6710 = vmatmul.msk.f32.gmra.mxu2 %vm644_vm0, %v9563_v53  ;;  %6754 = vmatmul.msk.f32.vlgmr.msra.gmra.mxu1 %vm644_vm0, %v9731_v33  ;;  %v6768_v1 = vld [vmem:[%s10059_s6 + $0x30] sm:$0xff] }
 0x60b   : > { %5911 = vmatpush.msrb.mxu3 %v6768_v1 }
 0x60c   : > { %v5206_v20 = vadd.f32 %v5166_v43, %v4960_v29 }
 0x60d   : > { %v9788_v13 = vpop.f32.mrf.mxu2 }
 0x60e   : > { %v5236_v54 = vadd.f32 %v9490_v34, %v5206_v20 }
 0x610   : > { %v5264_v39 = vmax.f32 %v5236_v54, 0.0 }
 0x611   : > { %v4923_v24 = vpop.f32.mrf.mxu3  ;;  %v5718_v27 = vld [vmem:[#allocation4 + $0xa8] sm:$0xff] }
 0x612   : > { %5292 = vst.msk [vmem:[#allocation4 + $0xb0] sm:$0xff] %vm644_vm0, %v5264_v39  ;;  %v4961_v37 = vadd.f32 %v4923_v24, %v4715_v55  ;;  %6711 = vmatmul.msk.f32.gmra.mxu2 %vm644_vm0, %v9580_v26  ;;  %6755 = vmatmul.msk.f32.gmra.mxu1 %vm644_vm0, %v9748_v9  ;;  %v6734_v26 = vld [vmem:[%s10058_s5 + $0x60] sm:$0xff] }
 0x613   : > { %5663 = vmatpush.msra.mxu2 %v6734_v26 }
 0x614   : > { %v5207_v53 = vadd.f32 %v5169_v25, %v4961_v37 }
 0x615   : > { %v9798_v52 = vpop.f32.mrf.mxu2 }
 0x616   : > { %v5237_v15 = vadd.f32 %v9490_v34, %v5207_v53 }
 0x618   : > { %v5265_v58 = vmax.f32 %v5237_v15, 0.0  ;;  %v6767_v15 = vld [vmem:[%s10059_s6 + $0x28] sm:$0xff] }
 0x619   : > { %v4926_v49 = vpop.f32.mrf.mxu3  ;;  %v5719_v0 = vld [vmem:[#allocation4 + $0xb0] sm:$0xff]  ;;  %5912 = vmatpush.msrb.mxu3 %v6767_v15 }
 0x61a   : > { %5293 = vst.msk [vmem:[#allocation4 + $0xb8] sm:$0xff] %vm644_vm0, %v5265_v58  ;;  %v4962_v44 = vadd.f32 %v4926_v49, %v4716_v14  ;;  %6712 = vmatmul.msk.f32.gmra.mxu2 %vm644_vm0, %v9593_v38  ;;  %6756 = vmatmul.msk.f32.gmra.mxu1 %vm644_vm0, %v9757_v4 }
 0x61c   : > { %v5208_v8 = vadd.f32 %v5172_v3, %v4962_v44 }
 0x61d   : > { %v9811_v32 = vpop.f32.mrf.mxu2 }
 0x61e   : > { %v5238_v28 = vadd.f32 %v9490_v34, %v5208_v8 }
 0x620   : > { %v5266_v17 = vmax.f32 %v5238_v28, 0.0 }
 0x621   : > { %v4929_v19 = vpop.f32.mrf.mxu3  ;;  %v5720_v29 = vld [vmem:[#allocation4 + $0xb8] sm:$0xff] }
 0x622   : > { %5294 = vst.msk [vmem:[#allocation4 + $0xc0] sm:$0xff] %vm644_vm0, %v5266_v17  ;;  %v4963_v38 = vadd.f32 %v4929_v19, %v4717_v6  ;;  %6713 = vmatmul.msk.f32.gmra.mxu2 %vm644_vm0, %v9606_v23  ;;  %6757 = vmatmul.msk.f32.gmra.mxu1 %vm644_vm0, %v9768_v40  ;;  %v9829_v23 = vld [vmem:[#allocation4 + $0xa0] sm:$0xff] }
 0x623   : > { %v6766_v17 = vld [vmem:[%s10059_s6 + $0x20] sm:$0xff] }
 0x624   : > { %v5209_v7 = vadd.f32 %v5175_v10, %v4963_v38  ;;  %5913 = vmatpush.msrb.mxu3 %v6766_v17 }
 0x625   : > { %v9824_v12 = vpop.f32.mrf.mxu2 }
 0x626   : > { %v5239_v31 = vadd.f32 %v9490_v34, %v5209_v7 }
 0x627   : > { %v9856_v60 = vpop.f32.mrf.mxu1 }
 0x628   : > { %v5267_v62 = vmax.f32 %v5239_v31, 0.0 }
 0x629   : > { %v4932_v22 = vpop.f32.mrf.mxu3  ;;  %v5721_v25 = vld [vmem:[#allocation4 + $0xc0] sm:$0xff] }
 0x62a   : > { %5295 = vst.msk [vmem:[#allocation4 + $0xc8] sm:$0xff] %vm644_vm0, %v5267_v62  ;;  %v4964_v41 = vadd.f32 %v4932_v22, %v4718_v56  ;;  %6714 = vmatmul.msk.f32.gmra.mxu2 %vm644_vm0, %v9620_v21  ;;  %6758 = vmatmul.msk.f32.gmra.mxu1 %vm644_vm0, %v9829_v23  ;;  %v5181_v21 = vpop.f32.mrf.mxu0  ;;  %v5873_v56 = vld [vmem:[%s10059_s6] sm:$0xff] }
 0x62c   : > { %v5210_v43 = vadd.f32 %v5178_v47, %v4964_v41 }
 0x62d   : > { %v9836_v63 = vpop.f32.mrf.mxu2 }
 0x62e   : > { %v5240_v48 = vadd.f32 %v9490_v34, %v5210_v43 }
 0x630   : > { %v5268_v2 = vmax.f32 %v5240_v48, 0.0 }
 0x631   : > { %v4935_v59 = vpop.f32.mrf.mxu3  ;;  %v5722_v54 = vld [vmem:[#allocation4 + $0xc8] sm:$0xff] }
 0x632   : > { %5296 = vst.msk [vmem:[#allocation4 + $0xd0] sm:$0xff] %vm644_vm0, %v5268_v2  ;;  %v4965_v16 = vadd.f32 %v4935_v59, %v4719_v11  ;;  %6715 = vmatmul.msk.f32.gmra.mxu2 %vm644_vm0, %v9634_v18  ;;  %6759 = vmatmul.msk.f32.gmra.mxu1 %vm644_vm0, %v5718_v27  ;;  %v9952_v11 = vld [vmem:[%s10061_s8 + $0x2] ss:$0 sm:$0xff] }
 0x634   : > { %v5211_v50 = vadd.f32 %v5181_v21, %v4965_v16 }
 0x635   : > { %v9844_v36 = vpop.f32.mrf.mxu2 }
 0x636   : > { %v5241_v57 = vadd.f32 %v9490_v34, %v5211_v50 }
 0x638   : > { %v5269_v51 = vmax.f32 %v5241_v57, 0.0 }
 0x639   : > { %v5723_v39 = vld [vmem:[#allocation4 + $0xd0] sm:$0xff] }
 0x63a   : > { %5297 = vst.msk [vmem:[#allocation4 + $0xd8] sm:$0xff] %vm644_vm0, %v5269_v51  ;;  %6716 = vmatmul.msk.f32.gmra.mxu2 %vm644_vm0, %v9646_v30  ;;  %6760 = vmatmul.msk.f32.gmra.mxu1 %vm644_vm0, %v5719_v0  ;;  %v9866_v30 = vpop.f32.mrf.mxu1 }
 0x63d   : > { %v9854_v18 = vpop.f32.mrf.mxu2 }
 0x641   : > { %v5724_v37 = vld [vmem:[#allocation4 + $0xd8] sm:$0xff] }
 0x642   : > { %6717 = vmatmul.msk.f32.gmra.mxu2 %vm644_vm0, %v9661_v35  ;;  %6761 = vmatmul.msk.f32.gmra.mxu1 %vm644_vm0, %v5720_v29  ;;  %v9873_v35 = vpop.f32.mrf.mxu1 }
 0x645   : > { %v9861_v34 = vpop.f32.mrf.mxu2 }
 0x64a   : > { %6738 = vmatmul.msk.f32.vlgmr.msra.gmra.mxu2 %vm644_vm0, %v9673_v61  ;;  %6762 = vmatmul.msk.f32.gmra.mxu1 %vm644_vm0, %v5721_v25  ;;  %v5875_v61 = vld [vmem:[%s10059_s6 + $0x10] sm:$0xff] }
 0x64b   : > { %5952 = vmatpush.msra.mxu0 %v5875_v61 }
 0x64d   : > { %v9868_v20 = vpop.f32.mrf.mxu2 }
 0x652   : > { %6739 = vmatmul.msk.f32.gmra.mxu2 %vm644_vm0, %v9683_v46  ;;  %6763 = vmatmul.msk.f32.gmra.mxu1 %vm644_vm0, %v5722_v54  ;;  %v9885_v46 = vpop.f32.mrf.mxu1 }
 0x655   : > { %v9875_v55 = vpop.f32.mrf.mxu2 }
 0x65a   : > { %6740 = vmatmul.msk.f32.gmra.mxu2 %vm644_vm0, %v9698_v45  ;;  %6764 = vmatmul.msk.f32.gmra.mxu1 %vm644_vm0, %v5723_v39  ;;  %v9892_v45 = vpop.f32.mrf.mxu1 }
 0x65d   : > { %v9883_v24 = vpop.f32.mrf.mxu2 }
 0x662   : > { %6741 = vmatmul.msk.f32.gmra.mxu2 %vm644_vm0, %v9713_v42  ;;  %6765 = vmatmul.msk.f32.gmra.mxu1 %vm644_vm0, %v5724_v37  ;;  %v9901_v14 = vpop.f32.mrf.mxu1 }
 0x665   : > { %v9890_v53 = vpop.f32.mrf.mxu2 }
 0x66a   : > { %6742 = vmatmul.msk.f32.gmra.mxu2 %vm644_vm0, %v9731_v33  ;;  %v9905_v58 = vpop.f32.mrf.mxu1 }
 0x66d   : > { %v5441_v3 = vpop.f32.mrf.mxu2 }
 0x66e   : > { %v5442_v22 = vadd.f32 %v5441_v3, %v9788_v13 }
 0x672   : > { %6743 = vmatmul.msk.f32.gmra.mxu2 %vm644_vm0, %v9748_v9  ;;  %v9909_v44 = vpop.f32.mrf.mxu1  ;;  %v5874_v9 = vld [vmem:[%s10059_s6 + $0x8] sm:$0xff] }
 0x673   : > { %5953 = vmatpush.msra.mxu0 %v5874_v9 }
 0x675   : > { %v5444_v42 = vpop.f32.mrf.mxu2  ;;  %5954 = vmatpush.msra.mxu0 %v5873_v56 }
 0x676   : > { %v5445_v2 = vadd.f32 %v5444_v42, %v9798_v52 }
 0x678   : > { %v5584_v21 = vadd.f32 %v9866_v30, %v5445_v2 }
 0x67a   : > { %6744 = vmatmul.msk.f32.gmra.mxu2 %vm644_vm0, %v9757_v4  ;;  %v9916_v8 = vpop.f32.mrf.mxu1 }
 0x67d   : > { %v5447_v49 = vpop.f32.mrf.mxu2 }
 0x67e   : > { %v5448_v57 = vadd.f32 %v5447_v49, %v9811_v32  ;;  %v6781_v49 = vld [vmem:[%s10059_s6 + $0x58] sm:$0xff] }
 0x67f   : > { %6001 = vmatpush.msra.mxu3 %v6781_v49 }
 0x682   : > { %6745 = vmatmul.msk.f32.gmra.mxu2 %vm644_vm0, %v9768_v40  ;;  %v9922_v40 = vpop.f32.mrf.mxu1 }
 0x685   : > { %v5450_v33 = vpop.f32.mrf.mxu2 }
 0x686   : > { %v5451_v30 = vadd.f32 %v5450_v33, %v9824_v12 }
 0x688   : > { %v5586_v3 = vadd.f32 %v9885_v46, %v5451_v30 }
 0x68a   : > { %6746 = vmatmul.msk.f32.gmra.mxu2 %vm644_vm0, %v9829_v23  ;;  %v9927_v10 = vpop.f32.mrf.mxu1  ;;  %v5583_v23 = vadd.f32 %v9856_v60, %v5442_v22 }
 0x68d   : > { %v5453_v26 = vpop.f32.mrf.mxu2 }
 0x68e   : > { %v5454_v12 = vadd.f32 %v5453_v26, %v9836_v63 }
 0x690   : > { %v5587_v46 = vadd.f32 %v9892_v45, %v5454_v12 }
 0x692   : > { %6747 = vmatmul.msk.f32.gmra.mxu2 %vm644_vm0, %v5718_v27  ;;  %v9936_v38 = vpop.f32.mrf.mxu1 }
 0x695   : > { %v9919_v4 = vpop.f32.mrf.mxu2 }
 0x696   : > { %v5457_v63 = vadd.f32 %v9919_v4, %v9844_v36 }
 0x698   : > { %v5588_v45 = vadd.f32 %v9901_v14, %v5457_v63 }
 0x69a   : > { %6748 = vmatmul.msk.f32.gmra.mxu2 %vm644_vm0, %v5719_v0  ;;  %v5783_v7 = vpop.f32.mrf.mxu1 }
 0x69d   : > { %v9924_v28 = vpop.f32.mrf.mxu2 }
 0x69e   : > { %v5460_v36 = vadd.f32 %v9924_v28, %v9854_v18 }
 0x6a2   : > { %6749 = vmatmul.msk.f32.gmra.mxu2 %vm644_vm0, %v5720_v29  ;;  %v5786_v62 = vpop.f32.mrf.mxu1  ;;  %v5585_v29 = vadd.f32 %v9873_v35, %v5448_v57  ;;  %v6778_v57 = vld [vmem:[%s10059_s6 + $0x40] sm:$0xff] }
 0x6a5   : > { %v9929_v6 = vpop.f32.mrf.mxu2 }
 0x6a6   : > { %v5463_v18 = vadd.f32 %v9929_v6, %v9861_v34 }
 0x6aa   : > { %v5789_v41 = vpop.f32.mrf.mxu1 }
 0x6ad   : > { %v9934_v19 = vpop.f32.mrf.mxu2 }
 0x6ae   : > { %v5466_v30 = vadd.f32 %v9934_v19, %v9868_v20 }
 0x6b2   : > { %v5792_v1 = vpop.f32.mrf.mxu1 }
 0x6b5   : > { %v9938_v5 = vpop.f32.mrf.mxu2 }
 0x6ba   : > { %v5795_v61 = vpop.f32.mrf.mxu1 }
 0x6bd   : > { %v9940_v31 = vpop.f32.mrf.mxu2 }
 0x6c2   : > { %v5798_v17 = vpop.f32.mrf.mxu1 }
 0x6c5   : > { %v9945_v47 = vpop.f32.mrf.mxu2 }
 0x6cd   : > { %v5665_v43 = vpop.f32.mrf.mxu2 }
 0x6ce   : > { %v5701_v48 = vadd.f32 %v5665_v43, %v5583_v23  ;;  %v6780_v23 = vld [vmem:[%s10059_s6 + $0x50] sm:$0xff] }
 0x6cf   : > { %6002 = vmatpush.msra.mxu3 %v6780_v23 }
 0x6d0   : > { %v5819_v59 = vadd.f32 %v5783_v7, %v5701_v48  ;;  %v5801_v48 = vpop.f32.mrf.mxu1 }
 0x6d2   : > { %v5833_v27 = vadd.f32 %v9952_v11, %v5819_v59 }
 0x6d4   : > { %v5845_v16 = vmax.f32 %v5833_v27, 0.0 }
 0x6d5   : > { %v5668_v50 = vpop.f32.mrf.mxu2 }
 0x6d6   : > { %5857 = vst.msk [vmem:[#allocation5] sm:$0xff] %vm644_vm0, %v5845_v16  ;;  %v5702_v13 = vadd.f32 %v5668_v50, %v5584_v21  ;;  %v6779_v16 = vld [vmem:[%s10059_s6 + $0x48] sm:$0xff]  ;;  %v5589_v50 = vadd.f32 %v9905_v58, %v5460_v36 }
 0x6d7   : > { %6003 = vmatpush.msra.mxu3 %v6779_v16 }
 0x6d8   : > { %v5820_v51 = vadd.f32 %v5786_v62, %v5702_v13 }
 0x6d9   : > { %6004 = vmatpush.msra.mxu3 %v6778_v57 }
 0x6da   : > { %v5834_v0 = vadd.f32 %v9952_v11, %v5820_v51 }
 0x6dc   : > { %v5846_v60 = vmax.f32 %v5834_v0, 0.0  ;;  %v5804_v0 = vpop.f32.mrf.mxu1 }
 0x6dd   : > { %v5671_v52 = vpop.f32.mrf.mxu2  ;;  %v5869_v25 = vld [vmem:[#allocation5] sm:$0xff] }
 0x6de   : > { %5858 = vst.msk [vmem:[#allocation5 + $0x8] sm:$0xff] %vm644_vm0, %v5846_v60  ;;  %v5703_v54 = vadd.f32 %v5671_v52, %v5585_v29  ;;  %6774 = vmatmul.msk.f32.vlgmr.msra.gmra.mxu0 %vm644_vm0, %v5869_v25  ;;  %v5590_v29 = vadd.f32 %v9909_v44, %v5463_v18 }
 0x6e0   : > { %v5821_v39 = vadd.f32 %v5789_v41, %v5703_v54 }
 0x6e2   : > { %v5835_v37 = vadd.f32 %v9952_v11, %v5821_v39 }
 0x6e4   : > { %v5847_v32 = vmax.f32 %v5835_v37, 0.0  ;;  %v5591_v37 = vadd.f32 %v9916_v8, %v5466_v30 }
 0x6e5   : > { %v5674_v15 = vpop.f32.mrf.mxu2  ;;  %v5870_v42 = vld [vmem:[#allocation5 + $0x8] sm:$0xff] }
 0x6e6   : > { %5859 = vst.msk [vmem:[#allocation5 + $0x10] sm:$0xff] %vm644_vm0, %v5847_v32  ;;  %v5704_v35 = vadd.f32 %v5674_v15, %v5586_v3  ;;  %6775 = vmatmul.msk.f32.gmra.mxu0 %vm644_vm0, %v5870_v42  ;;  %v5469_v15 = vadd.f32 %v9938_v5, %v9875_v55 }
 0x6e8   : > { %v5822_v33 = vadd.f32 %v5792_v1, %v5704_v35  ;;  %v5592_v49 = vadd.f32 %v9922_v40, %v5469_v15 }
 0x6ea   : > { %v5836_v9 = vadd.f32 %v9952_v11, %v5822_v33 }
 0x6ec   : > { %v5848_v7 = vmax.f32 %v5836_v9, 0.0  ;;  %v5472_v9 = vadd.f32 %v9940_v31, %v9883_v24 }
 0x6ed   : > { %v5677_v56 = vpop.f32.mrf.mxu2  ;;  %v5871_v62 = vld [vmem:[#allocation5 + $0x10] sm:$0xff] }
 0x6ee   : > { %5860 = vst.msk [vmem:[#allocation5 + $0x18] sm:$0xff] %vm644_vm0, %v5848_v7  ;;  %v5705_v22 = vadd.f32 %v5677_v56, %v5587_v46  ;;  %6776 = vmatmul.msk.f32.gmra.mxu0 %vm644_vm0, %v5871_v62  ;;  %v5593_v7 = vadd.f32 %v9927_v10, %v5472_v9 }
 0x6f0   : > { %v5823_v26 = vadd.f32 %v5795_v61, %v5705_v22  ;;  %v5807_v61 = vpop.f32.mrf.mxu1  ;;  %v5475_v22 = vadd.f32 %v9945_v47, %v9890_v53 }
 0x6f2   : > { %v5837_v41 = vadd.f32 %v9952_v11, %v5823_v26  ;;  %v5594_v63 = vadd.f32 %v9936_v38, %v5475_v22 }
 0x6f4   : > { %v5849_v43 = vmax.f32 %v5837_v41, 0.0 }
 0x6f5   : > { %v5680_v2 = vpop.f32.mrf.mxu2  ;;  %v5872_v59 = vld [vmem:[#allocation5 + $0x18] sm:$0xff] }
 0x6f6   : > { %5861 = vst.msk [vmem:[#allocation5 + $0x20] sm:$0xff] %vm644_vm0, %v5849_v43  ;;  %v5706_v27 = vadd.f32 %v5680_v2, %v5588_v45  ;;  %6777 = vmatmul.msk.f32.gmra.mxu0 %vm644_vm0, %v5872_v59 }
 0x6f8   : > { %v5824_v4 = vadd.f32 %v5798_v17, %v5706_v27  ;;  %v5810_v19 = vpop.f32.mrf.mxu1 }
 0x6fa   : > { %v5838_v21 = vadd.f32 %v9952_v11, %v5824_v4 }
 0x6fc   : > { %v5850_v14 = vmax.f32 %v5838_v21, 0.0 }
 0x6fd   : > { %v5683_v13 = vpop.f32.mrf.mxu2  ;;  %v5877_v1 = vld [vmem:[#allocation5 + $0x20] sm:$0xff] }
 0x6fe   : > { %5862 = vst.msk [vmem:[#allocation5 + $0x28] sm:$0xff] %vm644_vm0, %v5850_v14  ;;  %v5707_v51 = vadd.f32 %v5683_v13, %v5589_v50  ;;  %6770 = vmatmul.msk.f32.vlgmr.msrb.gmra.mxu3 %vm644_vm0, %v5877_v1 }
 0x700   : > { %v5825_v28 = vadd.f32 %v5801_v48, %v5707_v51  ;;  %v5813_v46 = vpop.f32.mrf.mxu1 }
 0x702   : > { %v5839_v60 = vadd.f32 %v9952_v11, %v5825_v28 }
 0x704   : > { %v5851_v58 = vmax.f32 %v5839_v60, 0.0 }
 0x705   : > { %v5686_v52 = vpop.f32.mrf.mxu2  ;;  %v5878_v25 = vld [vmem:[#allocation5 + $0x28] sm:$0xff] }
 0x706   : > { %5863 = vst.msk [vmem:[#allocation5 + $0x30] sm:$0xff] %vm644_vm0, %v5851_v58  ;;  %v5708_v54 = vadd.f32 %v5686_v52, %v5590_v29  ;;  %6771 = vmatmul.msk.f32.gmra.mxu3 %vm644_vm0, %v5878_v25 }
 0x708   : > { %v5826_v39 = vadd.f32 %v5804_v0, %v5708_v54  ;;  %v5816_v43 = vpop.f32.mrf.mxu1 }
 0x70a   : > { %v5840_v34 = vadd.f32 %v9952_v11, %v5826_v39 }
 0x70c   : > { %v5852_v6 = vmax.f32 %v5840_v34, 0.0 }
 0x70d   : > { %v5689_v32 = vpop.f32.mrf.mxu2  ;;  %v5879_v3 = vld [vmem:[#allocation5 + $0x30] sm:$0xff] }
 0x70e   : > { %5864 = vst.msk [vmem:[#allocation5 + $0x38] sm:$0xff] %vm644_vm0, %v5852_v6  ;;  %v5709_v44 = vadd.f32 %v5689_v32, %v5591_v37  ;;  %6772 = vmatmul.msk.f32.gmra.mxu3 %vm644_vm0, %v5879_v3 }
 0x710   : > { %v5827_v42 = vadd.f32 %v5807_v61, %v5709_v44 }
 0x712   : > { %v5841_v20 = vadd.f32 %v9952_v11, %v5827_v42 }
 0x714   : > { %v5853_v35 = vmax.f32 %v5841_v20, 0.0 }
 0x715   : > { %v5692_v12 = vpop.f32.mrf.mxu2  ;;  %v5880_v33 = vld [vmem:[#allocation5 + $0x38] sm:$0xff] }
 0x716   : > { %5865 = vst.msk [vmem:[#allocation5 + $0x40] sm:$0xff] %vm644_vm0, %v5853_v35  ;;  %v5710_v8 = vadd.f32 %v5692_v12, %v5592_v49  ;;  %6773 = vmatmul.msk.f32.gmra.mxu3 %vm644_vm0, %v5880_v33 }
 0x718   : > { %v5828_v17 = vadd.f32 %v5810_v19, %v5710_v8 }
 0x71a   : > { %v5842_v55 = vadd.f32 %v9952_v11, %v5828_v17 }
 0x71c   : > { %v5854_v5 = vmax.f32 %v5842_v55, 0.0 }
 0x71d   : > { %v5695_v56 = vpop.f32.mrf.mxu2  ;;  %v5968_v62 = vld [vmem:[#allocation5 + $0x40] sm:$0xff] }
 0x71e   : > { %5866 = vst.msk [vmem:[#allocation5 + $0x48] sm:$0xff] %vm644_vm0, %v5854_v5  ;;  %v5711_v40 = vadd.f32 %v5695_v56, %v5593_v7  ;;  %6782 = vmatmul.msk.f32.vlgmr.msra.gmra.mxu3 %vm644_vm0, %v5968_v62 }
 0x720   : > { %v5829_v23 = vadd.f32 %v5813_v46, %v5711_v40 }
 0x722   : > { %v5843_v24 = vadd.f32 %v9952_v11, %v5829_v23 }
 0x724   : > { %v5855_v31 = vmax.f32 %v5843_v24, 0.0 }
 0x725   : > { %v5698_v26 = vpop.f32.mrf.mxu2  ;;  %v5969_v41 = vld [vmem:[#allocation5 + $0x48] sm:$0xff] }
 0x726   : > { %5867 = vst.msk [vmem:[#allocation5 + $0x50] sm:$0xff] %vm644_vm0, %v5855_v31  ;;  %v5712_v10 = vadd.f32 %v5698_v26, %v5594_v63  ;;  %6783 = vmatmul.msk.f32.gmra.mxu3 %vm644_vm0, %v5969_v41 }
 0x728   : > { %v5830_v45 = vadd.f32 %v5816_v43, %v5712_v10 }
 0x72a   : > { %v5844_v48 = vadd.f32 %v9952_v11, %v5830_v45  ;;  %v6860_v11 = vld [vmem:[%s10062_s9] ss:$0 sm:$0xff] }
 0x72c   : > { %v5856_v2 = vmax.f32 %v5844_v48, 0.0 }
 0x72d   : > { %v5970_v53 = vld [vmem:[#allocation5 + $0x50] sm:$0xff] }
 0x72e   : > { %5868 = vst.msk [vmem:[#allocation5 + $0x58] sm:$0xff] %vm644_vm0, %v5856_v2  ;;  %6784 = vmatmul.msk.f32.gmra.mxu3 %vm644_vm0, %v5970_v53 }
 0x735   : > { %v5971_v47 = vld [vmem:[#allocation5 + $0x58] sm:$0xff] }
 0x736   : > { %6785 = vmatmul.msk.f32.gmra.mxu3 %vm644_vm0, %v5971_v47 }
 0x75b   : > { %v5956_v16 = vpop.f32.mrf.mxu0 }
 0x763   : > { %v5959_v50 = vpop.f32.mrf.mxu0 }
 0x76b   : > { %v5962_v18 = vpop.f32.mrf.mxu0 }
 0x773   : > { %v5965_v52 = vpop.f32.mrf.mxu0 }
 0x781   : > { %v5915_v38 = vpop.f32.mrf.mxu3 }
 0x782   : > { %v5957_v4 = vadd.f32 %v5956_v16, %v5915_v38 }
 0x789   : > { %v5918_v59 = vpop.f32.mrf.mxu3 }
 0x78a   : > { %v5960_v1 = vadd.f32 %v5959_v50, %v5918_v59 }
 0x791   : > { %v5921_v27 = vpop.f32.mrf.mxu3 }
 0x792   : > { %v5963_v28 = vadd.f32 %v5962_v18, %v5921_v27 }
 0x799   : > { %v5924_v36 = vpop.f32.mrf.mxu3 }
 0x79a   : > { %v5966_v25 = vadd.f32 %v5965_v52, %v5924_v36 }
 0x7a1   : > { %v6006_v21 = vpop.f32.mrf.mxu3 }
 0x7a2   : > { %v6018_v14 = vadd.f32 %v6006_v21, %v5957_v4 }
 0x7a4   : > { %v6026_v13 = vadd.f32 %v6860_v11, %v6018_v14 }
 0x7a6   : > { %6031 = vst.msk [vmem:[%s632_s18] sm:$0xff] %vm6030_vm2, %v6026_v13 }
 0x7a9   : > { %v6009_v57 = vpop.f32.mrf.mxu3 }
 0x7aa   : > { %v6019_v51 = vadd.f32 %v6009_v57, %v5960_v1 }
 0x7ac   : > { %v6027_v0 = vadd.f32 %v6860_v11, %v6019_v51 }
 0x7ae   : > { %6032 = vst.msk [vmem:[%s632_s18 + $0x8] sm:$0xff] %vm6030_vm2, %v6027_v0 }
 0x7b1   : > { %v6012_v60 = vpop.f32.mrf.mxu3 }
 0x7b2   : > { %v6020_v58 = vadd.f32 %v6012_v60, %v5963_v28 }
 0x7b4   : > { %v6028_v29 = vadd.f32 %v6860_v11, %v6020_v58 }
 0x7b6   : > { %6033 = vst.msk [vmem:[%s632_s18 + $0x10] sm:$0xff] %vm6030_vm2, %v6028_v29 }
 0x7b9   : > { %v6015_v54 = vpop.f32.mrf.mxu3 }
 0x7ba   : > { %v6021_v30 = vadd.f32 %v6015_v54, %v5966_v25 }
 0x7bc   : > { %v6029_v39 = vadd.f32 %v6860_v11, %v6021_v30 }
 0x7be   : > { %6034 = vst.msk [vmem:[%s632_s18 + $0x18] sm:$0xff] %vm6030_vm2, %v6029_v39 }
 0x7bf PF: > { %p17_p9 = scmp.ge.s32.totalorder %s6958_s17, 4   ;;  %s10180_s13 = smov %s6880_s14 }
 0x7c0   : > { %s10181_s14 = smov %s6967_s20  ;;  %s10182_s15 = smov %s6958_s17 }
 0x7c1   :  { %19 = sbr.rel (!%p17_p9) target bundleno = 2 (0x2), region = 161 }

</bundles_post_ra>
